<compile_context>
chip_gen: v6e
topology: v6e:2x2x1
jax: 0.10.0
libtpu: 0.0.40
codegen_flags: <defaults>
</compile_context>

<pallas_src>
import functools
import math

import jax
import jax.numpy as jnp
from jax.experimental import pallas as pl
from jax.experimental.pallas import tpu as pltpu

BN_EPS = 1e-5


def _bottleneck_kernel(x_ref, mask_ref,
                       w1_ref, b1_ref,
                       w2_ref, b2_ref,
                       w3_ref, b3_ref,
                       o_ref, h1e_ref,
                       *, hpwp, wp, guard, planes):
    """Whole Bottleneck forward for one batch element.

    x_ref    : (1, HpWp, Cin)  f32  spatially zero-padded, row-flattened NHWC
    mask_ref : (HpWp, 1)       f32  1.0 on real pixels, 0.0 on the pad ring
    w*_ref   : bf16 matmul weights (BN scale pre-folded); b*_ref : (1, C) f32 shift
    o_ref    : (1, HpWp, Cout) f32  output on the padded row grid
    h1e_ref  : (2*guard + HpWp, planes) f32 VMEM scratch (guarded conv1 output)
    """
    xb = x_ref[0]                                              # (HpWp, Cin) f32

    # ---- conv1 (1x1) + bn1 + relu (scale folded into w1/b1) -----------------
    a1 = jnp.dot(xb.astype(jnp.bfloat16), w1_ref[...],
                 preferred_element_type=jnp.float32)           # (HpWp, P) f32
    h1 = jnp.maximum(a1 + b1_ref[...], 0.0) * mask_ref[...]    # kill halo rows

    # guarded scratch: zero only the guard rings; interior is fully overwritten
    h1e_ref[pl.ds(0, guard), :] = jnp.zeros((guard, planes), jnp.float32)
    h1e_ref[pl.ds(guard + hpwp, guard), :] = jnp.zeros((guard, planes),
                                                       jnp.float32)
    h1e_ref[pl.ds(guard, hpwp), :] = h1

    # ---- conv2 (3x3, stride=1, pad=1) as 9 shifted matmuls + bn2 + relu -----
    acc = jnp.dot(h1e_ref[pl.ds(guard - wp - 1, hpwp), :].astype(jnp.bfloat16),
                  w2_ref[0], preferred_element_type=jnp.float32)
    for t in range(1, 9):                                      # static unroll
        off = (t // 3 - 1) * wp + (t % 3 - 1)                  # static shift
        win = h1e_ref[pl.ds(guard + off, hpwp), :]             # (HpWp, P)
        acc = acc + jnp.dot(win.astype(jnp.bfloat16), w2_ref[t],
                            preferred_element_type=jnp.float32)
    h2 = jnp.maximum(acc + b2_ref[...], 0.0)

    # ---- conv3 (1x1) + bn3 + residual + relu --------------------------------
    a3 = jnp.dot(h2.astype(jnp.bfloat16), w3_ref[...],
                 preferred_element_type=jnp.float32)           # (HpWp, Cout)
    o_ref[0] = jnp.maximum(a3 + b3_ref[...] + xb, 0.0)         # residual = x


def bottleneck_forward(params, x_nchw):
    B, Cin, H, W = x_nchw.shape
    P = params["w1"].shape[0]          # planes
    Cout = params["w3"].shape[0]       # planes * 4
    assert Cout == Cin, "downsample=None requires inplanes == planes * 4"

    Hp, Wp = H + 2, W + 2
    HpWp = Hp * Wp
    guard = ((Wp + 1 + 7) // 8) * 8    # >= Wp + 1, sublane-aligned
    assert Wp + 1 <= guard

    # ---- layout plumbing: NCHW -> spatially padded, row-flattened NHWC ------
    x_nhwc = jnp.transpose(x_nchw, (0, 2, 3, 1))
    x_pad = jnp.pad(x_nhwc, ((0, 0), (1, 1), (1, 1), (0, 0)))
    x2 = x_pad.reshape(B, HpWp, Cin).astype(jnp.float32)

    r = jnp.arange(HpWp)
    yi, xi = r // Wp, r % Wp
    mask = (((yi >= 1) & (yi <= H) & (xi >= 1) & (xi <= W))
            .astype(jnp.float32).reshape(HpWp, 1))

    # ---- fold BatchNorm (inference mode, fresh stats) into the weights ------
    # TODO(synk): training-mode BN / loaded running statistics not reproduced.
    s = 1.0 / math.sqrt(1.0 + BN_EPS)

    w1 = (params["w1"][:, :, 0, 0].T * s).astype(jnp.bfloat16)        # (Cin, P)
    w2 = ((jnp.transpose(params["w2"], (2, 3, 1, 0))                  # (3,3,Pin,Pout)
           .reshape(9, P, P)) * s).astype(jnp.bfloat16)               # (9, Pin, Pout)
    w3 = (params["w3"][:, :, 0, 0].T * s).astype(jnp.bfloat16)        # (P, Cout)

    sh1 = (params["b1"] * s).reshape(1, P).astype(jnp.float32)
    sh2 = (params["b2"] * s).reshape(1, P).astype(jnp.float32)
    sh3 = (params["b3"] * s).reshape(1, Cout).astype(jnp.float32)

    kernel = functools.partial(_bottleneck_kernel,
                               hpwp=HpWp, wp=Wp, guard=guard, planes=P)

    out_pad = pl.pallas_call(
        kernel,
        out_shape=jax.ShapeDtypeStruct((B, HpWp, Cout), jnp.float32),
        grid=(B,),
        in_specs=[
            pl.BlockSpec((1, HpWp, Cin), lambda b: (b, 0, 0)),   # x (per batch)
            pl.BlockSpec((HpWp, 1), lambda b: (0, 0)),           # pad mask
            pl.BlockSpec((Cin, P), lambda b: (0, 0)),            # w1 (resident)
            pl.BlockSpec((1, P), lambda b: (0, 0)),              # bn1 shift
            pl.BlockSpec((9, P, P), lambda b: (0, 0, 0)),        # w2 taps
            pl.BlockSpec((1, P), lambda b: (0, 0)),              # bn2 shift
            pl.BlockSpec((P, Cout), lambda b: (0, 0)),           # w3
            pl.BlockSpec((1, Cout), lambda b: (0, 0)),           # bn3 shift
        ],
        out_specs=pl.BlockSpec((1, HpWp, Cout), lambda b: (b, 0, 0)),
        scratch_shapes=[pltpu.VMEM((HpWp + 2 * guard, P), jnp.float32)],
        compiler_params=pltpu.CompilerParams(
            dimension_semantics=("parallel",)),   # batch -> both v7x TCs
    )(x2, mask, w1, sh1, w2, sh2, w3, sh3)

    # drop the padded ring, back to NCHW
    out = out_pad.reshape(B, Hp, Wp, Cout)[:, 1:H + 1, 1:W + 1, :]
    return jnp.transpose(out, (0, 3, 1, 2))


def init_params(key, inplanes, planes):
    """PyTorch-default-style conv init (uniform +-1/sqrt(fan_in)), bias=True."""
    def conv_init(k, cout, cin, kh, kw):
        bound = 1.0 / math.sqrt(cin * kh * kw)
        kw_, kb_ = jax.random.split(k)
        w = jax.random.uniform(kw_, (cout, cin, kh, kw), jnp.float32,
                               -bound, bound)
        b = jax.random.uniform(kb_, (cout,), jnp.float32, -bound, bound)
        return w, b

    k1, k2, k3 = jax.random.split(key, 3)
    w1, b1 = conv_init(k1, planes, inplanes, 1, 1)
    w2, b2 = conv_init(k2, planes, planes, 3, 3)
    w3, b3 = conv_init(k3, planes * 4, planes, 1, 1)
    return dict(w1=w1, b1=b1, w2=w2, b2=b2, w3=w3, b3=b3)


def reference_forward(params, x):
    """Pure-XLA f32 reference of the same forward pass (for validation)."""
    s = 1.0 / math.sqrt(1.0 + BN_EPS)

    def conv(h, w, b, pad=0):
        y = jax.lax.conv_general_dilated(
            h, w, (1, 1), [(pad, pad), (pad, pad)],
            dimension_numbers=("NCHW", "OIHW", "NCHW"),
            precision=jax.lax.Precision.HIGHEST)
        return y + b.reshape(1, -1, 1, 1)

    h = jax.nn.relu(conv(x, params["w1"], params["b1"]) * s)
    h = jax.nn.relu(conv(h, params["w2"], params["b2"], pad=1) * s)
    h = conv(h, params["w3"], params["b3"]) * s
    return jax.nn.relu(h + x)


if __name__ == "__main__":
    key = jax.random.PRNGKey(0)
    pkey, xkey = jax.random.split(key)

    B, planes, H = 2, 32, 16
    inplanes = planes * 4              # downsample=None -> inplanes == planes*4
    params = init_params(pkey, inplanes, planes)
    x = jax.random.normal(xkey, (B, inplanes, H, H), jnp.float32)

    fwd = jax.jit(lambda inp: bottleneck_forward(params, inp))
    out = fwd(x)
    jax.block_until_ready(out)

    assert out.shape == (B, inplanes, H, H), out.shape
    assert bool(jnp.all(jnp.isfinite(out)))

    ref = reference_forward(params, x)
    assert bool(jnp.allclose(out, ref, rtol=5e-2, atol=5e-2)), (
        float(jnp.max(jnp.abs(out - ref))))

    print("KERNEL_OK")
</pallas_src>

<mosaic_0001>
module attributes {stable_mosaic.version = 11 : i64} {
  func.func @_bottleneck_kernel(%arg0: i32, %arg1: memref<1x324x128xf32, #tpu.memory_space<vmem>>, %arg2: memref<324x1xf32, #tpu.memory_space<vmem>>, %arg3: memref<128x32xbf16, #tpu.memory_space<vmem>>, %arg4: memref<1x32xf32, #tpu.memory_space<vmem>>, %arg5: memref<9x32x32xbf16, #tpu.memory_space<vmem>>, %arg6: memref<1x32xf32, #tpu.memory_space<vmem>>, %arg7: memref<32x128xbf16, #tpu.memory_space<vmem>>, %arg8: memref<1x128xf32, #tpu.memory_space<vmem>>, %arg9: memref<1x324x128xf32, #tpu.memory_space<vmem>>, %arg10: memref<372x32xf32, #tpu.memory_space<vmem>>) attributes {dimension_semantics = [#tpu.dimension_semantics<parallel>], iteration_bounds = array<i64: 2>, scalar_prefetch = 0 : i64, scratch_operands = 1 : i64, tpu.core_type = #tpu.core_type<tc>, window_params = [{transform_indices = @transform_0, window_bounds = array<i64: 1, 324, 128>}, {pipeline_mode = #tpu.pipeline_mode<synchronous>, transform_indices = @transform_1, window_bounds = array<i64: 324, 1>}, {pipeline_mode = #tpu.pipeline_mode<synchronous>, transform_indices = @transform_2, window_bounds = array<i64: 128, 32>}, {pipeline_mode = #tpu.pipeline_mode<synchronous>, transform_indices = @transform_3, window_bounds = array<i64: 1, 32>}, {pipeline_mode = #tpu.pipeline_mode<synchronous>, transform_indices = @transform_4, window_bounds = array<i64: 9, 32, 32>}, {pipeline_mode = #tpu.pipeline_mode<synchronous>, transform_indices = @transform_5, window_bounds = array<i64: 1, 32>}, {pipeline_mode = #tpu.pipeline_mode<synchronous>, transform_indices = @transform_6, window_bounds = array<i64: 32, 128>}, {pipeline_mode = #tpu.pipeline_mode<synchronous>, transform_indices = @transform_7, window_bounds = array<i64: 1, 128>}, {transform_indices = @transform_8, window_bounds = array<i64: 1, 324, 128>}]} {
    %c0 = arith.constant 0 : index
    %c0_0 = arith.constant 0 : index
    %c0_1 = arith.constant 0 : index
    %0 = vector.load %arg1[%c0, %c0_0, %c0_1] : memref<1x324x128xf32, #tpu.memory_space<vmem>>, vector<1x324x128xf32>
    %1 = vector.shape_cast %0 : vector<1x324x128xf32> to vector<324x128xf32>
    %2 = arith.truncf %1 : vector<324x128xf32> to vector<324x128xbf16>
    %c0_2 = arith.constant 0 : index
    %c0_3 = arith.constant 0 : index
    %3 = vector.load %arg3[%c0_2, %c0_3] : memref<128x32xbf16, #tpu.memory_space<vmem>>, vector<128x32xbf16>
    %cst = arith.constant dense<0.000000e+00> : vector<324x32xf32>
    %4 = tpu.matmul %2, %3, %cst {dimension_numbers = #tpu.dot_dimension_numbers<[1], [0], [0], [1], [0, 0, 1, 1], [], []>} : vector<324x128xbf16>, vector<128x32xbf16>, vector<324x32xf32> -> vector<324x32xf32>
    %c0_4 = arith.constant 0 : index
    %c0_5 = arith.constant 0 : index
    %5 = vector.load %arg4[%c0_4, %c0_5] : memref<1x32xf32, #tpu.memory_space<vmem>>, vector<1x32xf32>
    %6 = vector.broadcast %5 : vector<1x32xf32> to vector<324x32xf32>
    %7 = arith.addf %4, %6 : vector<324x32xf32>
    %cst_6 = arith.constant 0.000000e+00 : f32
    %8 = vector.broadcast %cst_6 : f32 to vector<324x32xf32>
    %9 = arith.maximumf %7, %8 : vector<324x32xf32>
    %c0_7 = arith.constant 0 : index
    %c0_8 = arith.constant 0 : index
    %10 = vector.load %arg2[%c0_7, %c0_8] : memref<324x1xf32, #tpu.memory_space<vmem>>, vector<324x1xf32>
    %11 = vector.broadcast %10 : vector<324x1xf32> to vector<324x32xf32>
    %12 = arith.mulf %9, %11 : vector<324x32xf32>
    %cst_9 = arith.constant 0.000000e+00 : f32
    %13 = vector.broadcast %cst_9 : f32 to vector<24x32xf32>
    %c0_10 = arith.constant 0 : index
    %c0_11 = arith.constant 0 : index
    %14 = vector.load %arg10[%c0_10, %c0_11] : memref<372x32xf32, #tpu.memory_space<vmem>>, vector<24x32xf32>
    tpu.vector_store %arg10[%c0_10, %c0_11], %13 {strides = array<i32>} : memref<372x32xf32, #tpu.memory_space<vmem>>, vector<24x32xf32>,
    %cst_12 = arith.constant 0.000000e+00 : f32
    %15 = vector.broadcast %cst_12 : f32 to vector<24x32xf32>
    %c348 = arith.constant 348 : index
    %c0_13 = arith.constant 0 : index
    %16 = vector.load %arg10[%c348, %c0_13] : memref<372x32xf32, #tpu.memory_space<vmem>>, vector<24x32xf32>
    tpu.vector_store %arg10[%c348, %c0_13], %15 {strides = array<i32>} : memref<372x32xf32, #tpu.memory_space<vmem>>, vector<24x32xf32>,
    %c24 = arith.constant 24 : index
    %c0_14 = arith.constant 0 : index
    %17 = vector.load %arg10[%c24, %c0_14] : memref<372x32xf32, #tpu.memory_space<vmem>>, vector<324x32xf32>
    tpu.vector_store %arg10[%c24, %c0_14], %12 {strides = array<i32>} : memref<372x32xf32, #tpu.memory_space<vmem>>, vector<324x32xf32>,
    %c5 = arith.constant 5 : index
    %c0_15 = arith.constant 0 : index
    %18 = vector.load %arg10[%c5, %c0_15] : memref<372x32xf32, #tpu.memory_space<vmem>>, vector<324x32xf32>
    %19 = arith.truncf %18 : vector<324x32xf32> to vector<324x32xbf16>
    %c0_16 = arith.constant 0 : index
    %c0_17 = arith.constant 0 : index
    %c0_18 = arith.constant 0 : index
    %20 = vector.load %arg5[%c0_16, %c0_17, %c0_18] : memref<9x32x32xbf16, #tpu.memory_space<vmem>>, vector<1x32x32xbf16>
    %21 = vector.shape_cast %20 : vector<1x32x32xbf16> to vector<32x32xbf16>
    %cst_19 = arith.constant dense<0.000000e+00> : vector<324x32xf32>
    %22 = tpu.matmul %19, %21, %cst_19 {dimension_numbers = #tpu.dot_dimension_numbers<[1], [0], [0], [1], [0, 0, 1, 1], [], []>} : vector<324x32xbf16>, vector<32x32xbf16>, vector<324x32xf32> -> vector<324x32xf32>
    %c6 = arith.constant 6 : index
    %c0_20 = arith.constant 0 : index
    %23 = vector.load %arg10[%c6, %c0_20] : memref<372x32xf32, #tpu.memory_space<vmem>>, vector<324x32xf32>
    %24 = arith.truncf %23 : vector<324x32xf32> to vector<324x32xbf16>
    %c1 = arith.constant 1 : index
    %c0_21 = arith.constant 0 : index
    %c0_22 = arith.constant 0 : index
    %25 = vector.load %arg5[%c1, %c0_21, %c0_22] : memref<9x32x32xbf16, #tpu.memory_space<vmem>>, vector<1x32x32xbf16>
    %26 = vector.shape_cast %25 : vector<1x32x32xbf16> to vector<32x32xbf16>
    %cst_23 = arith.constant dense<0.000000e+00> : vector<324x32xf32>
    %27 = tpu.matmul %24, %26, %cst_23 {dimension_numbers = #tpu.dot_dimension_numbers<[1], [0], [0], [1], [0, 0, 1, 1], [], []>} : vector<324x32xbf16>, vector<32x32xbf16>, vector<324x32xf32> -> vector<324x32xf32>
    %28 = arith.addf %22, %27 : vector<324x32xf32>
    %c7 = arith.constant 7 : index
    %c0_24 = arith.constant 0 : index
    %29 = vector.load %arg10[%c7, %c0_24] : memref<372x32xf32, #tpu.memory_space<vmem>>, vector<324x32xf32>
    %30 = arith.truncf %29 : vector<324x32xf32> to vector<324x32xbf16>
    %c2 = arith.constant 2 : index
    %c0_25 = arith.constant 0 : index
    %c0_26 = arith.constant 0 : index
    %31 = vector.load %arg5[%c2, %c0_25, %c0_26] : memref<9x32x32xbf16, #tpu.memory_space<vmem>>, vector<1x32x32xbf16>
    %32 = vector.shape_cast %31 : vector<1x32x32xbf16> to vector<32x32xbf16>
    %cst_27 = arith.constant dense<0.000000e+00> : vector<324x32xf32>
    %33 = tpu.matmul %30, %32, %cst_27 {dimension_numbers = #tpu.dot_dimension_numbers<[1], [0], [0], [1], [0, 0, 1, 1], [], []>} : vector<324x32xbf16>, vector<32x32xbf16>, vector<324x32xf32> -> vector<324x32xf32>
    %34 = arith.addf %28, %33 : vector<324x32xf32>
    %c23 = arith.constant 23 : index
    %c0_28 = arith.constant 0 : index
    %35 = vector.load %arg10[%c23, %c0_28] : memref<372x32xf32, #tpu.memory_space<vmem>>, vector<324x32xf32>
    %36 = arith.truncf %35 : vector<324x32xf32> to vector<324x32xbf16>
    %c3 = arith.constant 3 : index
    %c0_29 = arith.constant 0 : index
    %c0_30 = arith.constant 0 : index
    %37 = vector.load %arg5[%c3, %c0_29, %c0_30] : memref<9x32x32xbf16, #tpu.memory_space<vmem>>, vector<1x32x32xbf16>
    %38 = vector.shape_cast %37 : vector<1x32x32xbf16> to vector<32x32xbf16>
    %cst_31 = arith.constant dense<0.000000e+00> : vector<324x32xf32>
    %39 = tpu.matmul %36, %38, %cst_31 {dimension_numbers = #tpu.dot_dimension_numbers<[1], [0], [0], [1], [0, 0, 1, 1], [], []>} : vector<324x32xbf16>, vector<32x32xbf16>, vector<324x32xf32> -> vector<324x32xf32>
    %40 = arith.addf %34, %39 : vector<324x32xf32>
    %c24_32 = arith.constant 24 : index
    %c0_33 = arith.constant 0 : index
    %41 = vector.load %arg10[%c24_32, %c0_33] : memref<372x32xf32, #tpu.memory_space<vmem>>, vector<324x32xf32>
    %42 = arith.truncf %41 : vector<324x32xf32> to vector<324x32xbf16>
    %c4 = arith.constant 4 : index
    %c0_34 = arith.constant 0 : index
    %c0_35 = arith.constant 0 : index
    %43 = vector.load %arg5[%c4, %c0_34, %c0_35] : memref<9x32x32xbf16, #tpu.memory_space<vmem>>, vector<1x32x32xbf16>
    %44 = vector.shape_cast %43 : vector<1x32x32xbf16> to vector<32x32xbf16>
    %cst_36 = arith.constant dense<0.000000e+00> : vector<324x32xf32>
    %45 = tpu.matmul %42, %44, %cst_36 {dimension_numbers = #tpu.dot_dimension_numbers<[1], [0], [0], [1], [0, 0, 1, 1], [], []>} : vector<324x32xbf16>, vector<32x32xbf16>, vector<324x32xf32> -> vector<324x32xf32>
    %46 = arith.addf %40, %45 : vector<324x32xf32>
    %c25 = arith.constant 25 : index
    %c0_37 = arith.constant 0 : index
    %47 = vector.load %arg10[%c25, %c0_37] : memref<372x32xf32, #tpu.memory_space<vmem>>, vector<324x32xf32>
    %48 = arith.truncf %47 : vector<324x32xf32> to vector<324x32xbf16>
    %c5_38 = arith.constant 5 : index
    %c0_39 = arith.constant 0 : index
    %c0_40 = arith.constant 0 : index
    %49 = vector.load %arg5[%c5_38, %c0_39, %c0_40] : memref<9x32x32xbf16, #tpu.memory_space<vmem>>, vector<1x32x32xbf16>
    %50 = vector.shape_cast %49 : vector<1x32x32xbf16> to vector<32x32xbf16>
    %cst_41 = arith.constant dense<0.000000e+00> : vector<324x32xf32>
    %51 = tpu.matmul %48, %50, %cst_41 {dimension_numbers = #tpu.dot_dimension_numbers<[1], [0], [0], [1], [0, 0, 1, 1], [], []>} : vector<324x32xbf16>, vector<32x32xbf16>, vector<324x32xf32> -> vector<324x32xf32>
    %52 = arith.addf %46, %51 : vector<324x32xf32>
    %c41 = arith.constant 41 : index
    %c0_42 = arith.constant 0 : index
    %53 = vector.load %arg10[%c41, %c0_42] : memref<372x32xf32, #tpu.memory_space<vmem>>, vector<324x32xf32>
    %54 = arith.truncf %53 : vector<324x32xf32> to vector<324x32xbf16>
    %c6_43 = arith.constant 6 : index
    %c0_44 = arith.constant 0 : index
    %c0_45 = arith.constant 0 : index
    %55 = vector.load %arg5[%c6_43, %c0_44, %c0_45] : memref<9x32x32xbf16, #tpu.memory_space<vmem>>, vector<1x32x32xbf16>
    %56 = vector.shape_cast %55 : vector<1x32x32xbf16> to vector<32x32xbf16>
    %cst_46 = arith.constant dense<0.000000e+00> : vector<324x32xf32>
    %57 = tpu.matmul %54, %56, %cst_46 {dimension_numbers = #tpu.dot_dimension_numbers<[1], [0], [0], [1], [0, 0, 1, 1], [], []>} : vector<324x32xbf16>, vector<32x32xbf16>, vector<324x32xf32> -> vector<324x32xf32>
    %58 = arith.addf %52, %57 : vector<324x32xf32>
    %c42 = arith.constant 42 : index
    %c0_47 = arith.constant 0 : index
    %59 = vector.load %arg10[%c42, %c0_47] : memref<372x32xf32, #tpu.memory_space<vmem>>, vector<324x32xf32>
    %60 = arith.truncf %59 : vector<324x32xf32> to vector<324x32xbf16>
    %c7_48 = arith.constant 7 : index
    %c0_49 = arith.constant 0 : index
    %c0_50 = arith.constant 0 : index
    %61 = vector.load %arg5[%c7_48, %c0_49, %c0_50] : memref<9x32x32xbf16, #tpu.memory_space<vmem>>, vector<1x32x32xbf16>
    %62 = vector.shape_cast %61 : vector<1x32x32xbf16> to vector<32x32xbf16>
    %cst_51 = arith.constant dense<0.000000e+00> : vector<324x32xf32>
    %63 = tpu.matmul %60, %62, %cst_51 {dimension_numbers = #tpu.dot_dimension_numbers<[1], [0], [0], [1], [0, 0, 1, 1], [], []>} : vector<324x32xbf16>, vector<32x32xbf16>, vector<324x32xf32> -> vector<324x32xf32>
    %64 = arith.addf %58, %63 : vector<324x32xf32>
    %c43 = arith.constant 43 : index
    %c0_52 = arith.constant 0 : index
    %65 = vector.load %arg10[%c43, %c0_52] : memref<372x32xf32, #tpu.memory_space<vmem>>, vector<324x32xf32>
    %66 = arith.truncf %65 : vector<324x32xf32> to vector<324x32xbf16>
    %c8 = arith.constant 8 : index
    %c0_53 = arith.constant 0 : index
    %c0_54 = arith.constant 0 : index
    %67 = vector.load %arg5[%c8, %c0_53, %c0_54] : memref<9x32x32xbf16, #tpu.memory_space<vmem>>, vector<1x32x32xbf16>
    %68 = vector.shape_cast %67 : vector<1x32x32xbf16> to vector<32x32xbf16>
    %cst_55 = arith.constant dense<0.000000e+00> : vector<324x32xf32>
    %69 = tpu.matmul %66, %68, %cst_55 {dimension_numbers = #tpu.dot_dimension_numbers<[1], [0], [0], [1], [0, 0, 1, 1], [], []>} : vector<324x32xbf16>, vector<32x32xbf16>, vector<324x32xf32> -> vector<324x32xf32>
    %70 = arith.addf %64, %69 : vector<324x32xf32>
    %c0_56 = arith.constant 0 : index
    %c0_57 = arith.constant 0 : index
    %71 = vector.load %arg6[%c0_56, %c0_57] : memref<1x32xf32, #tpu.memory_space<vmem>>, vector<1x32xf32>
    %72 = vector.broadcast %71 : vector<1x32xf32> to vector<324x32xf32>
    %73 = arith.addf %70, %72 : vector<324x32xf32>
    %cst_58 = arith.constant 0.000000e+00 : f32
    %74 = vector.broadcast %cst_58 : f32 to vector<324x32xf32>
    %75 = arith.maximumf %73, %74 : vector<324x32xf32>
    %76 = arith.truncf %75 : vector<324x32xf32> to vector<324x32xbf16>
    %c0_59 = arith.constant 0 : index
    %c0_60 = arith.constant 0 : index
    %77 = vector.load %arg7[%c0_59, %c0_60] : memref<32x128xbf16, #tpu.memory_space<vmem>>, vector<32x128xbf16>
    %cst_61 = arith.constant dense<0.000000e+00> : vector<324x128xf32>
    %78 = tpu.matmul %76, %77, %cst_61 {dimension_numbers = #tpu.dot_dimension_numbers<[1], [0], [0], [1], [0, 0, 1, 1], [], []>} : vector<324x32xbf16>, vector<32x128xbf16>, vector<324x128xf32> -> vector<324x128xf32>
    %c0_62 = arith.constant 0 : index
    %c0_63 = arith.constant 0 : index
    %79 = vector.load %arg8[%c0_62, %c0_63] : memref<1x128xf32, #tpu.memory_space<vmem>>, vector<1x128xf32>
    %80 = vector.broadcast %79 : vector<1x128xf32> to vector<324x128xf32>
    %81 = arith.addf %78, %80 : vector<324x128xf32>
    %82 = arith.addf %81, %1 : vector<324x128xf32>
    %cst_64 = arith.constant 0.000000e+00 : f32
    %83 = vector.broadcast %cst_64 : f32 to vector<324x128xf32>
    %84 = arith.maximumf %82, %83 : vector<324x128xf32>
    %c0_65 = arith.constant 0 : index
    %c0_66 = arith.constant 0 : index
    %c0_67 = arith.constant 0 : index
    %85 = vector.load %arg9[%c0_65, %c0_66, %c0_67] : memref<1x324x128xf32, #tpu.memory_space<vmem>>, vector<1x324x128xf32>
    %86 = vector.shape_cast %85 : vector<1x324x128xf32> to vector<324x128xf32>
    %87 = vector.shape_cast %84 : vector<324x128xf32> to vector<1x324x128xf32>
    tpu.vector_store %arg9[%c0_65, %c0_66, %c0_67], %87 {strides = array<i32>} : memref<1x324x128xf32, #tpu.memory_space<vmem>>, vector<1x324x128xf32>,
    return
  }
  func.func @transform_0(%arg0: i32) -> (i32, i32, i32) {
    %c0_i32 = arith.constant 0 : i32
    %c0_i32_0 = arith.constant 0 : i32
    %c0_i32_1 = arith.constant 0 : i32
    return %arg0, %c0_i32, %c0_i32_0 : i32, i32, i32
  }
  func.func @transform_1(%arg0: i32) -> (i32, i32) {
    %c0_i32 = arith.constant 0 : i32
    %c0_i32_0 = arith.constant 0 : i32
    %c0_i32_1 = arith.constant 0 : i32
    return %c0_i32, %c0_i32_0 : i32, i32
  }
  func.func @transform_2(%arg0: i32) -> (i32, i32) {
    %c0_i32 = arith.constant 0 : i32
    %c0_i32_0 = arith.constant 0 : i32
    %c0_i32_1 = arith.constant 0 : i32
    return %c0_i32, %c0_i32_0 : i32, i32
  }
  func.func @transform_3(%arg0: i32) -> (i32, i32) {
    %c0_i32 = arith.constant 0 : i32
    %c0_i32_0 = arith.constant 0 : i32
    %c0_i32_1 = arith.constant 0 : i32
    return %c0_i32, %c0_i32_0 : i32, i32
  }
  func.func @transform_4(%arg0: i32) -> (i32, i32, i32) {
    %c0_i32 = arith.constant 0 : i32
    %c0_i32_0 = arith.constant 0 : i32
    %c0_i32_1 = arith.constant 0 : i32
    %c0_i32_2 = arith.constant 0 : i32
    return %c0_i32, %c0_i32_0, %c0_i32_1 : i32, i32, i32
  }
  func.func @transform_5(%arg0: i32) -> (i32, i32) {
    %c0_i32 = arith.constant 0 : i32
    %c0_i32_0 = arith.constant 0 : i32
    %c0_i32_1 = arith.constant 0 : i32
    return %c0_i32, %c0_i32_0 : i32, i32
  }
  func.func @transform_6(%arg0: i32) -> (i32, i32) {
    %c0_i32 = arith.constant 0 : i32
    %c0_i32_0 = arith.constant 0 : i32
    %c0_i32_1 = arith.constant 0 : i32
    return %c0_i32, %c0_i32_0 : i32, i32
  }
  func.func @transform_7(%arg0: i32) -> (i32, i32) {
    %c0_i32 = arith.constant 0 : i32
    %c0_i32_0 = arith.constant 0 : i32
    %c0_i32_1 = arith.constant 0 : i32
    return %c0_i32, %c0_i32_0 : i32, i32
  }
  func.func @transform_8(%arg0: i32) -> (i32, i32, i32) {
    %c0_i32 = arith.constant 0 : i32
    %c0_i32_0 = arith.constant 0 : i32
    %c0_i32_1 = arith.constant 0 : i32
    return %arg0, %c0_i32, %c0_i32_0 : i32, i32, i32
  }
}

</mosaic_0001>

<bundles_post_ra>
// kernel: _lambda_.1
= control target key start
LH: loop header
LB: loop body
LE: loop exit
PB: predicated region body
PF: predicated region fallthrough
CT: control target
= control target key end

     0   :  { %s6619_s27 = smov 0   ;;  %s9002_s0 = inlined_call_operand.vmem [shape: f32[2,324,128], index: 0, kind: input, shape index: {}]   ;;  %s9003_s1 = inlined_call_operand.vmem [shape: f32[324,1], index: 1, kind: input, shape index: {}]   ;;  %s9004_s2 = inlined_call_operand.vmem [shape: bf16[128,32], index: 2, kind: input, shape index: {}]   ;;  %s9005_s3 = inlined_call_operand.vmem [shape: f32[1,32], index: 3, kind: input, shape index: {}]   ;;  %s9006_s4 = inlined_call_operand.vmem [shape: bf16[9,32,32], index: 4, kind: input, shape index: {}]   ;;  %s9007_s5 = inlined_call_operand.vmem [shape: f32[1,32], index: 5, kind: input, shape index: {}]   ;;  %s9008_s6 = inlined_call_operand.vmem [shape: bf16[32,128], index: 6, kind: input, shape index: {}]   ;;  %s9009_s7 = inlined_call_operand.vmem [shape: f32[1,128], index: 7, kind: input, shape index: {}]   ;;  %s9010_s8 = inlined_call_operand.vmem [shape: f32[2,324,128], index: 8, kind: output, shape index: {}]  }
   0x1 LB: > { %s4955_s28 = sadd.s32 4294967295, %s6569_s27   ;;  %p4959_p0 = scmp.ge.s32.totalorder %s6569_s27, 1  ;;  %s6569_s27 = sphi %s6619_s27, %s18_s27  }
   0x2   : > { %p262_p1 = scmp.lt.s32.totalorder %s6569_s27, 3 }
   0x4   : > { %p263_p2 = pnand %p4959_p0, %p262_p1 }
   0x6   : > { %266 = sbr.rel (%p263_p2) target bundleno = 1488 (0x5d0), region = 52 }
   0xb   : > { %v6494_v0 = vld [vmem:[%s9004_s2 + $0x38] sm:$0xff]   ;;  %v9011_v1 = vmov 0.0   ;;  %v6495_v2 = vld [vmem:[%s9004_s2 + $0x30] sm:$0xff]   ;;  %vm6572_vm0 = vmmov 0   ;;  %v6573_v3 = vmov 0   ;;  %v6496_v4 = vld [vmem:[%s9004_s2 + $0x28] sm:$0xff]  }
   0xc   : > { %5496 = vmatprep.subr.bf16.mxu0 %v9011_v1  ;;  %6476 = vmatprep.subr.bf16.mxu1 %v9011_v1  ;;  %v698_v5 = vld [vmem:[%s9003_s1 + $0x88] sm:$0xff]  ;;  %v696_v6 = vld [vmem:[%s9003_s1 + $0x78] sm:$0xff]  ;;  %v6497_v7 = vld [vmem:[%s9004_s2 + $0x20] sm:$0xff]   ;;  %p296_p3 = scmp.lt.s32.totalorder %s4955_s28, 1  ;;  %vm968_vm1 = vcmask 261120   ;;  %vm1015_vm2 = vcmask 257024  }
   0xd   : > { %5497 = vmatpush3.bf16.msra.mxu0 %v6494_v0  ;;  %5512 = vmatprep.mubr.msk.bf16.mxu0 %vm6572_vm0, %v9011_v1  ;;  %v699_v8 = vld [vmem:[%s9003_s1 + $0x90] sm:$0xff]  ;;  %v6498_v9 = vld [vmem:[%s9004_s2 + $0x18] sm:$0xff]   ;;  %v697_v10 = vld [vmem:[%s9003_s1 + $0x80] sm:$0xff]  ;;  %969 = vst.msk [vmem:[#allocation2] sm:$0xff] %vm968_vm1, %v9011_v1 }
   0xe   : > { %5498 = vmatprep.subr.bf16.mxu0 %v9011_v1  ;;  %5636 = vmatprep.mubr.msk.bf16.mxu1 %vm6572_vm0, %v9011_v1  ;;  %v701_v11 = vld [vmem:[%s9003_s1 + $0xa0] sm:$0xff]  ;;  %s9391_s28 = smov (!%p296_p3, %s4955_s28), 1  ;;  %v700_v12 = vld [vmem:[%s9003_s1 + $0x98] sm:$0xff]  ;;  %v6499_v13 = vld [vmem:[%s9004_s2 + $0x10] sm:$0xff]   ;;  %970 = vst.msk [vmem:[#allocation2 + $0x8] sm:$0xff] %vm968_vm1, %v9011_v1 }
   0xf   : > { %6493 = vset.pattern.permute.xlu1 %v6573_v3  ;;  %6492 = vset.pattern.permute.xlu0 %v6573_v3  ;;  %v703_v14 = vld [vmem:[%s9003_s1 + $0xb0] sm:$0xff]  ;;  %s6480_s13 = smul.u32 328, %s9391_s28  ;;  %v702_v15 = vld [vmem:[%s9003_s1 + $0xa8] sm:$0xff]  ;;  %v705_v17 = vld [vmem:[%s9003_s1 + $0xc0] sm:$0xff]  ;;  %971 = vst.msk [vmem:[#allocation2 + $0x10] sm:$0xff] %vm968_vm1, %v9011_v1 }
  0x10   : > { %809 = vperm.xlu1 %6493, %v698_v5   ;;  %799 = vperm.xlu0 %6492, %v696_v6   ;;  %v6500_v16 = vld [vmem:[%s9004_s2 + $0x8] sm:$0xff]   ;;  %v704_v18 = vld [vmem:[%s9003_s1 + $0xb8] sm:$0xff]  ;;  %v6501_v19 = vld [vmem:[%s9004_s2] sm:$0xff]   ;;  %972 = vst.msk [vmem:[#allocation2 + $0x15c] sm:$0xff] %vm968_vm1, %v9011_v1 }
  0x11   : > { %5499 = vmatpush3.bf16.msra.mxu0 %v6495_v2  ;;  %s6699_s22 = scalar_lea.vmem %s9002_s0, %s6480_s13  ;;  %v681_v22 = vld [vmem:[%s9003_s1] sm:$0xff]  ;;  %v706_v23 = vld [vmem:[%s9003_s1 + $0xc8] sm:$0xff]  ;;  %v707_v25 = vld [vmem:[%s9003_s1 + $0xd0] sm:$0xff]  ;;  %973 = vst.msk [vmem:[#allocation2 + $0x164] sm:$0xff] %vm968_vm1, %v9011_v1  ;;  %s8876_s9 = scalar_lea.vmem %s9010_s8, %s6480_s13 }
  0x12   : > { %5500 = vmatprep.subr.bf16.mxu0 %v9011_v1  ;;  %v307_v20 = vld [vmem:[%s6699_s22] sm:$0xff]  ;;  %v308_v21 = vld [vmem:[%s6699_s22 + $0x8] sm:$0xff]  ;;  %v309_v27 = vld [vmem:[%s6699_s22 + $0x10] sm:$0xff]  ;;  %974 = vst.msk [vmem:[#allocation2 + $0x16c] sm:$0xff] %vm968_vm1, %v9011_v1 }
  0x13   : > { %v348_v24 = vpack.c.bf16 %v308_v21, %v307_v20  ;;  %v682_v26 = vld [vmem:[%s9003_s1 + $0x8] sm:$0xff]  ;;  %v310_v28 = vld [vmem:[%s6699_s22 + $0x18] sm:$0xff]  ;;  %v683_v30 = vld [vmem:[%s9003_s1 + $0x10] sm:$0xff] }
  0x14   : > { %814 = vperm.xlu1 %6493, %v699_v8   ;;  %804 = vperm.xlu0 %6492, %v697_v10   ;;  %v708_v29 = vld [vmem:[%s9003_s1 + $0xd8] sm:$0xff]  ;;  %v709_v32 = vld [vmem:[%s9003_s1 + $0xe0] sm:$0xff]  ;;  %v349_v33 = vpack.c.bf16 %v310_v28, %v309_v27  ;;  %v312_v36 = vld [vmem:[%s6699_s22 + $0x28] sm:$0xff] }
  0x15   : > { %5501 = vmatpush3.bf16.msra.mxu0 %v6496_v4  ;;  %v6502_v31 = vld [vmem:[%s9006_s4 + $0x18] sm:$0xff]   ;;  %v311_v35 = vld [vmem:[%s6699_s22 + $0x20] sm:$0xff]  ;;  %v710_v37 = vld [vmem:[%s9003_s1 + $0xe8] sm:$0xff] }
  0x16   : > { %5502 = vmatprep.subr.bf16.mxu0 %v9011_v1  ;;  %6478 = vmatpush3.bf16.msra.mxu1 %v6502_v31  ;;  %v684_v34 = vld [vmem:[%s9003_s1 + $0x18] sm:$0xff]  ;;  %v685_v38 = vld [vmem:[%s9003_s1 + $0x20] sm:$0xff]  ;;  %v711_v39 = vld [vmem:[%s9003_s1 + $0xf0] sm:$0xff]  ;;  %v350_v40 = vpack.c.bf16 %v312_v36, %v311_v35 }
  0x17   : > { %6477 = vmatprep.subr.bf16.mxu1 %v9011_v1  ;;  %v686_v41 = vld [vmem:[%s9003_s1 + $0x28] sm:$0xff]  ;;  %v313_v42 = vld [vmem:[%s6699_s22 + $0x30] sm:$0xff]  ;;  %v314_v43 = vld [vmem:[%s6699_s22 + $0x38] sm:$0xff] }
  0x18   : > { %824 = vperm.xlu1 %6493, %v701_v11   ;;  %819 = vperm.xlu0 %6492, %v700_v12   ;;  %v687_v44 = vld [vmem:[%s9003_s1 + $0x30] sm:$0xff]  ;;  %v712_v45 = vld [vmem:[%s9003_s1 + $0xf8] sm:$0xff]  ;;  %v351_v46 = vpack.c.bf16 %v314_v43, %v313_v42  ;;  %v713_v47 = vld [vmem:[%s9003_s1 + $0x100] sm:$0xff] }
  0x19   : > { %5503 = vmatpush3.bf16.msra.mxu0 %v6497_v7  ;;  %v688_v48 = vld [vmem:[%s9003_s1 + $0x38] sm:$0xff]  ;;  %v315_v49 = vld [vmem:[%s6699_s22 + $0x40] sm:$0xff]  ;;  %v316_v50 = vld [vmem:[%s6699_s22 + $0x48] sm:$0xff] }
  0x1a   : > { %5504 = vmatprep.subr.bf16.mxu0 %v9011_v1  ;;  %v689_v51 = vld [vmem:[%s9003_s1 + $0x40] sm:$0xff]  ;;  %v714_v52 = vld [vmem:[%s9003_s1 + $0x108] sm:$0xff]  ;;  %v352_v53 = vpack.c.bf16 %v316_v50, %v315_v49  ;;  %v715_v54 = vld [vmem:[%s9003_s1 + $0x110] sm:$0xff] }
  0x1b   : > { %v690_v55 = vld [vmem:[%s9003_s1 + $0x48] sm:$0xff]  ;;  %v317_v56 = vld [vmem:[%s6699_s22 + $0x50] sm:$0xff]  ;;  %v318_v57 = vld [vmem:[%s6699_s22 + $0x58] sm:$0xff] }
  0x1c   : > { %834 = vperm.xlu1 %6493, %v703_v14   ;;  %829 = vperm.xlu0 %6492, %v702_v15   ;;  %v691_v58 = vld [vmem:[%s9003_s1 + $0x50] sm:$0xff]  ;;  %v716_v59 = vld [vmem:[%s9003_s1 + $0x118] sm:$0xff]  ;;  %v353_v60 = vpack.c.bf16 %v318_v57, %v317_v56  ;;  %v717_v61 = vld [vmem:[%s9003_s1 + $0x120] sm:$0xff] }
  0x1d   : > { %5505 = vmatpush3.bf16.msra.mxu0 %v6498_v9  ;;  %v692_v62 = vld [vmem:[%s9003_s1 + $0x58] sm:$0xff]  ;;  %v319_v63 = vld [vmem:[%s6699_s22 + $0x60] sm:$0xff]  ;;  %v320_v0 = vld [vmem:[%s6699_s22 + $0x68] sm:$0xff] }
  0x1e   : > { %5506 = vmatprep.subr.bf16.mxu0 %v9011_v1  ;;  %v693_v2 = vld [vmem:[%s9003_s1 + $0x60] sm:$0xff]  ;;  %v718_v3 = vld [vmem:[%s9003_s1 + $0x128] sm:$0xff]  ;;  %v354_v4 = vpack.c.bf16 %v320_v0, %v319_v63  ;;  %v719_v5 = vld [vmem:[%s9003_s1 + $0x130] sm:$0xff] }
  0x1f   : > { %v694_v6 = vld [vmem:[%s9003_s1 + $0x68] sm:$0xff]  ;;  %v321_v7 = vld [vmem:[%s6699_s22 + $0x70] sm:$0xff]  ;;  %v322_v8 = vld [vmem:[%s6699_s22 + $0x78] sm:$0xff] }
  0x20   : > { %844 = vperm.xlu1 %6493, %v705_v17   ;;  %839 = vperm.xlu0 %6492, %v704_v18   ;;  %v720_v9 = vld [vmem:[%s9003_s1 + $0x138] sm:$0xff]  ;;  %v695_v10 = vld [vmem:[%s9003_s1 + $0x70] sm:$0xff]  ;;  %v355_v11 = vpack.c.bf16 %v322_v8, %v321_v7  ;;  %v721_v12 = vld [vmem:[%s9003_s1 + $0x140] sm:$0xf] }
  0x21   : > { %5507 = vmatpush3.bf16.msra.mxu0 %v6499_v13  ;;  %v323_v13 = vld [vmem:[%s6699_s22 + $0x80] sm:$0xff]  ;;  %v324_v14 = vld [vmem:[%s6699_s22 + $0x88] sm:$0xff]  ;;  %v326_v17 = vld [vmem:[%s6699_s22 + $0x98] sm:$0xff] }
  0x22   : > { %5508 = vmatprep.subr.bf16.mxu0 %v9011_v1  ;;  %v356_v15 = vpack.c.bf16 %v324_v14, %v323_v13  ;;  %v327_v20 = vld [vmem:[%s6699_s22 + $0xa0] sm:$0xff]  ;;  %v328_v21 = vld [vmem:[%s6699_s22 + $0xa8] sm:$0xff]  ;;  %v337_v35 = vld [vmem:[%s6699_s22 + $0xf0] sm:$0xff] }
  0x23   : > { %v332_v27 = vld [vmem:[%s6699_s22 + $0xc8] sm:$0xff]  ;;  %v338_v36 = vld [vmem:[%s6699_s22 + $0xf8] sm:$0xff]  ;;  %v345_v50 = vld [vmem:[%s6699_s22 + $0x130] sm:$0xff] }
  0x24   : > { %724 = vperm.xlu1 %6493, %v681_v22   ;;  %849 = vperm.xlu0 %6492, %v706_v23   ;;  %v358_v22 = vpack.c.bf16 %v328_v21, %v327_v20  ;;  %v329_v23 = vld [vmem:[%s6699_s22 + $0xb0] sm:$0xff]  ;;  %v342_v42 = vld [vmem:[%s6699_s22 + $0x118] sm:$0xff]  ;;  %v347_v56 = vld [vmem:[%s6699_s22 + $0x140] sm:$0xf] }
  0x25   : > { %5509 = vmatpush3.bf16.msra.mxu0 %v6500_v16  ;;  %v325_v16 = vld [vmem:[%s6699_s22 + $0x90] sm:$0xff] }
  0x26   : > { %5510 = vmatprep.subr.bf16.mxu0 %v9011_v1  ;;  %v357_v18 = vpack.c.bf16 %v326_v17, %v325_v16 }
  0x28   : > { %854 = vperm.xlu1 %6493, %v707_v25   ;;  %729 = vperm.xlu0 %6492, %v682_v26   ;;  %v331_v26 = vld [vmem:[%s6699_s22 + $0xc0] sm:$0xff] }
  0x29   : > { %5511 = vmatpush3.bf16.msra.mxu0 %v6501_v19  ;;  %v6503_v19 = vld [vmem:[%s9006_s4 + $0x10] sm:$0xff]   ;;  %v360_v28 = vpack.c.bf16 %v332_v27, %v331_v26 }
  0x2a   : > { %5596 = vmatprep.subr.bf16.mxu0 %v9011_v1  ;;  %6479 = vmatpush3.bf16.msra.mxu1 %v6503_v19 }
  0x2b   : > { %5684 = vmatprep.subr.bf16.mxu1 %v9011_v1 }
  0x2c   : > { %5513 = vmatmul.mubr.bf16.vlgmr.msra.gmra.mxu0 %v348_v24  ;;  %734 = vperm.xlu1 %6493, %v683_v30   ;;  %v330_v24 = vld [vmem:[%s6699_s22 + $0xb8] sm:$0xff] }
  0x2d   : > { %5516 = vmatprep.mubr.msk.bf16.mxu0 %vm6572_vm0, %v9011_v1  ;;  %5597 = vmatpush3.bf16.msra.mxu0 %v6502_v31  ;;  %v359_v25 = vpack.c.bf16 %v330_v24, %v329_v23  ;;  %v334_v30 = vld [vmem:[%s6699_s22 + $0xd8] sm:$0xff] }
  0x2e   : > { %5598 = vmatprep.subr.bf16.mxu0 %v9011_v1  ;;  %859 = vperm.xlu0 %6492, %v708_v29   ;;  %v333_v29 = vld [vmem:[%s6699_s22 + $0xd0] sm:$0xff] }
  0x2f   : > { %v361_v31 = vpack.c.bf16 %v334_v30, %v333_v29 }
  0x30   : > { %864 = vperm.xlu1 %6493, %v709_v32   ;;  %v335_v32 = vld [vmem:[%s6699_s22 + $0xe0] sm:$0xff] }
  0x31   : > { %5599 = vmatpush3.bf16.msra.mxu0 %v6503_v19 }
  0x32   : > { %739 = vperm.xlu0 %6492, %v684_v34   ;;  %5772 = vmatprep.subr.bf16.mxu0 %v9011_v1 }
  0x34   : > { %5517 = vmatmul.mubr.bf16.gmra.mxu0 %v349_v33  ;;  %744 = vperm.xlu1 %6493, %v685_v38   ;;  %v336_v33 = vld [vmem:[%s6699_s22 + $0xe8] sm:$0xff]  ;;  %v339_v38 = vld [vmem:[%s6699_s22 + $0x100] sm:$0xff] }
  0x35   : > { %5520 = vmatprep.mubr.msk.bf16.mxu0 %vm6572_vm0, %v9011_v1  ;;  %v362_v34 = vpack.c.bf16 %v336_v33, %v335_v32 }
  0x36   : > { %869 = vperm.xlu0 %6492, %v710_v37   ;;  %v363_v37 = vpack.c.bf16 %v338_v36, %v337_v35 }
  0x38   : > { %874 = vperm.xlu1 %6493, %v711_v39   ;;  %v340_v39 = vld [vmem:[%s6699_s22 + $0x108] sm:$0xff] }
  0x3a   : > { %749 = vperm.xlu0 %6492, %v686_v41   ;;  %v341_v41 = vld [vmem:[%s6699_s22 + $0x110] sm:$0xff] }
  0x3b   : > { %v365_v43 = vpack.c.bf16 %v342_v42, %v341_v41 }
  0x3c   : > { %5521 = vmatmul.mubr.bf16.gmra.mxu0 %v350_v40  ;;  %754 = vperm.xlu1 %6493, %v687_v44   ;;  %v364_v40 = vpack.c.bf16 %v340_v39, %v339_v38 }
  0x3d   : > { %5524 = vmatprep.mubr.msk.bf16.mxu0 %vm6572_vm0, %v9011_v1 }
  0x3e   : > { %879 = vperm.xlu0 %6492, %v712_v45   ;;  %v343_v45 = vld [vmem:[%s6699_s22 + $0x120] sm:$0xff] }
  0x40   : > { %884 = vperm.xlu1 %6493, %v713_v47  }
  0x42   : > { %759 = vperm.xlu0 %6492, %v688_v48  }
  0x44   : > { %5525 = vmatmul.mubr.bf16.gmra.mxu0 %v351_v46  ;;  %764 = vperm.xlu1 %6493, %v689_v51   ;;  %v344_v46 = vld [vmem:[%s6699_s22 + $0x128] sm:$0xff]  ;;  %v346_v51 = vld [vmem:[%s6699_s22 + $0x138] sm:$0xff] }
  0x45   : > { %5528 = vmatprep.mubr.msk.bf16.mxu0 %vm6572_vm0, %v9011_v1  ;;  %v366_v47 = vpack.c.bf16 %v344_v46, %v343_v45 }
  0x46   : > { %889 = vperm.xlu0 %6492, %v714_v52  }
  0x48   : > { %894 = vperm.xlu1 %6493, %v715_v54  }
  0x4a   : > { %769 = vperm.xlu0 %6492, %v690_v55  }
  0x4c   : > { %5529 = vmatmul.mubr.bf16.gmra.mxu0 %v352_v53  ;;  %774 = vperm.xlu1 %6493, %v691_v58   ;;  %v367_v53 = vpack.c.bf16 %v346_v51, %v345_v50  ;;  %v368_v58 = vpack.c.bf16 %v347_v56, %v347_v56 }
  0x4d   : > { %5532 = vmatprep.mubr.msk.bf16.mxu0 %vm6572_vm0, %v9011_v1 }
  0x4e   : > { %899 = vperm.xlu0 %6492, %v716_v59  }
  0x50   : > { %904 = vperm.xlu1 %6493, %v717_v61   ;;  %v1083_v61 = vld [vmem:[#allocation2 + $0x6] sm:$0xff] }
  0x52   : > { %779 = vperm.xlu0 %6492, %v692_v62   ;;  %v1084_v62 = vld [vmem:[#allocation2 + $0xe] sm:$0xff] }
  0x53   : > { %v1124_v0 = vpack.c.bf16 %v1084_v62, %v1083_v61 }
  0x54   : > { %5533 = vmatmul.mubr.bf16.gmra.mxu0 %v353_v60  ;;  %784 = vperm.xlu1 %6493, %v693_v2   ;;  %v6504_v2 = vld [vmem:[%s9006_s4 + $0x28] sm:$0xff]  }
  0x55   : > { %5536 = vmatprep.mubr.msk.bf16.mxu0 %vm6572_vm0, %v9011_v1 }
  0x56   : > { %909 = vperm.xlu0 %6492, %v718_v3  }
  0x58   : > { %914 = vperm.xlu1 %6493, %v719_v5  }
  0x5a   : > { %789 = vperm.xlu0 %6492, %v694_v6  }
  0x5c   : > { %5537 = vmatmul.mubr.bf16.gmra.mxu0 %v354_v4  ;;  %919 = vperm.xlu1 %6493, %v720_v9   ;;  %v6505_v4 = vld [vmem:[%s9006_s4 + $0x20] sm:$0xff]  }
  0x5d   : > { %5540 = vmatprep.mubr.msk.bf16.mxu0 %vm6572_vm0, %v9011_v1 }
  0x5e   : > { %794 = vperm.xlu0 %6492, %v695_v10  }
  0x62   : > { %924 = vperm.xlu0 %6492, %v721_v12   ;;  %v6949_v12 = vld [vmem:[%s9005_s3] ss:$0 sm:$0xff] }
  0x64   : > { %5541 = vmatmul.mubr.bf16.gmra.mxu0 %v355_v11 }
  0x65   : > { %5544 = vmatprep.mubr.msk.bf16.mxu0 %vm6572_vm0, %v9011_v1 }
  0x6c   : > { %5545 = vmatmul.mubr.bf16.gmra.mxu0 %v356_v15 }
  0x6d   : > { %5548 = vmatprep.mubr.msk.bf16.mxu0 %vm6572_vm0, %v9011_v1 }
  0x74   : > { %5549 = vmatmul.mubr.bf16.gmra.mxu0 %v357_v18 }
  0x75   : > { %5552 = vmatprep.mubr.msk.bf16.mxu0 %vm6572_vm0, %v9011_v1 }
  0x7c   : > { %5553 = vmatmul.mubr.bf16.gmra.mxu0 %v358_v22 }
  0x7d   : > { %5556 = vmatprep.mubr.msk.bf16.mxu0 %vm6572_vm0, %v9011_v1 }
  0x84   : > { %5557 = vmatmul.mubr.bf16.gmra.mxu0 %v359_v25 }
  0x85   : > { %5560 = vmatprep.mubr.msk.bf16.mxu0 %vm6572_vm0, %v9011_v1 }
  0x8b   : > { %v6894_v44 = vpop.permute.xlu0 %799  ;;  %v6900_v48 = vpop.permute.xlu1 %809 }
  0x8c   : > { %5561 = vmatmul.mubr.bf16.gmra.mxu0 %v360_v28 }
  0x8d   : > { %5564 = vmatprep.mubr.msk.bf16.mxu0 %vm6572_vm0, %v9011_v1 }
  0x8f   : > { %v6902_v49 = vpop.permute.xlu0 %804  ;;  %v6908_v52 = vpop.permute.xlu1 %814 }
  0x93   : > { %v6910_v54 = vpop.permute.xlu0 %819  ;;  %v6912_v55 = vpop.permute.xlu1 %824 }
  0x94   : > { %5565 = vmatmul.mubr.bf16.gmra.mxu0 %v361_v31 }
  0x95   : > { %5568 = vmatprep.mubr.msk.bf16.mxu0 %vm6572_vm0, %v9011_v1 }
  0x97   : > { %v6917_v57 = vpop.permute.xlu0 %829  ;;  %v6919_v59 = vpop.permute.xlu1 %834 }
  0x9b   : > { %v6921_v60 = vpop.permute.xlu0 %839  ;;  %v6925_v63 = vpop.permute.xlu1 %844 }
  0x9c   : > { %5569 = vmatmul.mubr.bf16.gmra.mxu0 %v362_v34 }
  0x9d   : > { %5572 = vmatprep.mubr.msk.bf16.mxu0 %vm6572_vm0, %v9011_v1 }
  0x9f   : > { %v6930_v3 = vpop.permute.xlu0 %849  ;;  %v725_v5 = vpop.permute.xlu1 %724 }
  0xa3   : > { %v730_v6 = vpop.permute.xlu0 %729  ;;  %v6940_v7 = vpop.permute.xlu1 %854 }
  0xa4   : > { %5573 = vmatmul.mubr.bf16.gmra.mxu0 %v363_v37 }
  0xa5   : > { %5576 = vmatprep.mubr.msk.bf16.mxu0 %vm6572_vm0, %v9011_v1 }
  0xa7   : > { %v735_v9 = vpop.permute.xlu1 %734 }
  0xa9   : > { %v6942_v8 = vpop.permute.xlu0 %859 }
  0xab   : > { %v6944_v11 = vpop.permute.xlu1 %864 }
  0xac   : > { %5577 = vmatmul.mubr.bf16.gmra.mxu0 %v364_v40 }
  0xad   : > { %5580 = vmatprep.mubr.msk.bf16.mxu0 %vm6572_vm0, %v9011_v1  ;;  %v740_v10 = vpop.permute.xlu0 %739 }
  0xaf   : > { %v745_v17 = vpop.permute.xlu1 %744 }
  0xb1   : > { %v6951_v13 = vpop.permute.xlu0 %869 }
  0xb3   : > { %v6956_v26 = vpop.permute.xlu1 %874 }
  0xb4   : > { %5581 = vmatmul.mubr.bf16.gmra.mxu0 %v365_v43 }
  0xb5   : > { %5584 = vmatprep.mubr.msk.bf16.mxu0 %vm6572_vm0, %v9011_v1  ;;  %v750_v20 = vpop.permute.xlu0 %749 }
  0xb7   : > { %v755_v36 = vpop.permute.xlu1 %754 }
  0xb9   : > { %v6959_v30 = vpop.permute.xlu0 %879 }
  0xbb   : > { %v6966_v51 = vpop.permute.xlu1 %884 }
  0xbc   : > { %5585 = vmatmul.mubr.bf16.gmra.mxu0 %v366_v47 }
  0xbd   : > { %5588 = vmatprep.mubr.msk.bf16.mxu0 %vm6572_vm0, %v9011_v1  ;;  %v760_v39 = vpop.permute.xlu0 %759 }
  0xc1   : > { %v6972_v61 = vpop.permute.xlu0 %889 }
  0xc4   : > { %5589 = vmatmul.mubr.bf16.gmra.mxu0 %v367_v53 }
  0xc5   : > { %5592 = vmatprep.mubr.msk.bf16.mxu0 %vm6572_vm0, %v9011_v1 }
  0xcc   : > { %5593 = vmatmul.mubr.bf16.gmra.mxu0 %v368_v58 }
  0xcd   : > { %5600 = vmatprep.mubr.msk.bf16.mxu0 %vm6572_vm0, %v9011_v1 }
  0xd4   : > { %5601 = vmatmul.mubr.msk.bf16.vlgmr.msra.gmra.mxu0 %vm968_vm1, %v1124_v0 }
  0xd5   : > { %5604 = vmatprep.mubr.msk.bf16.mxu0 %vm6572_vm0, %v9011_v1  ;;  %5773 = vmatpush3.bf16.msra.mxu0 %v6504_v2 }
  0xd6   : > { %5774 = vmatprep.subr.bf16.mxu0 %v9011_v1 }
  0xd9   : > { %5775 = vmatpush3.bf16.msra.mxu0 %v6505_v4 }
  0xda   : > { %5948 = vmatprep.subr.bf16.mxu0 %v9011_v1 }
  0xec   : > { %v474_v14 = vpop.f32.mrf.mxu0 }
  0xed   : > { %v475_v15 = vadd.f32 %v6949_v12, %v474_v14 }
  0xee   : > { %v5514_v16 = vpop.f32.mrf.mxu0 }
  0xef   : > { %v640_v18 = vmax.f32 %v475_v15, 0.0 }
  0xf0   : > { %v477_v19 = vpop.f32.mrf.mxu0 }
  0xf1   : > { %v927_v21 = vmul.f32 %v725_v5, %v640_v18  ;;  %v478_v22 = vadd.f32 %v6949_v12, %v477_v19 }
  0xf2   : > { %v5515_v23 = vpop.f32.mrf.mxu0 }
  0xf3   : > { %975 = vst.msk [vmem:[#allocation2 + $0x18] sm:$0xff] %vm968_vm1, %v927_v21  ;;  %v641_v24 = vmax.f32 %v478_v22, 0.0 }
  0xf4   : > { %v482_v25 = vpop.f32.mrf.mxu0 }
  0xf5   : > { %v928_v27 = vmul.f32 %v730_v6, %v641_v24  ;;  %v483_v28 = vadd.f32 %v6949_v12, %v482_v25 }
  0xf6   : > { %v5518_v29 = vpop.f32.mrf.mxu0 }
  0xf7   : > { %976 = vst.msk [vmem:[#allocation2 + $0x20] sm:$0xff] %vm968_vm1, %v928_v27  ;;  %v642_v31 = vmax.f32 %v483_v28, 0.0 }
  0xf8   : > { %v485_v32 = vpop.f32.mrf.mxu0 }
  0xf9   : > { %v929_v33 = vmul.f32 %v735_v9, %v642_v31  ;;  %v486_v34 = vadd.f32 %v6949_v12, %v485_v32 }
  0xfa   : > { %v5519_v35 = vpop.f32.mrf.mxu0  ;;  %v1085_v43 = vld [vmem:[#allocation2 + $0x16] sm:$0xff] }
  0xfb   : > { %977 = vst.msk [vmem:[#allocation2 + $0x28] sm:$0xff] %vm968_vm1, %v929_v33  ;;  %v643_v37 = vmax.f32 %v486_v34, 0.0 }
  0xfc   : > { %v490_v38 = vpop.f32.mrf.mxu0 }
  0xfd   : > { %v930_v40 = vmul.f32 %v740_v10, %v643_v37  ;;  %v491_v41 = vadd.f32 %v6949_v12, %v490_v38  ;;  %v765_v10 = vpop.permute.xlu1 %764 }
  0xfe   : > { %v5522_v42 = vpop.f32.mrf.mxu0  ;;  %v1086_v45 = vld [vmem:[#allocation2 + $0x1e] sm:$0xff] }
  0xff   : > { %978 = vst.msk [vmem:[#allocation2 + $0x30] sm:$0xff] %vm968_vm1, %v930_v40  ;;  %v644_v46 = vmax.f32 %v491_v41, 0.0  ;;  %v1125_v47 = vpack.c.bf16 %v1086_v45, %v1085_v43 }
 0x100   : > { %v493_v50 = vpop.f32.mrf.mxu0 }
 0x101   : > { %v931_v53 = vmul.f32 %v745_v17, %v644_v46  ;;  %v494_v56 = vadd.f32 %v6949_v12, %v493_v50  ;;  %5605 = vmatmul.mubr.msk.bf16.gmra.mxu0 %vm968_vm1, %v1125_v47  ;;  %v770_v17 = vpop.permute.xlu0 %769  ;;  %v6982_v23 = vpop.permute.xlu1 %894 }
 0x102   : > { %v5523_v58 = vpop.f32.mrf.mxu0  ;;  %5608 = vmatprep.mubr.msk.bf16.mxu0 %vm6572_vm0, %v9011_v1  ;;  %v1087_v6 = vld [vmem:[#allocation2 + $0x26] sm:$0xff] }
 0x103   : > { %979 = vst.msk [vmem:[#allocation2 + $0x38] sm:$0xff] %vm968_vm1, %v931_v53  ;;  %v645_v62 = vmax.f32 %v494_v56, 0.0 }
 0x104   : > { %v498_v0 = vpop.f32.mrf.mxu0 }
 0x105   : > { %v932_v2 = vmul.f32 %v750_v20, %v645_v62  ;;  %v499_v4 = vadd.f32 %v6949_v12, %v498_v0  ;;  %v6985_v31 = vpop.permute.xlu0 %899  ;;  %v775_v38 = vpop.permute.xlu1 %774 }
 0x106   : > { %v5526_v5 = vpop.f32.mrf.mxu0  ;;  %v1088_v9 = vld [vmem:[#allocation2 + $0x2e] sm:$0xff] }
 0x107   : > { %980 = vst.msk [vmem:[#allocation2 + $0x40] sm:$0xff] %vm968_vm1, %v932_v2  ;;  %v646_v14 = vmax.f32 %v499_v4, 0.0  ;;  %v1126_v15 = vpack.c.bf16 %v1088_v9, %v1087_v6 }
 0x108   : > { %v501_v16 = vpop.f32.mrf.mxu0 }
 0x109   : > { %v933_v18 = vmul.f32 %v755_v36, %v646_v14  ;;  %v502_v19 = vadd.f32 %v6949_v12, %v501_v16  ;;  %5609 = vmatmul.mubr.msk.bf16.gmra.mxu0 %vm968_vm1, %v1126_v15  ;;  %v780_v41 = vpop.permute.xlu0 %779  ;;  %v6995_v58 = vpop.permute.xlu1 %904 }
 0x10a   : > { %v5527_v21 = vpop.f32.mrf.mxu0  ;;  %5612 = vmatprep.mubr.msk.bf16.mxu0 %vm6572_vm0, %v9011_v1  ;;  %v1089_v28 = vld [vmem:[#allocation2 + $0x36] sm:$0xff] }
 0x10b   : > { %981 = vst.msk [vmem:[#allocation2 + $0x48] sm:$0xff] %vm968_vm1, %v933_v18  ;;  %v647_v20 = vmax.f32 %v502_v19, 0.0 }
 0x10c   : > { %v506_v22 = vpop.f32.mrf.mxu0 }
 0x10d   : > { %v934_v24 = vmul.f32 %v760_v39, %v647_v20  ;;  %v507_v25 = vadd.f32 %v6949_v12, %v506_v22  ;;  %v6999_v4 = vpop.permute.xlu0 %909  ;;  %v785_v15 = vpop.permute.xlu1 %784 }
 0x10e   : > { %v5530_v27 = vpop.f32.mrf.mxu0  ;;  %v1090_v29 = vld [vmem:[#allocation2 + $0x3e] sm:$0xff] }
 0x10f   : > { %982 = vst.msk [vmem:[#allocation2 + $0x50] sm:$0xff] %vm968_vm1, %v934_v24  ;;  %v648_v32 = vmax.f32 %v507_v25, 0.0  ;;  %v1127_v33 = vpack.c.bf16 %v1090_v29, %v1089_v28 }
 0x110   : > { %v509_v34 = vpop.f32.mrf.mxu0 }
 0x111   : > { %v935_v35 = vmul.f32 %v765_v10, %v648_v32  ;;  %v510_v36 = vadd.f32 %v6949_v12, %v509_v34  ;;  %5613 = vmatmul.mubr.msk.bf16.gmra.mxu0 %vm968_vm1, %v1127_v33  ;;  %v790_v20 = vpop.permute.xlu0 %789 }
 0x112   : > { %v5531_v37 = vpop.f32.mrf.mxu0  ;;  %5616 = vmatprep.mubr.msk.bf16.mxu0 %vm6572_vm0, %v9011_v1  ;;  %v1091_v46 = vld [vmem:[#allocation2 + $0x46] sm:$0xff] }
 0x113   : > { %983 = vst.msk [vmem:[#allocation2 + $0x58] sm:$0xff] %vm968_vm1, %v935_v35  ;;  %v649_v39 = vmax.f32 %v510_v36, 0.0 }
 0x114   : > { %v514_v40 = vpop.f32.mrf.mxu0 }
 0x115   : > { %v936_v42 = vmul.f32 %v770_v17, %v649_v39  ;;  %v515_v43 = vadd.f32 %v6949_v12, %v514_v40  ;;  %v795_v34 = vpop.permute.xlu0 %794 }
 0x116   : > { %v5534_v45 = vpop.f32.mrf.mxu0  ;;  %v1092_v47 = vld [vmem:[#allocation2 + $0x4e] sm:$0xff] }
 0x117   : > { %984 = vst.msk [vmem:[#allocation2 + $0x60] sm:$0xff] %vm968_vm1, %v936_v42  ;;  %v650_v50 = vmax.f32 %v515_v43, 0.0  ;;  %v1128_v53 = vpack.c.bf16 %v1092_v47, %v1091_v46 }
 0x118   : > { %v517_v56 = vpop.f32.mrf.mxu0 }
 0x119   : > { %v937_v62 = vmul.f32 %v775_v38, %v650_v50  ;;  %v518_v0 = vadd.f32 %v6949_v12, %v517_v56  ;;  %5617 = vmatmul.mubr.msk.bf16.gmra.mxu0 %vm968_vm1, %v1128_v53 }
 0x11a   : > { %v5535_v2 = vpop.f32.mrf.mxu0  ;;  %5620 = vmatprep.mubr.msk.bf16.mxu0 %vm6572_vm0, %v9011_v1  ;;  %v1093_v16 = vld [vmem:[#allocation2 + $0x56] sm:$0xff] }
 0x11b   : > { %985 = vst.msk [vmem:[#allocation2 + $0x68] sm:$0xff] %vm968_vm1, %v937_v62  ;;  %v651_v5 = vmax.f32 %v518_v0, 0.0 }
 0x11c   : > { %v522_v6 = vpop.f32.mrf.mxu0 }
 0x11d   : > { %v938_v9 = vmul.f32 %v780_v41, %v651_v5  ;;  %v523_v10 = vadd.f32 %v6949_v12, %v522_v6 }
 0x11e   : > { %v5538_v14 = vpop.f32.mrf.mxu0  ;;  %v1094_v17 = vld [vmem:[#allocation2 + $0x5e] sm:$0xff] }
 0x11f   : > { %986 = vst.msk [vmem:[#allocation2 + $0x70] sm:$0xff] %vm968_vm1, %v938_v9  ;;  %v652_v18 = vmax.f32 %v523_v10, 0.0  ;;  %v1129_v19 = vpack.c.bf16 %v1094_v17, %v1093_v16 }
 0x120   : > { %v525_v21 = vpop.f32.mrf.mxu0 }
 0x121   : > { %v939_v22 = vmul.f32 %v785_v15, %v652_v18  ;;  %v526_v24 = vadd.f32 %v6949_v12, %v525_v21  ;;  %5621 = vmatmul.mubr.msk.bf16.gmra.mxu0 %vm968_vm1, %v1129_v19 }
 0x122   : > { %v5539_v25 = vpop.f32.mrf.mxu0  ;;  %5624 = vmatprep.mubr.msk.bf16.mxu0 %vm6572_vm0, %v9011_v1  ;;  %v1095_v35 = vld [vmem:[#allocation2 + $0x66] sm:$0xff] }
 0x123   : > { %987 = vst.msk [vmem:[#allocation2 + $0x78] sm:$0xff] %vm968_vm1, %v939_v22  ;;  %v653_v27 = vmax.f32 %v526_v24, 0.0  ;;  %v1701_v25 = vld [vmem:[#allocation2 + $0xf] sm:$0xff] }
 0x124   : > { %v530_v28 = vpop.f32.mrf.mxu0 }
 0x125   : > { %v940_v29 = vmul.f32 %v790_v20, %v653_v27  ;;  %v531_v32 = vadd.f32 %v6949_v12, %v530_v28 }
 0x126   : > { %v5542_v33 = vpop.f32.mrf.mxu0  ;;  %v1096_v36 = vld [vmem:[#allocation2 + $0x6e] sm:$0xff] }
 0x127   : > { %988 = vst.msk [vmem:[#allocation2 + $0x80] sm:$0xff] %vm968_vm1, %v940_v29  ;;  %v654_v37 = vmax.f32 %v531_v32, 0.0  ;;  %v1130_v38 = vpack.c.bf16 %v1096_v36, %v1095_v35  ;;  %v6506_v36 = vld [vmem:[%s9006_s4 + $0x8] sm:$0xff]  }
 0x128   : > { %v533_v39 = vpop.f32.mrf.mxu0 }
 0x129   : > { %v941_v40 = vmul.f32 %v795_v34, %v654_v37  ;;  %v534_v41 = vadd.f32 %v6949_v12, %v533_v39  ;;  %5625 = vmatmul.mubr.msk.bf16.gmra.mxu0 %vm968_vm1, %v1130_v38 }
 0x12a   : > { %v5543_v42 = vpop.f32.mrf.mxu0  ;;  %5628 = vmatprep.mubr.msk.bf16.mxu0 %vm6572_vm0, %v9011_v1  ;;  %v1097_v53 = vld [vmem:[#allocation2 + $0x76] sm:$0xff] }
 0x12b   : > { %989 = vst.msk [vmem:[#allocation2 + $0x88] sm:$0xff] %vm968_vm1, %v941_v40  ;;  %v655_v43 = vmax.f32 %v534_v41, 0.0  ;;  %v6509_v40 = vld [vmem:[%s9006_s4 + $0x48] sm:$0xff]  }
 0x12c   : > { %v538_v45 = vpop.f32.mrf.mxu0 }
 0x12d   : > { %v942_v46 = vmul.f32 %v6894_v44, %v655_v43  ;;  %v539_v47 = vadd.f32 %v6949_v12, %v538_v45  ;;  %v6507_v43 = vld [vmem:[%s9006_s4] sm:$0xff]  }
 0x12e   : > { %v5546_v50 = vpop.f32.mrf.mxu0  ;;  %v1098_v56 = vld [vmem:[#allocation2 + $0x7e] sm:$0xff] }
 0x12f   : > { %990 = vst.msk [vmem:[#allocation2 + $0x90] sm:$0xff] %vm968_vm1, %v942_v46  ;;  %v656_v62 = vmax.f32 %v539_v47, 0.0  ;;  %v1131_v0 = vpack.c.bf16 %v1098_v56, %v1097_v53  ;;  %v1703_v46 = vld [vmem:[#allocation2 + $0x1f] sm:$0xff] }
 0x130   : > { %v541_v2 = vpop.f32.mrf.mxu0 }
 0x131   : > { %v943_v5 = vmul.f32 %v6902_v49, %v656_v62  ;;  %v542_v6 = vadd.f32 %v6949_v12, %v541_v2  ;;  %5629 = vmatmul.mubr.msk.bf16.gmra.mxu0 %vm968_vm1, %v1131_v0  ;;  %v1702_v0 = vld [vmem:[#allocation2 + $0x17] sm:$0xff] }
 0x132   : > { %v5547_v9 = vpop.f32.mrf.mxu0  ;;  %5632 = vmatprep.mubr.msk.bf16.mxu0 %vm6572_vm0, %v9011_v1  ;;  %v1099_v17 = vld [vmem:[#allocation2 + $0x86] sm:$0xff] }
 0x133   : > { %991 = vst.msk [vmem:[#allocation2 + $0x98] sm:$0xff] %vm968_vm1, %v943_v5  ;;  %v657_v44 = vmax.f32 %v542_v6, 0.0  ;;  %v1742_v6 = vpack.c.bf16 %v1703_v46, %v1702_v0 }
 0x134   : > { %v546_v10 = vpop.f32.mrf.mxu0 }
 0x135   : > { %v944_v14 = vmul.f32 %v6900_v48, %v657_v44  ;;  %v547_v15 = vadd.f32 %v6949_v12, %v546_v10  ;;  %v1700_v48 = vld [vmem:[#allocation2 + $0x7] sm:$0xff] }
 0x136   : > { %v5550_v16 = vpop.f32.mrf.mxu0  ;;  %v1100_v18 = vld [vmem:[#allocation2 + $0x8e] sm:$0xff]  ;;  %v1741_v33 = vpack.c.bf16 %v1701_v25, %v1700_v48 }
 0x137   : > { %992 = vst.msk [vmem:[#allocation2 + $0xa0] sm:$0xff] %vm968_vm1, %v944_v14  ;;  %v658_v49 = vmax.f32 %v547_v15, 0.0  ;;  %v1132_v19 = vpack.c.bf16 %v1100_v18, %v1099_v17  ;;  %v1705_v16 = vld [vmem:[#allocation2 + $0x2f] sm:$0xff] }
 0x138   : > { %v549_v21 = vpop.f32.mrf.mxu0 }
 0x139   : > { %v945_v20 = vmul.f32 %v6908_v52, %v658_v49  ;;  %v550_v22 = vadd.f32 %v6949_v12, %v549_v21  ;;  %5633 = vmatmul.mubr.msk.bf16.gmra.mxu0 %vm968_vm1, %v1132_v19  ;;  %v1704_v21 = vld [vmem:[#allocation2 + $0x27] sm:$0xff] }
 0x13a   : > { %v5551_v24 = vpop.f32.mrf.mxu0  ;;  %5776 = vmatprep.mubr.msk.bf16.mxu0 %vm6572_vm0, %v9011_v1  ;;  %v1101_v34 = vld [vmem:[#allocation2 + $0x96] sm:$0xff] }
 0x13b   : > { %993 = vst.msk [vmem:[#allocation2 + $0xa8] sm:$0xff] %vm968_vm1, %v945_v20  ;;  %v659_v27 = vmax.f32 %v550_v22, 0.0  ;;  %v1743_v24 = vpack.c.bf16 %v1705_v16, %v1704_v21 }
 0x13c   : > { %v554_v28 = vpop.f32.mrf.mxu0 }
 0x13d   : > { %v946_v29 = vmul.f32 %v6910_v54, %v659_v27  ;;  %v555_v32 = vadd.f32 %v6949_v12, %v554_v28 }
 0x13e   : > { %v5554_v52 = vpop.f32.mrf.mxu0  ;;  %v1102_v35 = vld [vmem:[#allocation2 + $0x9e] sm:$0xff] }
 0x13f   : > { %994 = vst.msk [vmem:[#allocation2 + $0xb0] sm:$0xff] %vm968_vm1, %v946_v29  ;;  %v660_v37 = vmax.f32 %v555_v32, 0.0  ;;  %v1133_v38 = vpack.c.bf16 %v1102_v35, %v1101_v34  ;;  %v1707_v32 = vld [vmem:[#allocation2 + $0x3f] sm:$0xff] }
 0x140   : > { %v557_v39 = vpop.f32.mrf.mxu0 }
 0x141   : > { %v947_v54 = vmul.f32 %v6912_v55, %v660_v37  ;;  %v558_v41 = vadd.f32 %v6949_v12, %v557_v39  ;;  %5637 = vmatmul.mubr.msk.bf16.vlgmr.msra.gmra.mxu1 %vm968_vm1, %v1133_v38  ;;  %5777 = vmatmul.mubr.msk.bf16.vlgmr.msra.gmra.mxu0 %vm968_vm1, %v1741_v33 }
 0x142   : > { %5685 = vmatpush3.bf16.msra.mxu1 %v6506_v36  ;;  %v5555_v42 = vpop.f32.mrf.mxu0  ;;  %5640 = vmatprep.mubr.msk.bf16.mxu1 %vm6572_vm0, %v9011_v1  ;;  %v1103_v56 = vld [vmem:[#allocation2 + $0xa6] sm:$0xff]  ;;  %v1706_v36 = vld [vmem:[#allocation2 + $0x37] sm:$0xff] }
 0x143   : > { %995 = vst.msk [vmem:[#allocation2 + $0xb8] sm:$0xff] %vm968_vm1, %v947_v54  ;;  %v661_v45 = vmax.f32 %v558_v41, 0.0  ;;  %5780 = vmatprep.mubr.msk.bf16.mxu0 %vm6572_vm0, %v9011_v1  ;;  %5686 = vmatprep.subr.bf16.mxu1 %v9011_v1  ;;  %v1744_v39 = vpack.c.bf16 %v1707_v32, %v1706_v36  ;;  %v1712_v32 = vld [vmem:[#allocation2 + $0x67] sm:$0xff] }
 0x144   : > { %v562_v55 = vpop.f32.mrf.mxu0  ;;  %5949 = vmatpush3.bf16.msra.mxu0 %v6509_v40 }
 0x145   : > { %v948_v47 = vmul.f32 %v6917_v57, %v661_v45  ;;  %v563_v50 = vadd.f32 %v6949_v12, %v562_v55  ;;  %5950 = vmatprep.subr.bf16.mxu0 %v9011_v1  ;;  %v1709_v45 = vld [vmem:[#allocation2 + $0x4f] sm:$0xff] }
 0x146   : > { %v5558_v53 = vpop.f32.mrf.mxu0  ;;  %v1104_v62 = vld [vmem:[#allocation2 + $0xae] sm:$0xff]  ;;  %5687 = vmatpush3.bf16.msra.mxu1 %v6507_v43 }
 0x147   : > { %996 = vst.msk [vmem:[#allocation2 + $0xc0] sm:$0xff] %vm968_vm1, %v948_v47  ;;  %v662_v2 = vmax.f32 %v563_v50, 0.0  ;;  %v1134_v5 = vpack.c.bf16 %v1104_v62, %v1103_v56  ;;  %5860 = vmatprep.subr.bf16.mxu1 %v9011_v1  ;;  %v1708_v53 = vld [vmem:[#allocation2 + $0x47] sm:$0xff] }
 0x148   : > { %v565_v9 = vpop.f32.mrf.mxu0  ;;  %v1745_v0 = vpack.c.bf16 %v1709_v45, %v1708_v53 }
 0x149   : > { %v949_v44 = vmul.f32 %v6919_v59, %v662_v2  ;;  %v566_v57 = vadd.f32 %v6949_v12, %v565_v9  ;;  %5641 = vmatmul.mubr.msk.bf16.gmra.mxu1 %vm968_vm1, %v1134_v5  ;;  %5781 = vmatmul.mubr.msk.bf16.gmra.mxu0 %vm968_vm1, %v1742_v6 }
 0x14a   : > { %v5559_v10 = vpop.f32.mrf.mxu0  ;;  %5644 = vmatprep.mubr.msk.bf16.mxu1 %vm6572_vm0, %v9011_v1  ;;  %5784 = vmatprep.mubr.msk.bf16.mxu0 %vm6572_vm0, %v9011_v1  ;;  %v1105_v49 = vld [vmem:[#allocation2 + $0xb6] sm:$0xff] }
 0x14b   : > { %997 = vst.msk [vmem:[#allocation2 + $0xc8] sm:$0xff] %vm968_vm1, %v949_v44  ;;  %v663_v14 = vmax.f32 %v566_v57, 0.0  ;;  %v1711_v57 = vld [vmem:[#allocation2 + $0x5f] sm:$0xff] }
 0x14c   : > { %v570_v15 = vpop.f32.mrf.mxu0 }
 0x14d   : > { %v950_v59 = vmul.f32 %v6921_v60, %v663_v14  ;;  %v571_v17 = vadd.f32 %v6949_v12, %v570_v15  ;;  %v6510_v14 = vld [vmem:[%s9006_s4 + $0x40] sm:$0xff]  }
 0x14e   : > { %v5562_v18 = vpop.f32.mrf.mxu0  ;;  %v1106_v19 = vld [vmem:[#allocation2 + $0xbe] sm:$0xff]  ;;  %5951 = vmatpush3.bf16.msra.mxu0 %v6510_v14 }
 0x14f   : > { %998 = vst.msk [vmem:[#allocation2 + $0xd0] sm:$0xff] %vm968_vm1, %v950_v59  ;;  %v664_v20 = vmax.f32 %v571_v17, 0.0  ;;  %v1135_v22 = vpack.c.bf16 %v1106_v19, %v1105_v49  ;;  %v1710_v17 = vld [vmem:[#allocation2 + $0x57] sm:$0xff]  ;;  %6124 = vmatprep.subr.bf16.mxu0 %v9011_v1 }
 0x150   : > { %v573_v48 = vpop.f32.mrf.mxu0  ;;  %v1746_v19 = vpack.c.bf16 %v1711_v57, %v1710_v17  ;;  %v915_v17 = vpop.permute.xlu1 %914 }
 0x151   : > { %v951_v25 = vmul.f32 %v6925_v63, %v664_v20  ;;  %v574_v27 = vadd.f32 %v6949_v12, %v573_v48  ;;  %5645 = vmatmul.mubr.msk.bf16.gmra.mxu1 %vm968_vm1, %v1135_v22  ;;  %5785 = vmatmul.mubr.msk.bf16.gmra.mxu0 %vm968_vm1, %v1743_v24 }
 0x152   : > { %v5563_v60 = vpop.f32.mrf.mxu0  ;;  %5648 = vmatprep.mubr.msk.bf16.mxu1 %vm6572_vm0, %v9011_v1  ;;  %5788 = vmatprep.mubr.msk.bf16.mxu0 %vm6572_vm0, %v9011_v1  ;;  %v1107_v34 = vld [vmem:[#allocation2 + $0xc6] sm:$0xff] }
 0x153   : > { %999 = vst.msk [vmem:[#allocation2 + $0xd8] sm:$0xff] %vm968_vm1, %v951_v25  ;;  %v665_v28 = vmax.f32 %v574_v27, 0.0  ;;  %v1713_v25 = vld [vmem:[#allocation2 + $0x6f] sm:$0xff] }
 0x154   : > { %v578_v29 = vpop.f32.mrf.mxu0 }
 0x155   : > { %v952_v63 = vmul.f32 %v6930_v3, %v665_v28  ;;  %v579_v33 = vadd.f32 %v6949_v12, %v578_v29 }
 0x156   : > { %v5566_v52 = vpop.f32.mrf.mxu0  ;;  %v1108_v35 = vld [vmem:[#allocation2 + $0xce] sm:$0xff] }
 0x157   : > { %1000 = vst.msk [vmem:[#allocation2 + $0xe0] sm:$0xff] %vm968_vm1, %v952_v63  ;;  %v666_v37 = vmax.f32 %v579_v33, 0.0  ;;  %v1136_v38 = vpack.c.bf16 %v1108_v35, %v1107_v34  ;;  %v1747_v52 = vpack.c.bf16 %v1713_v25, %v1712_v32 }
 0x158   : > { %v581_v40 = vpop.f32.mrf.mxu0 }
 0x159   : > { %v953_v54 = vmul.f32 %v6940_v7, %v666_v37  ;;  %v582_v41 = vadd.f32 %v6949_v12, %v581_v40  ;;  %5649 = vmatmul.mubr.msk.bf16.gmra.mxu1 %vm968_vm1, %v1136_v38  ;;  %5789 = vmatmul.mubr.msk.bf16.gmra.mxu0 %vm968_vm1, %v1744_v39  ;;  %v1715_v39 = vld [vmem:[#allocation2 + $0x7f] sm:$0xff] }
 0x15a   : > { %v5567_v3 = vpop.f32.mrf.mxu0  ;;  %5652 = vmatprep.mubr.msk.bf16.mxu1 %vm6572_vm0, %v9011_v1  ;;  %5792 = vmatprep.mubr.msk.bf16.mxu0 %vm6572_vm0, %v9011_v1  ;;  %v1109_v47 = vld [vmem:[#allocation2 + $0xd6] sm:$0xff] }
 0x15b   : > { %1001 = vst.msk [vmem:[#allocation2 + $0xe8] sm:$0xff] %vm968_vm1, %v953_v54  ;;  %v667_v42 = vmax.f32 %v582_v41, 0.0 }
 0x15c   : > { %v586_v43 = vpop.f32.mrf.mxu0 }
 0x15d   : > { %v954_v7 = vmul.f32 %v6942_v8, %v667_v42  ;;  %v587_v55 = vadd.f32 %v6949_v12, %v586_v43  ;;  %v1714_v42 = vld [vmem:[#allocation2 + $0x77] sm:$0xff] }
 0x15e   : > { %v5570_v46 = vpop.f32.mrf.mxu0  ;;  %v1110_v50 = vld [vmem:[#allocation2 + $0xde] sm:$0xff] }
 0x15f   : > { %1002 = vst.msk [vmem:[#allocation2 + $0xf0] sm:$0xff] %vm968_vm1, %v954_v7  ;;  %v668_v56 = vmax.f32 %v587_v55, 0.0  ;;  %v1137_v62 = vpack.c.bf16 %v1110_v50, %v1109_v47  ;;  %v1748_v7 = vpack.c.bf16 %v1715_v39, %v1714_v42 }
 0x160   : > { %v589_v2 = vpop.f32.mrf.mxu0 }
 0x161   : > { %v955_v5 = vmul.f32 %v6944_v11, %v668_v56  ;;  %v590_v6 = vadd.f32 %v6949_v12, %v589_v2  ;;  %5653 = vmatmul.mubr.msk.bf16.gmra.mxu1 %vm968_vm1, %v1137_v62  ;;  %5793 = vmatmul.mubr.msk.bf16.gmra.mxu0 %vm968_vm1, %v1745_v0  ;;  %v1717_v56 = vld [vmem:[#allocation2 + $0x8f] sm:$0xff] }
 0x162   : > { %v5571_v8 = vpop.f32.mrf.mxu0  ;;  %5656 = vmatprep.mubr.msk.bf16.mxu1 %vm6572_vm0, %v9011_v1  ;;  %5796 = vmatprep.mubr.msk.bf16.mxu0 %vm6572_vm0, %v9011_v1  ;;  %v1111_v16 = vld [vmem:[#allocation2 + $0xe6] sm:$0xff] }
 0x163   : > { %1003 = vst.msk [vmem:[#allocation2 + $0xf8] sm:$0xff] %vm968_vm1, %v955_v5  ;;  %v669_v9 = vmax.f32 %v590_v6, 0.0  ;;  %v1716_v6 = vld [vmem:[#allocation2 + $0x87] sm:$0xff] }
 0x164   : > { %v594_v44 = vpop.f32.mrf.mxu0 }
 0x165   : > { %v956_v11 = vmul.f32 %v6951_v13, %v669_v9  ;;  %v595_v10 = vadd.f32 %v6949_v12, %v594_v44  ;;  %v1749_v44 = vpack.c.bf16 %v1717_v56, %v1716_v6 }
 0x166   : > { %v5574_v15 = vpop.f32.mrf.mxu0  ;;  %v1112_v59 = vld [vmem:[#allocation2 + $0xee] sm:$0xff] }
 0x167   : > { %1004 = vst.msk [vmem:[#allocation2 + $0x100] sm:$0xff] %vm968_vm1, %v956_v11  ;;  %v670_v18 = vmax.f32 %v595_v10, 0.0  ;;  %v1138_v49 = vpack.c.bf16 %v1112_v59, %v1111_v16  ;;  %v1719_v16 = vld [vmem:[#allocation2 + $0x9f] sm:$0xff] }
 0x168   : > { %v597_v21 = vpop.f32.mrf.mxu0 }
 0x169   : > { %v957_v13 = vmul.f32 %v6956_v26, %v670_v18  ;;  %v598_v20 = vadd.f32 %v6949_v12, %v597_v21  ;;  %5657 = vmatmul.mubr.msk.bf16.gmra.mxu1 %vm968_vm1, %v1138_v49  ;;  %5797 = vmatmul.mubr.msk.bf16.gmra.mxu0 %vm968_vm1, %v1746_v19  ;;  %v1718_v21 = vld [vmem:[#allocation2 + $0x97] sm:$0xff] }
 0x16a   : > { %v5575_v22 = vpop.f32.mrf.mxu0  ;;  %5660 = vmatprep.mubr.msk.bf16.mxu1 %vm6572_vm0, %v9011_v1  ;;  %5800 = vmatprep.mubr.msk.bf16.mxu0 %vm6572_vm0, %v9011_v1  ;;  %v1113_v28 = vld [vmem:[#allocation2 + $0xf6] sm:$0xff] }
 0x16b   : > { %1005 = vst.msk [vmem:[#allocation2 + $0x108] sm:$0xff] %vm968_vm1, %v957_v13  ;;  %v671_v24 = vmax.f32 %v598_v20, 0.0  ;;  %v1750_v22 = vpack.c.bf16 %v1719_v16, %v1718_v21  ;;  %v1023_v16 = vld [vmem:[#allocation2 + $0x35] sm:$0xff] }
 0x16c   : > { %v602_v48 = vpop.f32.mrf.mxu0 }
 0x16d   : > { %v958_v26 = vmul.f32 %v6959_v30, %v671_v24  ;;  %v603_v27 = vadd.f32 %v6949_v12, %v602_v48 }
 0x16e   : > { %v5578_v60 = vpop.f32.mrf.mxu0  ;;  %v1114_v29 = vld [vmem:[#allocation2 + $0xfe] sm:$0xff] }
 0x16f   : > { %1006 = vst.msk [vmem:[#allocation2 + $0x110] sm:$0xff] %vm968_vm1, %v958_v26  ;;  %v672_v63 = vmax.f32 %v603_v27, 0.0  ;;  %v1139_v33 = vpack.c.bf16 %v1114_v29, %v1113_v28  ;;  %v920_v27 = vpop.permute.xlu1 %919  ;;  %v1721_v28 = vld [vmem:[#allocation2 + $0xaf] sm:$0xff] }
 0x170   : > { %v605_v34 = vpop.f32.mrf.mxu0 }
 0x171   : > { %v959_v35 = vmul.f32 %v6966_v51, %v672_v63  ;;  %v606_v36 = vadd.f32 %v6949_v12, %v605_v34  ;;  %5661 = vmatmul.mubr.msk.bf16.gmra.mxu1 %vm968_vm1, %v1139_v33  ;;  %5801 = vmatmul.mubr.msk.bf16.gmra.mxu0 %vm968_vm1, %v1747_v52  ;;  %v1720_v52 = vld [vmem:[#allocation2 + $0xa7] sm:$0xff] }
 0x172   : > { %v5579_v30 = vpop.f32.mrf.mxu0  ;;  %5664 = vmatprep.mubr.msk.bf16.mxu1 %vm6572_vm0, %v9011_v1  ;;  %5804 = vmatprep.mubr.msk.bf16.mxu0 %vm6572_vm0, %v9011_v1  ;;  %v1115_v41 = vld [vmem:[#allocation2 + $0x106] sm:$0xff] }
 0x173   : > { %1007 = vst.msk [vmem:[#allocation2 + $0x118] sm:$0xff] %vm968_vm1, %v959_v35  ;;  %v673_v37 = vmax.f32 %v606_v36, 0.0  ;;  %v1751_v30 = vpack.c.bf16 %v1721_v28, %v1720_v52  ;;  %v1732_v21 = vld [vmem:[#allocation2 + $0x107] sm:$0xff] }
 0x174   : > { %v610_v38 = vpop.f32.mrf.mxu0 }
 0x175   : > { %v960_v51 = vmul.f32 %v6972_v61, %v673_v37  ;;  %v611_v40 = vadd.f32 %v6949_v12, %v610_v38  ;;  %v925_v37 = vpop.permute.xlu0 %924 }
 0x176   : > { %v5582_v54 = vpop.f32.mrf.mxu0  ;;  %v1116_v3 = vld [vmem:[#allocation2 + $0x10e] sm:$0xff] }
 0x177   : > { %1008 = vst.msk [vmem:[#allocation2 + $0x120] sm:$0xff] %vm968_vm1, %v960_v51  ;;  %v674_v43 = vmax.f32 %v611_v40, 0.0  ;;  %v1140_v45 = vpack.c.bf16 %v1116_v3, %v1115_v41  ;;  %v1723_v40 = vld [vmem:[#allocation2 + $0xbf] sm:$0xff]  ;;  %v1722_v41 = vld [vmem:[#allocation2 + $0xb7] sm:$0xff] }
 0x178   : > { %v613_v55 = vpop.f32.mrf.mxu0 }
 0x179   : > { %v961_v46 = vmul.f32 %v6982_v23, %v674_v43  ;;  %v614_v47 = vadd.f32 %v6949_v12, %v613_v55  ;;  %5665 = vmatmul.mubr.msk.bf16.gmra.mxu1 %vm968_vm1, %v1140_v45  ;;  %5805 = vmatmul.mubr.msk.bf16.gmra.mxu0 %vm968_vm1, %v1748_v7  ;;  %v1752_v43 = vpack.c.bf16 %v1723_v40, %v1722_v41  ;;  %v1017_v7 = vld [vmem:[#allocation2 + $0x5] sm:$0xff]  ;;  %v1018_v55 = vld [vmem:[#allocation2 + $0xd] sm:$0xff] }
 0x17a   : > { %v5583_v61 = vpop.f32.mrf.mxu0  ;;  %5668 = vmatprep.mubr.msk.bf16.mxu1 %vm6572_vm0, %v9011_v1  ;;  %5808 = vmatprep.mubr.msk.bf16.mxu0 %vm6572_vm0, %v9011_v1  ;;  %v1117_v2 = vld [vmem:[#allocation2 + $0x116] sm:$0xff] }
 0x17b   : > { %1009 = vst.msk [vmem:[#allocation2 + $0x128] sm:$0xff] %vm968_vm1, %v961_v46  ;;  %v675_v50 = vmax.f32 %v614_v47, 0.0  ;;  %v1725_v47 = vld [vmem:[#allocation2 + $0xcf] sm:$0xff]  ;;  %v1058_v61 = vpack.c.bf16 %v1018_v55, %v1017_v7 }
 0x17c   : > { %v618_v53 = vpop.f32.mrf.mxu0 }
 0x17d   : > { %v962_v23 = vmul.f32 %v6985_v31, %v675_v50  ;;  %v619_v62 = vadd.f32 %v6949_v12, %v618_v53  ;;  %v1724_v50 = vld [vmem:[#allocation2 + $0xc7] sm:$0xff]  ;;  %v6508_v53 = vld [vmem:[%s9006_s4 + $0x38] sm:$0xff]  }
 0x17e   : > { %v5586_v0 = vpop.f32.mrf.mxu0  ;;  %v1118_v5 = vld [vmem:[#allocation2 + $0x11e] sm:$0xff]  ;;  %v1753_v56 = vpack.c.bf16 %v1725_v47, %v1724_v50 }
 0x17f   : > { %1010 = vst.msk [vmem:[#allocation2 + $0x130] sm:$0xff] %vm968_vm1, %v962_v23  ;;  %v676_v8 = vmax.f32 %v619_v62, 0.0  ;;  %v1141_v9 = vpack.c.bf16 %v1118_v5, %v1117_v2  ;;  %v6511_v23 = vld [vmem:[%s9006_s4 + $0x30] sm:$0xff]   ;;  %v1020_v62 = vld [vmem:[#allocation2 + $0x1d] sm:$0xff] }
 0x180   : > { %v621_v57 = vpop.f32.mrf.mxu0  ;;  %v1727_v0 = vld [vmem:[#allocation2 + $0xdf] sm:$0xff]  ;;  %v1019_v2 = vld [vmem:[#allocation2 + $0x15] sm:$0xff] }
 0x181   : > { %v963_v11 = vmul.f32 %v6995_v58, %v676_v8  ;;  %v622_v10 = vadd.f32 %v6949_v12, %v621_v57  ;;  %5669 = vmatmul.mubr.msk.bf16.gmra.mxu1 %vm968_vm1, %v1141_v9  ;;  %5809 = vmatmul.mubr.msk.bf16.gmra.mxu0 %vm968_vm1, %v1749_v44  ;;  %v1726_v5 = vld [vmem:[#allocation2 + $0xd7] sm:$0xff]  ;;  %v1059_v6 = vpack.c.bf16 %v1020_v62, %v1019_v2  ;;  %v1022_v9 = vld [vmem:[#allocation2 + $0x2d] sm:$0xff]  ;;  %v1021_v57 = vld [vmem:[#allocation2 + $0x25] sm:$0xff] }
 0x182   : > { %v5587_v31 = vpop.f32.mrf.mxu0  ;;  %5672 = vmatprep.mubr.msk.bf16.mxu1 %vm6572_vm0, %v9011_v1  ;;  %5812 = vmatprep.mubr.msk.bf16.mxu0 %vm6572_vm0, %v9011_v1  ;;  %v1119_v49 = vld [vmem:[#allocation2 + $0x126] sm:$0xff]  ;;  %v1754_v8 = vpack.c.bf16 %v1727_v0, %v1726_v5  ;;  %v1729_v44 = vld [vmem:[#allocation2 + $0xef] sm:$0xff] }
 0x183   : > { %1011 = vst.msk [vmem:[#allocation2 + $0x138] sm:$0xff] %vm968_vm1, %v963_v11  ;;  %v677_v14 = vmax.f32 %v622_v10, 0.0  ;;  %v1728_v11 = vld [vmem:[#allocation2 + $0xe7] sm:$0xff]  ;;  %v1060_v10 = vpack.c.bf16 %v1022_v9, %v1021_v57  ;;  %v2466_v57 = vld [vmem:[#allocation2 + $0x18] sm:$0xff] }
 0x184   : > { %v626_v15 = vpop.f32.mrf.mxu0  ;;  %v1755_v31 = vpack.c.bf16 %v1729_v44, %v1728_v11  ;;  %v1035_v44 = vld [vmem:[#allocation2 + $0x95] sm:$0xff] }
 0x185   : > { %v964_v58 = vmul.f32 %v6999_v4, %v677_v14  ;;  %v627_v59 = vadd.f32 %v6949_v12, %v626_v15  ;;  %v1024_v14 = vld [vmem:[#allocation2 + $0x3d] sm:$0xff] }
 0x186   : > { %v5590_v18 = vpop.f32.mrf.mxu0  ;;  %v1120_v19 = vld [vmem:[#allocation2 + $0x12e] sm:$0xff]  ;;  %v1731_v15 = vld [vmem:[#allocation2 + $0xff] sm:$0xff] }
 0x187   : > { %1012 = vst.msk [vmem:[#allocation2 + $0x140] sm:$0xff] %vm968_vm1, %v964_v58  ;;  %v678_v13 = vmax.f32 %v627_v59, 0.0  ;;  %v1142_v20 = vpack.c.bf16 %v1120_v19, %v1119_v49  ;;  %v1730_v58 = vld [vmem:[#allocation2 + $0xf7] sm:$0xff]  ;;  %v1061_v59 = vpack.c.bf16 %v1024_v14, %v1023_v16  ;;  %v1026_v18 = vld [vmem:[#allocation2 + $0x4d] sm:$0xff]  ;;  %v1025_v19 = vld [vmem:[#allocation2 + $0x45] sm:$0xff] }
 0x188   : > { %v629_v24 = vpop.f32.mrf.mxu0  ;;  %v1733_v49 = vld [vmem:[#allocation2 + $0x10f] sm:$0xff] }
 0x189   : > { %v965_v48 = vmul.f32 %v915_v17, %v678_v13  ;;  %v630_v25 = vadd.f32 %v6949_v12, %v629_v24  ;;  %5673 = vmatmul.mubr.msk.bf16.gmra.mxu1 %vm968_vm1, %v1142_v20  ;;  %5813 = vmatmul.mubr.msk.bf16.gmra.mxu0 %vm968_vm1, %v1750_v22  ;;  %v1756_v17 = vpack.c.bf16 %v1731_v15, %v1730_v58  ;;  %v1737_v52 = vld [vmem:[#allocation2 + $0x12f] sm:$0xff] }
 0x18a   : > { %v5591_v4 = vpop.f32.mrf.mxu0  ;;  %5676 = vmatprep.mubr.msk.bf16.mxu1 %vm6572_vm0, %v9011_v1  ;;  %5816 = vmatprep.mubr.msk.bf16.mxu0 %vm6572_vm0, %v9011_v1  ;;  %v1121_v63 = vld [vmem:[#allocation2 + $0x136] sm:$0xff]  ;;  %v1062_v13 = vpack.c.bf16 %v1026_v18, %v1025_v19  ;;  %v1757_v20 = vpack.c.bf16 %v1733_v49, %v1732_v21  ;;  %v6513_v14 = vld [vmem:[%s9006_s4 + $0x68] sm:$0xff]  }
 0x18b   : > { %1013 = vst.msk [vmem:[#allocation2 + $0x148] sm:$0xff] %vm968_vm1, %v965_v48  ;;  %v679_v26 = vmax.f32 %v630_v25, 0.0  ;;  %v1028_v48 = vld [vmem:[#allocation2 + $0x5d] sm:$0xff]  ;;  %v1038_v58 = vld [vmem:[#allocation2 + $0xad] sm:$0xff]  ;;  %v1037_v18 = vld [vmem:[#allocation2 + $0xa5] sm:$0xff] }
 0x18c   : > { %v634_v60 = vpop.f32.mrf.mxu0  ;;  %v1735_v25 = vld [vmem:[#allocation2 + $0x11f] sm:$0xff]  ;;  %v2468_v49 = vld [vmem:[#allocation2 + $0x28] sm:$0xff]  ;;  %v1068_v21 = vpack.c.bf16 %v1038_v58, %v1037_v18 }
 0x18d   : > { %v966_v29 = vmul.f32 %v920_v27, %v679_v26  ;;  %v635_v32 = vadd.f32 %v6949_v12, %v634_v60  ;;  %v1027_v26 = vld [vmem:[#allocation2 + $0x55] sm:$0xff]  ;;  %v1045_v58 = vld [vmem:[#allocation2 + $0xe5] sm:$0xff] }
 0x18e   : > { %v1122_v33 = vld [vmem:[#allocation2 + $0x13e] sm:$0xff]  ;;  %v5594_v34 = vpop.f32.mrf.mxu0  ;;  %v1063_v28 = vpack.c.bf16 %v1028_v48, %v1027_v26 }
 0x18f   : > { %1014 = vst.msk [vmem:[#allocation2 + $0x150] sm:$0xff] %vm968_vm1, %v966_v29  ;;  %v680_v35 = vmax.f32 %v635_v32, 0.0  ;;  %v1143_v36 = vpack.c.bf16 %v1122_v33, %v1121_v63  ;;  %v1734_v27 = vld [vmem:[#allocation2 + $0x117] sm:$0xff]  ;;  %v1030_v33 = vld [vmem:[#allocation2 + $0x6d] sm:$0xff]  ;;  %v1739_v40 = vld [vmem:[#allocation2 + $0x13f] sm:$0xff] }
 0x190   : > { %v637_v38 = vpop.f32.mrf.mxu0  ;;  %v1758_v29 = vpack.c.bf16 %v1735_v25, %v1734_v27  ;;  %v1040_v48 = vld [vmem:[#allocation2 + $0xbd] sm:$0xff]  ;;  %v1039_v27 = vld [vmem:[#allocation2 + $0xb5] sm:$0xff] }
 0x191   : > { %v967_v39 = vmul.f32 %v925_v37, %v680_v35  ;;  %5677 = vmatmul.mubr.msk.bf16.gmra.mxu1 %vm968_vm1, %v1143_v36  ;;  %5817 = vmatmul.mubr.msk.bf16.gmra.mxu0 %vm968_vm1, %v1751_v30  ;;  %v1029_v35 = vld [vmem:[#allocation2 + $0x65] sm:$0xff] }
 0x192   : > { %5680 = vmatprep.mubr.msk.bf16.mxu1 %vm6572_vm0, %v9011_v1  ;;  %5820 = vmatprep.mubr.msk.bf16.mxu0 %vm6572_vm0, %v9011_v1  ;;  %v5595_v12 = vpop.f32.mrf.mxu0  ;;  %v1123_v51 = vld [vmem:[#allocation2 + $0x146] sm:$0xf]  ;;  %v1064_v37 = vpack.c.bf16 %v1030_v33, %v1029_v35  ;;  %v1042_v35 = vld [vmem:[#allocation2 + $0xcd] sm:$0xff] }
 0x193   : > { %1016 = vst.msk [vmem:[#allocation2 + $0x158] sm:$0xf] %vm1015_vm2, %v967_v39  ;;  %v1144_v42 = vpack.c.bf16 %v1123_v51, %v1123_v51  ;;  %v1736_v36 = vld [vmem:[#allocation2 + $0x127] sm:$0xff]  ;;  %v1032_v51 = vld [vmem:[#allocation2 + $0x7d] sm:$0xff] }
 0x194   : > { %v7179_v54 = vpop.f32.mrf.mxu0  ;;  %v1759_v38 = vpack.c.bf16 %v1737_v52, %v1736_v36  ;;  %v1740_v50 = vld [vmem:[#allocation2 + $0x147] sm:$0xf]  ;;  %v2473_v36 = vld [vmem:[#allocation2 + $0x50] sm:$0xff] }
 0x195   : > { %v1761_v0 = vpack.c.bf16 %v1740_v50, %v1740_v50  ;;  %v2471_v25 = vld [vmem:[#allocation2 + $0x40] sm:$0xff] }
 0x196   : > { %v5602_v3 = vpop.f32.mrf.mxu0  ;;  %v6514_v18 = vld [vmem:[%s9006_s4 + $0x60] sm:$0xff]  }
 0x197   : > { %v1031_v3 = vld [vmem:[#allocation2 + $0x75] sm:$0xff] }
 0x198   : > { %v7181_v45 = vpop.f32.mrf.mxu0  ;;  %v1065_v7 = vpack.c.bf16 %v1032_v51, %v1031_v3 }
 0x199   : > { %5681 = vmatmul.mubr.msk.bf16.gmra.mxu1 %vm968_vm1, %v1144_v42  ;;  %5821 = vmatmul.mubr.msk.bf16.gmra.mxu0 %vm968_vm1, %v1752_v43  ;;  %v1738_v42 = vld [vmem:[#allocation2 + $0x137] sm:$0xff] }
 0x19a   : > { %5688 = vmatprep.mubr.msk.bf16.mxu1 %vm6572_vm0, %v9011_v1  ;;  %5824 = vmatprep.mubr.msk.bf16.mxu0 %vm6572_vm0, %v9011_v1  ;;  %v5603_v46 = vpop.f32.mrf.mxu0  ;;  %v1760_v55 = vpack.c.bf16 %v1739_v40, %v1738_v42 }
 0x1a1   : > { %5689 = vmatmul.mubr.msk.bf16.vlgmr.msra.gmra.mxu1 %vm968_vm1, %v1058_v61  ;;  %5825 = vmatmul.mubr.msk.bf16.gmra.mxu0 %vm968_vm1, %v1753_v56  ;;  %v1034_v61 = vld [vmem:[#allocation2 + $0x8d] sm:$0xff]  ;;  %v1033_v56 = vld [vmem:[#allocation2 + $0x85] sm:$0xff] }
 0x1a2   : > { %5861 = vmatpush3.bf16.msra.mxu1 %v6508_v53  ;;  %5692 = vmatprep.mubr.msk.bf16.mxu1 %vm6572_vm0, %v9011_v1  ;;  %v1066_v62 = vpack.c.bf16 %v1034_v61, %v1033_v56  ;;  %v1043_v56 = vld [vmem:[#allocation2 + $0xd5] sm:$0xff] }
 0x1a3   : > { %5828 = vmatprep.mubr.msk.bf16.mxu0 %vm6572_vm0, %v9011_v1  ;;  %5862 = vmatprep.subr.bf16.mxu1 %v9011_v1 }
 0x1a6   : > { %5863 = vmatpush3.bf16.msra.mxu1 %v6511_v23 }
 0x1a7   : > { %6036 = vmatprep.subr.bf16.mxu1 %v9011_v1 }
 0x1a9   : > { %5693 = vmatmul.mubr.msk.bf16.gmra.mxu1 %vm968_vm1, %v1059_v6  ;;  %5829 = vmatmul.mubr.msk.bf16.gmra.mxu0 %vm968_vm1, %v1754_v8  ;;  %v1036_v6 = vld [vmem:[#allocation2 + $0x9d] sm:$0xff] }
 0x1aa   : > { %5696 = vmatprep.mubr.msk.bf16.mxu1 %vm6572_vm0, %v9011_v1  ;;  %5832 = vmatprep.mubr.msk.bf16.mxu0 %vm6572_vm0, %v9011_v1  ;;  %v2467_v8 = vld [vmem:[#allocation2 + $0x20] sm:$0xff] }
 0x1b1   : > { %5697 = vmatmul.mubr.msk.bf16.gmra.mxu1 %vm968_vm1, %v1060_v10  ;;  %5833 = vmatmul.mubr.msk.bf16.gmra.mxu0 %vm968_vm1, %v1755_v31  ;;  %v1067_v10 = vpack.c.bf16 %v1036_v6, %v1035_v44  ;;  %v2507_v31 = vpack.c.bf16 %v2467_v8, %v2466_v57 }
 0x1b2   : > { %5700 = vmatprep.mubr.msk.bf16.mxu1 %vm6572_vm0, %v9011_v1  ;;  %5836 = vmatprep.mubr.msk.bf16.mxu0 %vm6572_vm0, %v9011_v1 }
 0x1b9   : > { %5701 = vmatmul.mubr.msk.bf16.gmra.mxu1 %vm968_vm1, %v1061_v59  ;;  %5837 = vmatmul.mubr.msk.bf16.gmra.mxu0 %vm968_vm1, %v1756_v17  ;;  %v2469_v59 = vld [vmem:[#allocation2 + $0x30] sm:$0xff] }
 0x1ba   : > { %5704 = vmatprep.mubr.msk.bf16.mxu1 %vm6572_vm0, %v9011_v1  ;;  %5840 = vmatprep.mubr.msk.bf16.mxu0 %vm6572_vm0, %v9011_v1 }
 0x1c1   : > { %v7221_v22 = vpop.f32.mrf.mxu0  ;;  %5705 = vmatmul.mubr.msk.bf16.gmra.mxu1 %vm968_vm1, %v1062_v13  ;;  %5841 = vmatmul.mubr.msk.bf16.gmra.mxu0 %vm968_vm1, %v1757_v20  ;;  %v2508_v13 = vpack.c.bf16 %v2469_v59, %v2468_v49  ;;  %v2476_v59 = vld [vmem:[#allocation2 + $0x68] sm:$0xff] }
 0x1c2   : > { %5708 = vmatprep.mubr.msk.bf16.mxu1 %vm6572_vm0, %v9011_v1  ;;  %5844 = vmatprep.mubr.msk.bf16.mxu0 %vm6572_vm0, %v9011_v1 }
 0x1c3   : > { %v5606_v24 = vpop.f32.mrf.mxu0 }
 0x1c5   : > { %v7229_v4 = vpop.f32.mrf.mxu0 }
 0x1c7   : > { %v5607_v60 = vpop.f32.mrf.mxu0 }
 0x1c8   : > { %v2470_v60 = vld [vmem:[#allocation2 + $0x38] sm:$0xff] }
 0x1c9   : > { %v7231_v32 = vpop.f32.mrf.mxu0  ;;  %5709 = vmatmul.mubr.msk.bf16.gmra.mxu1 %vm968_vm1, %v1063_v28  ;;  %5845 = vmatmul.mubr.msk.bf16.gmra.mxu0 %vm968_vm1, %v1758_v29  ;;  %v1069_v29 = vpack.c.bf16 %v1040_v48, %v1039_v27 }
 0x1ca   : > { %5712 = vmatprep.mubr.msk.bf16.mxu1 %vm6572_vm0, %v9011_v1  ;;  %5848 = vmatprep.mubr.msk.bf16.mxu0 %vm6572_vm0, %v9011_v1 }
 0x1cb   : > { %v5610_v63 = vpop.f32.mrf.mxu0 }
 0x1cc   : > { %v2509_v63 = vpack.c.bf16 %v2471_v25, %v2470_v60  ;;  %v1048_v60 = vld [vmem:[#allocation2 + $0xfd] sm:$0xff] }
 0x1cd   : > { %v7239_v34 = vpop.f32.mrf.mxu0 }
 0x1cf   : > { %v5611_v30 = vpop.f32.mrf.mxu0 }
 0x1d1   : > { %v7241_v39 = vpop.f32.mrf.mxu0  ;;  %5713 = vmatmul.mubr.msk.bf16.gmra.mxu1 %vm968_vm1, %v1064_v37  ;;  %5849 = vmatmul.mubr.msk.bf16.gmra.mxu0 %vm968_vm1, %v1759_v38  ;;  %v1041_v37 = vld [vmem:[#allocation2 + $0xc5] sm:$0xff] }
 0x1d2   : > { %5716 = vmatprep.mubr.msk.bf16.mxu1 %vm6572_vm0, %v9011_v1  ;;  %5852 = vmatprep.mubr.msk.bf16.mxu0 %vm6572_vm0, %v9011_v1  ;;  %v2472_v38 = vld [vmem:[#allocation2 + $0x48] sm:$0xff]  ;;  %v1070_v51 = vpack.c.bf16 %v1042_v35, %v1041_v37  ;;  %v2478_v35 = vld [vmem:[#allocation2 + $0x78] sm:$0xff] }
 0x1d3   : > { %v5614_v12 = vpop.f32.mrf.mxu0  ;;  %v2510_v40 = vpack.c.bf16 %v2473_v36, %v2472_v38 }
 0x1d5   : > { %v7249_v41 = vpop.f32.mrf.mxu0 }
 0x1d7   : > { %v5615_v43 = vpop.f32.mrf.mxu0 }
 0x1d9   : > { %v7251_v46 = vpop.f32.mrf.mxu0  ;;  %5717 = vmatmul.mubr.msk.bf16.gmra.mxu1 %vm968_vm1, %v1065_v7  ;;  %5853 = vmatmul.mubr.msk.bf16.gmra.mxu0 %vm968_vm1, %v1760_v55  ;;  %v1044_v55 = vld [vmem:[#allocation2 + $0xdd] sm:$0xff] }
 0x1da   : > { %5720 = vmatprep.mubr.msk.bf16.mxu1 %vm6572_vm0, %v9011_v1  ;;  %5856 = vmatprep.mubr.msk.bf16.mxu0 %vm6572_vm0, %v9011_v1 }
 0x1db   : > { %v5618_v47 = vpop.f32.mrf.mxu0 }
 0x1dc   : > { %v2475_v47 = vld [vmem:[#allocation2 + $0x60] sm:$0xff] }
 0x1dd   : > { %v7259_v53 = vpop.f32.mrf.mxu0 }
 0x1df   : > { %v5619_v23 = vpop.f32.mrf.mxu0 }
 0x1e0   : > { %v2474_v23 = vld [vmem:[#allocation2 + $0x58] sm:$0xff] }
 0x1e1   : > { %v7261_v2 = vpop.f32.mrf.mxu0  ;;  %5721 = vmatmul.mubr.msk.bf16.gmra.mxu1 %vm968_vm1, %v1066_v62  ;;  %5857 = vmatmul.mubr.msk.bf16.gmra.mxu0 %vm968_vm1, %v1761_v0  ;;  %v2511_v6 = vpack.c.bf16 %v2475_v47, %v2474_v23  ;;  %v2481_v47 = vld [vmem:[#allocation2 + $0x90] sm:$0xff] }
 0x1e2   : > { %5724 = vmatprep.mubr.msk.bf16.mxu1 %vm6572_vm0, %v9011_v1  ;;  %5952 = vmatprep.mubr.msk.bf16.mxu0 %vm6572_vm0, %v9011_v1 }
 0x1e3   : > { %v5622_v5 = vpop.f32.mrf.mxu0 }
 0x1e4   : > { %v1071_v5 = vpack.c.bf16 %v1044_v55, %v1043_v56  ;;  %v1050_v55 = vld [vmem:[#allocation2 + $0x10d] sm:$0xff] }
 0x1e5   : > { %v7269_v9 = vpop.f32.mrf.mxu0 }
 0x1e7   : > { %v5623_v11 = vpop.f32.mrf.mxu0 }
 0x1e9   : > { %v7274_v15 = vpop.f32.mrf.mxu0  ;;  %5725 = vmatmul.mubr.msk.bf16.gmra.mxu1 %vm968_vm1, %v1067_v10  ;;  %5953 = vmatmul.mubr.msk.bf16.vlgmr.msra.gmra.mxu0 %vm968_vm1, %v2507_v31  ;;  %v1046_v10 = vld [vmem:[#allocation2 + $0xed] sm:$0xff] }
 0x1ea   : > { %5728 = vmatprep.mubr.msk.bf16.mxu1 %vm6572_vm0, %v9011_v1  ;;  %5956 = vmatprep.mubr.msk.bf16.mxu0 %vm6572_vm0, %v9011_v1  ;;  %v2477_v31 = vld [vmem:[#allocation2 + $0x70] sm:$0xff] }
 0x1eb   : > { %v5626_v16 = vpop.f32.mrf.mxu0  ;;  %6125 = vmatpush3.bf16.msra.mxu0 %v6513_v14 }
 0x1ec   : > { %6126 = vmatprep.subr.bf16.mxu0 %v9011_v1 }
 0x1ed   : > { %v7283_v17 = vpop.f32.mrf.mxu0 }
 0x1ef   : > { %v5627_v19 = vpop.f32.mrf.mxu0  ;;  %6127 = vmatpush3.bf16.msra.mxu0 %v6514_v18  ;;  %v1052_v18 = vld [vmem:[#allocation2 + $0x11d] sm:$0xff] }
 0x1f0   : > { %6300 = vmatprep.subr.bf16.mxu0 %v9011_v1 }
 0x1f1   : > { %v7285_v20 = vpop.f32.mrf.mxu0  ;;  %5729 = vmatmul.mubr.msk.bf16.gmra.mxu1 %vm968_vm1, %v1068_v21  ;;  %5957 = vmatmul.mubr.msk.bf16.gmra.mxu0 %vm968_vm1, %v2508_v13  ;;  %v1072_v21 = vpack.c.bf16 %v1046_v10, %v1045_v58  ;;  %v2512_v13 = vpack.c.bf16 %v2477_v31, %v2476_v59 }
 0x1f2   : > { %9017 = vst [vmem:[#allocation3_spill] sm:$0xff] %v7285_v20  ;;  %5732 = vmatprep.mubr.msk.bf16.mxu1 %vm6572_vm0, %v9011_v1  ;;  %5960 = vmatprep.mubr.msk.bf16.mxu0 %vm6572_vm0, %v9011_v1 }
 0x1f3   : > { %v5630_v24 = vpop.f32.mrf.mxu0 }
 0x1f5   : > { %v7293_v26 = vpop.f32.mrf.mxu0 }
 0x1f6   : > { %9018 = vst [vmem:[#allocation4_spill] sm:$0xff] %v7293_v26 }
 0x1f7   : > { %v5631_v28 = vpop.f32.mrf.mxu0 }
 0x1f8   : > { %v2479_v28 = vld [vmem:[#allocation2 + $0x80] sm:$0xff] }
 0x1f9   : > { %v7295_v33 = vpop.f32.mrf.mxu0  ;;  %5733 = vmatmul.mubr.msk.bf16.gmra.mxu1 %vm968_vm1, %v1069_v29  ;;  %5961 = vmatmul.mubr.msk.bf16.gmra.mxu0 %vm968_vm1, %v2509_v63 }
 0x1fa   : > { %9019 = vst [vmem:[#allocation5_spill] sm:$0xff] %v7295_v33  ;;  %5736 = vmatprep.mubr.msk.bf16.mxu1 %vm6572_vm0, %v9011_v1  ;;  %5964 = vmatprep.mubr.msk.bf16.mxu0 %vm6572_vm0, %v9011_v1 }
 0x1fb   : > { %v5634_v52 = vpop.f32.mrf.mxu0 }
 0x1fc   : > { %v1047_v52 = vld [vmem:[#allocation2 + $0xf5] sm:$0xff] }
 0x1fd   : > { %v7303_v30 = vpop.f32.mrf.mxu0  ;;  %v1073_v38 = vpack.c.bf16 %v1048_v60, %v1047_v52 }
 0x1fe   : > { %9020 = vst [vmem:[#allocation6_spill] sm:$0xff] %v7303_v30 }
 0x1ff   : > { %v5635_v12 = vpop.f32.mrf.mxu0 }
 0x200   : > { %v2513_v12 = vpack.c.bf16 %v2479_v28, %v2478_v35 }
 0x201   : > { %v7305_v3 = vpop.f32.mrf.mxu1  ;;  %5737 = vmatmul.mubr.msk.bf16.gmra.mxu1 %vm968_vm1, %v1070_v51  ;;  %v7308_v42 = vpop.f32.mrf.mxu0  ;;  %5965 = vmatmul.mubr.msk.bf16.gmra.mxu0 %vm968_vm1, %v2510_v40 }
 0x202   : > { %9021 = vst [vmem:[#allocation7_spill] sm:$0xff] %v7305_v3  ;;  %5740 = vmatprep.mubr.msk.bf16.mxu1 %vm6572_vm0, %v9011_v1  ;;  %5968 = vmatprep.mubr.msk.bf16.mxu0 %vm6572_vm0, %v9011_v1 }
 0x203   : > { %v5638_v43 = vpop.f32.mrf.mxu1  ;;  %v5778_v7 = vpop.f32.mrf.mxu0 }
 0x205   : > { %v7315_v61 = vpop.f32.mrf.mxu1  ;;  %v7317_v50 = vpop.f32.mrf.mxu0 }
 0x206   : > { %9022 = vst [vmem:[#allocation8_spill] sm:$0xff] %v7315_v61 }
 0x207   : > { %v5639_v62 = vpop.f32.mrf.mxu1  ;;  %v5779_v0 = vpop.f32.mrf.mxu0 }
 0x208   : > { %v1049_v62 = vld [vmem:[#allocation2 + $0x105] sm:$0xff] }
 0x209   : > { %v7319_v8 = vpop.f32.mrf.mxu1  ;;  %5741 = vmatmul.mubr.msk.bf16.gmra.mxu1 %vm968_vm1, %v1071_v5  ;;  %v7322_v44 = vpop.f32.mrf.mxu0  ;;  %5969 = vmatmul.mubr.msk.bf16.gmra.mxu0 %vm968_vm1, %v2511_v6  ;;  %v2480_v0 = vld [vmem:[#allocation2 + $0x88] sm:$0xff] }
 0x20a   : > { %9023 = vst [vmem:[#allocation9_spill] sm:$0xff] %v7319_v8  ;;  %5744 = vmatprep.mubr.msk.bf16.mxu1 %vm6572_vm0, %v9011_v1  ;;  %5972 = vmatprep.mubr.msk.bf16.mxu0 %vm6572_vm0, %v9011_v1  ;;  %v6517_v8 = vld [vmem:[%s9006_s4 + $0x88] sm:$0xff]  }
 0x20b   : > { %v5642_v57 = vpop.f32.mrf.mxu1  ;;  %v5782_v11 = vpop.f32.mrf.mxu0 }
 0x20c   : > { %v1074_v57 = vpack.c.bf16 %v1050_v55, %v1049_v62  ;;  %v2514_v11 = vpack.c.bf16 %v2481_v47, %v2480_v0  ;;  %v1053_v47 = vld [vmem:[#allocation2 + $0x125] sm:$0xff] }
 0x20d   : > { %v7329_v14 = vpop.f32.mrf.mxu1  ;;  %v7331_v16 = vpop.f32.mrf.mxu0  ;;  %v2484_v62 = vld [vmem:[#allocation2 + $0xa8] sm:$0xff] }
 0x20e   : > { %9024 = vst [vmem:[#allocation10_spill] sm:$0xff] %v7329_v14 }
 0x20f   : > { %v5643_v49 = vpop.f32.mrf.mxu1  ;;  %v5783_v19 = vpop.f32.mrf.mxu0 }
 0x210   : > { %v2483_v49 = vld [vmem:[#allocation2 + $0xa0] sm:$0xff] }
 0x211   : > { %v7336_v24 = vpop.f32.mrf.mxu1  ;;  %5745 = vmatmul.mubr.msk.bf16.gmra.mxu1 %vm968_vm1, %v1072_v21  ;;  %v7339_v48 = vpop.f32.mrf.mxu0  ;;  %5973 = vmatmul.mubr.msk.bf16.gmra.mxu0 %vm968_vm1, %v2512_v13  ;;  %v1051_v13 = vld [vmem:[#allocation2 + $0x115] sm:$0xff] }
 0x212   : > { %9025 = vst [vmem:[#allocation11_spill] sm:$0xff] %v7336_v24  ;;  %5748 = vmatprep.mubr.msk.bf16.mxu1 %vm6572_vm0, %v9011_v1  ;;  %5976 = vmatprep.mubr.msk.bf16.mxu0 %vm6572_vm0, %v9011_v1  ;;  %v1075_v28 = vpack.c.bf16 %v1052_v18, %v1051_v13  ;;  %v2487_v13 = vld [vmem:[#allocation2 + $0xc0] sm:$0xff] }
 0x213   : > { %v5646_v25 = vpop.f32.mrf.mxu1  ;;  %v5786_v27 = vpop.f32.mrf.mxu0 }
 0x214   : > { %v2482_v25 = vld [vmem:[#allocation2 + $0x98] sm:$0xff] }
 0x215   : > { %v7347_v29 = vpop.f32.mrf.mxu1  ;;  %v7349_v63 = vpop.f32.mrf.mxu0  ;;  %v2515_v52 = vpack.c.bf16 %v2483_v49, %v2482_v25  ;;  %v1056_v49 = vld [vmem:[#allocation2 + $0x13d] sm:$0xff] }
 0x216   : > { %9026 = vst [vmem:[#allocation12_spill] sm:$0xff] %v7347_v29 }
 0x217   : > { %v5647_v36 = vpop.f32.mrf.mxu1  ;;  %v5787_v37 = vpop.f32.mrf.mxu0 }
 0x219   : > { %v7351_v51 = vpop.f32.mrf.mxu1  ;;  %5749 = vmatmul.mubr.msk.bf16.gmra.mxu1 %vm968_vm1, %v1073_v38  ;;  %v7354_v40 = vpop.f32.mrf.mxu0  ;;  %5977 = vmatmul.mubr.msk.bf16.gmra.mxu0 %vm968_vm1, %v2513_v12  ;;  %v1054_v12 = vld [vmem:[#allocation2 + $0x12d] sm:$0xff] }
 0x21a   : > { %9027 = vst [vmem:[#allocation13_spill] sm:$0xff] %v7351_v51  ;;  %5752 = vmatprep.mubr.msk.bf16.mxu1 %vm6572_vm0, %v9011_v1  ;;  %5980 = vmatprep.mubr.msk.bf16.mxu0 %vm6572_vm0, %v9011_v1 }
 0x21b   : > { %v5650_v43 = vpop.f32.mrf.mxu1  ;;  %v5790_v7 = vpop.f32.mrf.mxu0 }
 0x21c   : > { %v2485_v43 = vld [vmem:[#allocation2 + $0xb0] sm:$0xff] }
 0x21d   : > { %v7361_v56 = vpop.f32.mrf.mxu1  ;;  %v7363_v23 = vpop.f32.mrf.mxu0 }
 0x21e   : > { %9028 = vst [vmem:[#allocation14_spill] sm:$0xff] %v7361_v56 }
 0x21f   : > { %v5651_v5 = vpop.f32.mrf.mxu1  ;;  %v5791_v6 = vpop.f32.mrf.mxu0 }
 0x220   : > { %v1076_v6 = vpack.c.bf16 %v1054_v12, %v1053_v47 }
 0x221   : > { %v7365_v10 = vpop.f32.mrf.mxu1  ;;  %5753 = vmatmul.mubr.msk.bf16.gmra.mxu1 %vm968_vm1, %v1074_v57  ;;  %v7368_v31 = vpop.f32.mrf.mxu0  ;;  %5981 = vmatmul.mubr.msk.bf16.gmra.mxu0 %vm968_vm1, %v2514_v11  ;;  %v2516_v57 = vpack.c.bf16 %v2485_v43, %v2484_v62 }
 0x222   : > { %9029 = vst [vmem:[#allocation15_spill] sm:$0xff] %v7365_v10  ;;  %5756 = vmatprep.mubr.msk.bf16.mxu1 %vm6572_vm0, %v9011_v1  ;;  %5984 = vmatprep.mubr.msk.bf16.mxu0 %vm6572_vm0, %v9011_v1 }
 0x223   : > { %v5654_v58 = vpop.f32.mrf.mxu1  ;;  %v5794_v59 = vpop.f32.mrf.mxu0 }
 0x225   : > { %v7375_v19 = vpop.f32.mrf.mxu1  ;;  %v7377_v21 = vpop.f32.mrf.mxu0 }
 0x226   : > { %9030 = vst [vmem:[#allocation16_spill] sm:$0xff] %v7375_v19 }
 0x227   : > { %v5655_v27 = vpop.f32.mrf.mxu1  ;;  %v5795_v60 = vpop.f32.mrf.mxu0 }
 0x228   : > { %v1055_v60 = vld [vmem:[#allocation2 + $0x135] sm:$0xff] }
 0x229   : > { %v7379_v35 = vpop.f32.mrf.mxu1  ;;  %5757 = vmatmul.mubr.msk.bf16.gmra.mxu1 %vm968_vm1, %v1075_v28  ;;  %v7382_v36 = vpop.f32.mrf.mxu0  ;;  %5985 = vmatmul.mubr.msk.bf16.gmra.mxu0 %vm968_vm1, %v2515_v52  ;;  %v2486_v28 = vld [vmem:[#allocation2 + $0xb8] sm:$0xff] }
 0x22a   : > { %9031 = vst [vmem:[#allocation17_spill] sm:$0xff] %v7379_v35  ;;  %5760 = vmatprep.mubr.msk.bf16.mxu1 %vm6572_vm0, %v9011_v1  ;;  %5988 = vmatprep.mubr.msk.bf16.mxu0 %vm6572_vm0, %v9011_v1  ;;  %v2517_v12 = vpack.c.bf16 %v2487_v13, %v2486_v28 }
 0x22b   : > { %v5658_v37 = vpop.f32.mrf.mxu1  ;;  %v5798_v38 = vpop.f32.mrf.mxu0 }
 0x22c   : > { %v1077_v38 = vpack.c.bf16 %v1056_v49, %v1055_v60 }
 0x22d   : > { %v7389_v7 = vpop.f32.mrf.mxu1  ;;  %v7391_v55 = vpop.f32.mrf.mxu0 }
 0x22e   : > { %9032 = vst [vmem:[#allocation18_spill] sm:$0xff] %v7389_v7 }
 0x22f   : > { %v5659_v0 = vpop.f32.mrf.mxu1  ;;  %v5799_v5 = vpop.f32.mrf.mxu0 }
 0x230   : > { %v1057_v5 = vld [vmem:[#allocation2 + $0x145] sm:$0xf] }
 0x231   : > { %v7393_v11 = vpop.f32.mrf.mxu1  ;;  %5761 = vmatmul.mubr.msk.bf16.gmra.mxu1 %vm968_vm1, %v1076_v6  ;;  %v7396_v58 = vpop.f32.mrf.mxu0  ;;  %5989 = vmatmul.mubr.msk.bf16.gmra.mxu0 %vm968_vm1, %v2516_v57  ;;  %v2489_v6 = vld [vmem:[#allocation2 + $0xd0] sm:$0xff]  ;;  %v1078_v60 = vpack.c.bf16 %v1057_v5, %v1057_v5 }
 0x232   : > { %9033 = vst [vmem:[#allocation19_spill] sm:$0xff] %v7393_v11  ;;  %5764 = vmatprep.mubr.msk.bf16.mxu1 %vm6572_vm0, %v9011_v1  ;;  %5992 = vmatprep.mubr.msk.bf16.mxu0 %vm6572_vm0, %v9011_v1 }
 0x233   : > { %v5662_v59 = vpop.f32.mrf.mxu1  ;;  %v5802_v18 = vpop.f32.mrf.mxu0 }
 0x234   : > { %v2488_v18 = vld [vmem:[#allocation2 + $0xc8] sm:$0xff] }
 0x235   : > { %v7403_v25 = vpop.f32.mrf.mxu1  ;;  %v7405_v27 = vpop.f32.mrf.mxu0  ;;  %v2518_v28 = vpack.c.bf16 %v2489_v6, %v2488_v18  ;;  %v2083_v18 = vld [vmem:[#allocation2 + $0x17] sm:$0xff] }
 0x236   : > { %9034 = vst [vmem:[#allocation20_spill] sm:$0xff] %v7403_v25  ;;  %9035 = vst [vmem:[#allocation21_spill] sm:$0xff] %v7405_v27 }
 0x237   : > { %v5663_v52 = vpop.f32.mrf.mxu1  ;;  %v5803_v37 = vpop.f32.mrf.mxu0 }
 0x239   : > { %v7407_v43 = vpop.f32.mrf.mxu1  ;;  %5765 = vmatmul.mubr.msk.bf16.gmra.mxu1 %vm968_vm1, %v1077_v38  ;;  %v7410_v47 = vpop.f32.mrf.mxu0  ;;  %5993 = vmatmul.mubr.msk.bf16.gmra.mxu0 %vm968_vm1, %v2517_v12 }
 0x23a   : > { %9036 = vst [vmem:[#allocation22_spill] sm:$0xff] %v7407_v43  ;;  %9037 = vst [vmem:[#allocation23_spill] sm:$0xff] %v7410_v47  ;;  %5768 = vmatprep.mubr.msk.bf16.mxu1 %vm6572_vm0, %v9011_v1  ;;  %5996 = vmatprep.mubr.msk.bf16.mxu0 %vm6572_vm0, %v9011_v1 }
 0x23b   : > { %v5666_v62 = vpop.f32.mrf.mxu1  ;;  %v5806_v0 = vpop.f32.mrf.mxu0 }
 0x23c   : > { %v2084_v62 = vld [vmem:[#allocation2 + $0x1f] sm:$0xff] }
 0x23d   : > { %v7417_v57 = vpop.f32.mrf.mxu1  ;;  %v7419_v59 = vpop.f32.mrf.mxu0  ;;  %v2491_v0 = vld [vmem:[#allocation2 + $0xe0] sm:$0xff] }
 0x23e   : > { %9038 = vst [vmem:[#allocation24_spill] sm:$0xff] %v7417_v57  ;;  %9039 = vst [vmem:[#allocation25_spill] sm:$0xff] %v7419_v59 }
 0x23f   : > { %v5667_v49 = vpop.f32.mrf.mxu1  ;;  %v5807_v13 = vpop.f32.mrf.mxu0 }
 0x240   : > { %v2490_v49 = vld [vmem:[#allocation2 + $0xd8] sm:$0xff] }
 0x241   : > { %v7421_v52 = vpop.f32.mrf.mxu1  ;;  %5769 = vmatmul.mubr.msk.bf16.gmra.mxu1 %vm968_vm1, %v1078_v60  ;;  %v7424_v37 = vpop.f32.mrf.mxu0  ;;  %5997 = vmatmul.mubr.msk.bf16.gmra.mxu0 %vm968_vm1, %v2518_v28  ;;  %v6512_v13 = vld [vmem:[%s9006_s4 + $0x58] sm:$0xff]   ;;  %v2519_v57 = vpack.c.bf16 %v2491_v0, %v2490_v49  ;;  %v2493_v0 = vld [vmem:[#allocation2 + $0xf0] sm:$0xff]  ;;  %v2492_v49 = vld [vmem:[#allocation2 + $0xe8] sm:$0xff] }
 0x242   : > { %9040 = vst [vmem:[#allocation26_spill] sm:$0xff] %v7421_v52  ;;  %9041 = vst [vmem:[#allocation27_spill] sm:$0xff] %v7424_v37  ;;  %5864 = vmatprep.mubr.msk.bf16.mxu1 %vm6572_vm0, %v9011_v1  ;;  %6000 = vmatprep.mubr.msk.bf16.mxu0 %vm6572_vm0, %v9011_v1  ;;  %v2124_v52 = vpack.c.bf16 %v2084_v62, %v2083_v18  ;;  %v2086_v62 = vld [vmem:[#allocation2 + $0x2f] sm:$0xff]  ;;  %v2085_v18 = vld [vmem:[#allocation2 + $0x27] sm:$0xff]  ;;  %v2520_v25 = vpack.c.bf16 %v2493_v0, %v2492_v49 }
 0x243   : > { %v5670_v38 = vpop.f32.mrf.mxu1  ;;  %v5810_v12 = vpop.f32.mrf.mxu0  ;;  %v2495_v0 = vld [vmem:[#allocation2 + $0x100] sm:$0xff] }
 0x244   : > { %v6515_v12 = vld [vmem:[%s9006_s4 + $0x50] sm:$0xff]  }
 0x245   : > { %v7431_v5 = vpop.f32.mrf.mxu1  ;;  %v7433_v6 = vpop.f32.mrf.mxu0 }
 0x246   : > { %9042 = vst [vmem:[#allocation28_spill] sm:$0xff] %v7431_v5  ;;  %9043 = vst [vmem:[#allocation29_spill] sm:$0xff] %v7433_v6  ;;  %v2125_v5 = vpack.c.bf16 %v2086_v62, %v2085_v18  ;;  %v2088_v62 = vld [vmem:[#allocation2 + $0x3f] sm:$0xff] }
 0x247   : > { %v5671_v60 = vpop.f32.mrf.mxu1  ;;  %v5811_v28 = vpop.f32.mrf.mxu0 }
 0x249   : > { %v7438_v43 = vpop.f32.mrf.mxu1  ;;  %v7440_v38 = vpop.f32.mrf.mxu0  ;;  %5865 = vmatmul.mubr.msk.bf16.vlgmr.msra.gmra.mxu1 %vm968_vm1, %v2124_v52  ;;  %6001 = vmatmul.mubr.msk.bf16.gmra.mxu0 %vm968_vm1, %v2519_v57 }
 0x24a   : > { %9044 = vst [vmem:[#allocation30_spill] sm:$0xff] %v7438_v43  ;;  %9045 = vst [vmem:[#allocation31_spill] sm:$0xff] %v7440_v38  ;;  %6037 = vmatpush3.bf16.msra.mxu1 %v6512_v13  ;;  %5868 = vmatprep.mubr.msk.bf16.mxu1 %vm6572_vm0, %v9011_v1 }
 0x24b   : > { %v5674_v60 = vpop.f32.mrf.mxu1  ;;  %v5814_v28 = vpop.f32.mrf.mxu0  ;;  %6004 = vmatprep.mubr.msk.bf16.mxu0 %vm6572_vm0, %v9011_v1  ;;  %6038 = vmatprep.subr.bf16.mxu1 %v9011_v1 }
 0x24d   : > { %v7452_v52 = vpop.f32.mrf.mxu1  ;;  %v7454_v57 = vpop.f32.mrf.mxu0 }
 0x24e   : > { %9046 = vst [vmem:[#allocation32_spill] sm:$0xff] %v7452_v52  ;;  %9047 = vst [vmem:[#allocation33_spill] sm:$0xff] %v7454_v57  ;;  %6039 = vmatpush3.bf16.msra.mxu1 %v6515_v12 }
 0x24f   : > { %v5675_v13 = vpop.f32.mrf.mxu1  ;;  %v5815_v43 = vpop.f32.mrf.mxu0  ;;  %6212 = vmatprep.subr.bf16.mxu1 %v9011_v1 }
 0x250   : > { %v2087_v13 = vld [vmem:[#allocation2 + $0x37] sm:$0xff] }
 0x251   : > { %v7457_v60 = vpop.f32.mrf.mxu1  ;;  %v7459_v28 = vpop.f32.mrf.mxu0  ;;  %5869 = vmatmul.mubr.msk.bf16.gmra.mxu1 %vm968_vm1, %v2125_v5  ;;  %6005 = vmatmul.mubr.msk.bf16.gmra.mxu0 %vm968_vm1, %v2520_v25  ;;  %v2126_v11 = vpack.c.bf16 %v2088_v62, %v2087_v13  ;;  %v2496_v13 = vld [vmem:[#allocation2 + $0x108] sm:$0xff] }
 0x252   : > { %9048 = vst [vmem:[#allocation34_spill] sm:$0xff] %v7457_v60  ;;  %9049 = vst [vmem:[#allocation35_spill] sm:$0xff] %v7459_v28  ;;  %5872 = vmatprep.mubr.msk.bf16.mxu1 %vm6572_vm0, %v9011_v1  ;;  %6008 = vmatprep.mubr.msk.bf16.mxu0 %vm6572_vm0, %v9011_v1  ;;  %v2494_v60 = vld [vmem:[#allocation2 + $0xf8] sm:$0xff] }
 0x253   : > { %v5678_v12 = vpop.f32.mrf.mxu1  ;;  %v5818_v43 = vpop.f32.mrf.mxu0  ;;  %v2521_v25 = vpack.c.bf16 %v2495_v0, %v2494_v60  ;;  %v2089_v0 = vld [vmem:[#allocation2 + $0x47] sm:$0xff] }
 0x255   : > { %v7467_v18 = vpop.f32.mrf.mxu1  ;;  %v7469_v49 = vpop.f32.mrf.mxu0 }
 0x256   : > { %9050 = vst [vmem:[#allocation36_spill] sm:$0xff] %v7467_v18  ;;  %9051 = vst [vmem:[#allocation37_spill] sm:$0xff] %v7469_v49 }
 0x257   : > { %v5679_v52 = vpop.f32.mrf.mxu1  ;;  %v5819_v5 = vpop.f32.mrf.mxu0 }
 0x258   : > { %v2090_v52 = vld [vmem:[#allocation2 + $0x4f] sm:$0xff] }
 0x259   : > { %v7471_v7 = vpop.f32.mrf.mxu1  ;;  %v7473_v35 = vpop.f32.mrf.mxu0  ;;  %5873 = vmatmul.mubr.msk.bf16.gmra.mxu1 %vm968_vm1, %v2126_v11  ;;  %6009 = vmatmul.mubr.msk.bf16.gmra.mxu0 %vm968_vm1, %v2521_v25  ;;  %v2497_v5 = vld [vmem:[#allocation2 + $0x110] sm:$0xff]  ;;  %v2127_v11 = vpack.c.bf16 %v2090_v52, %v2089_v0  ;;  %v2498_v0 = vld [vmem:[#allocation2 + $0x118] sm:$0xff] }
 0x25a   : > { %9052 = vst [vmem:[#allocation38_spill] sm:$0xff] %v7471_v7  ;;  %9053 = vst [vmem:[#allocation39_spill] sm:$0xff] %v7473_v35  ;;  %5876 = vmatprep.mubr.msk.bf16.mxu1 %vm6572_vm0, %v9011_v1  ;;  %6012 = vmatprep.mubr.msk.bf16.mxu0 %vm6572_vm0, %v9011_v1  ;;  %v2522_v19 = vpack.c.bf16 %v2497_v5, %v2496_v13 }
 0x25b   : > { %v5682_v12 = vpop.f32.mrf.mxu1  ;;  %v5822_v43 = vpop.f32.mrf.mxu0 }
 0x25d   : > { %v1422_v62 = vpop.f32.mrf.mxu1  ;;  %v7481_v60 = vpop.f32.mrf.mxu0 }
 0x25e   : > { %9054 = vst [vmem:[#allocation40_spill] sm:$0xff] %v7481_v60  ;;  %v2091_v62 = vld [vmem:[#allocation2 + $0x57] sm:$0xff] }
 0x25f   : > { %v5683_v7 = vpop.f32.mrf.mxu1  ;;  %v5823_v18 = vpop.f32.mrf.mxu0 }
 0x260   : > { %v2092_v7 = vld [vmem:[#allocation2 + $0x5f] sm:$0xff] }
 0x261   : > { %v7483_v25 = vpop.f32.mrf.mxu1  ;;  %v7485_v10 = vpop.f32.mrf.mxu0  ;;  %5877 = vmatmul.mubr.msk.bf16.gmra.mxu1 %vm968_vm1, %v2127_v11  ;;  %6013 = vmatmul.mubr.msk.bf16.gmra.mxu0 %vm968_vm1, %v2522_v19  ;;  %v2499_v18 = vld [vmem:[#allocation2 + $0x120] sm:$0xff] }
 0x262   : > { %9055 = vst [vmem:[#allocation41_spill] sm:$0xff] %v7485_v10  ;;  %5880 = vmatprep.mubr.msk.bf16.mxu1 %vm6572_vm0, %v9011_v1  ;;  %6016 = vmatprep.mubr.msk.bf16.mxu0 %vm6572_vm0, %v9011_v1  ;;  %v2128_v10 = vpack.c.bf16 %v2092_v7, %v2091_v62  ;;  %v2523_v19 = vpack.c.bf16 %v2499_v18, %v2498_v0  ;;  %v2093_v62 = vld [vmem:[#allocation2 + $0x67] sm:$0xff] }
 0x263   : > { %v5690_v12 = vpop.f32.mrf.mxu1  ;;  %v5826_v43 = vpop.f32.mrf.mxu0  ;;  %v2500_v0 = vld [vmem:[#allocation2 + $0x128] sm:$0xff] }
 0x265   : > { %v7493_v52 = vpop.f32.mrf.mxu1  ;;  %v7495_v5 = vpop.f32.mrf.mxu0 }
 0x266   : > { %9056 = vst [vmem:[#allocation42_spill] sm:$0xff] %v7495_v5 }
 0x267   : > { %v5691_v13 = vpop.f32.mrf.mxu1  ;;  %v5827_v11 = vpop.f32.mrf.mxu0 }
 0x268   : > { %v2094_v13 = vld [vmem:[#allocation2 + $0x6f] sm:$0xff] }
 0x269   : > { %v7497_v56 = vpop.f32.mrf.mxu1  ;;  %v7499_v60 = vpop.f32.mrf.mxu0  ;;  %5881 = vmatmul.mubr.msk.bf16.gmra.mxu1 %vm968_vm1, %v2128_v10  ;;  %6017 = vmatmul.mubr.msk.bf16.gmra.mxu0 %vm968_vm1, %v2523_v19  ;;  %v2501_v11 = vld [vmem:[#allocation2 + $0x130] sm:$0xff]  ;;  %v2129_v5 = vpack.c.bf16 %v2094_v13, %v2093_v62 }
 0x26a   : > { %9057 = vst [vmem:[#allocation43_spill] sm:$0xff] %v7499_v60  ;;  %5884 = vmatprep.mubr.msk.bf16.mxu1 %vm6572_vm0, %v9011_v1  ;;  %6020 = vmatprep.mubr.msk.bf16.mxu0 %vm6572_vm0, %v9011_v1  ;;  %v2524_v19 = vpack.c.bf16 %v2501_v11, %v2500_v0  ;;  %v2095_v62 = vld [vmem:[#allocation2 + $0x77] sm:$0xff] }
 0x26b   : > { %v5694_v12 = vpop.f32.mrf.mxu1  ;;  %v5830_v43 = vpop.f32.mrf.mxu0  ;;  %v2502_v0 = vld [vmem:[#allocation2 + $0x138] sm:$0xff] }
 0x26d   : > { %v7507_v7 = vpop.f32.mrf.mxu1  ;;  %v7509_v18 = vpop.f32.mrf.mxu0 }
 0x26e   : > { %9058 = vst [vmem:[#allocation44_spill] sm:$0xff] %v7509_v18 }
 0x26f   : > { %v5695_v60 = vpop.f32.mrf.mxu1  ;;  %v5831_v10 = vpop.f32.mrf.mxu0 }
 0x270   : > { %v2096_v60 = vld [vmem:[#allocation2 + $0x7f] sm:$0xff] }
 0x271   : > { %v7511_v51 = vpop.f32.mrf.mxu1  ;;  %v7513_v35 = vpop.f32.mrf.mxu0  ;;  %5885 = vmatmul.mubr.msk.bf16.gmra.mxu1 %vm968_vm1, %v2129_v5  ;;  %6021 = vmatmul.mubr.msk.bf16.gmra.mxu0 %vm968_vm1, %v2524_v19  ;;  %v2503_v10 = vld [vmem:[#allocation2 + $0x140] sm:$0xff]  ;;  %v2130_v18 = vpack.c.bf16 %v2096_v60, %v2095_v62 }
 0x272   : > { %9059 = vst [vmem:[#allocation45_spill] sm:$0xff] %v7513_v35  ;;  %5888 = vmatprep.mubr.msk.bf16.mxu1 %vm6572_vm0, %v9011_v1  ;;  %6024 = vmatprep.mubr.msk.bf16.mxu0 %vm6572_vm0, %v9011_v1  ;;  %v2525_v19 = vpack.c.bf16 %v2503_v10, %v2502_v0  ;;  %v2097_v62 = vld [vmem:[#allocation2 + $0x87] sm:$0xff] }
 0x273   : > { %v5698_v12 = vpop.f32.mrf.mxu1  ;;  %v5834_v43 = vpop.f32.mrf.mxu0  ;;  %v2504_v0 = vld [vmem:[#allocation2 + $0x148] sm:$0xff] }
 0x275   : > { %v7521_v13 = vpop.f32.mrf.mxu1  ;;  %v7523_v11 = vpop.f32.mrf.mxu0 }
 0x276   : > { %9060 = vst [vmem:[#allocation46_spill] sm:$0xff] %v7523_v11 }
 0x277   : > { %v5699_v35 = vpop.f32.mrf.mxu1  ;;  %v5835_v5 = vpop.f32.mrf.mxu0 }
 0x278   : > { %v2098_v35 = vld [vmem:[#allocation2 + $0x8f] sm:$0xff] }
 0x279   : > { %v7525_v29 = vpop.f32.mrf.mxu1  ;;  %v7527_v49 = vpop.f32.mrf.mxu0  ;;  %5889 = vmatmul.mubr.msk.bf16.gmra.mxu1 %vm968_vm1, %v2130_v18  ;;  %6025 = vmatmul.mubr.msk.bf16.gmra.mxu0 %vm968_vm1, %v2525_v19  ;;  %v2505_v5 = vld [vmem:[#allocation2 + $0x150] sm:$0xff]  ;;  %v2131_v11 = vpack.c.bf16 %v2098_v35, %v2097_v62 }
 0x27a   : > { %9061 = vst [vmem:[#allocation47_spill] sm:$0xff] %v7527_v49  ;;  %5892 = vmatprep.mubr.msk.bf16.mxu1 %vm6572_vm0, %v9011_v1  ;;  %6028 = vmatprep.mubr.msk.bf16.mxu0 %vm6572_vm0, %v9011_v1  ;;  %v2526_v19 = vpack.c.bf16 %v2505_v5, %v2504_v0  ;;  %v2099_v62 = vld [vmem:[#allocation2 + $0x97] sm:$0xff] }
 0x27b   : > { %v5702_v12 = vpop.f32.mrf.mxu1  ;;  %v5838_v43 = vpop.f32.mrf.mxu0 }
 0x27d   : > { %v7535_v60 = vpop.f32.mrf.mxu1  ;;  %v7537_v10 = vpop.f32.mrf.mxu0 }
 0x27e   : > { %9062 = vst [vmem:[#allocation48_spill] sm:$0xff] %v7537_v10 }
 0x27f   : > { %v5703_v49 = vpop.f32.mrf.mxu1  ;;  %v5839_v18 = vpop.f32.mrf.mxu0 }
 0x280   : > { %v2100_v49 = vld [vmem:[#allocation2 + $0x9f] sm:$0xff]  ;;  %v2506_v18 = vld [vmem:[#allocation2 + $0x158] sm:$0xf] }
 0x281   : > { %v7539_v24 = vpop.f32.mrf.mxu1  ;;  %v7541_v28 = vpop.f32.mrf.mxu0  ;;  %5893 = vmatmul.mubr.msk.bf16.gmra.mxu1 %vm968_vm1, %v2131_v11  ;;  %6029 = vmatmul.mubr.msk.bf16.gmra.mxu0 %vm968_vm1, %v2526_v19  ;;  %v2132_v11 = vpack.c.bf16 %v2100_v49, %v2099_v62  ;;  %v2527_v10 = vpack.c.bf16 %v2506_v18, %v2506_v18  ;;  %v2101_v62 = vld [vmem:[#allocation2 + $0xa7] sm:$0xff] }
 0x282   : > { %9063 = vst [vmem:[#allocation49_spill] sm:$0xff] %v7541_v28  ;;  %5896 = vmatprep.mubr.msk.bf16.mxu1 %vm6572_vm0, %v9011_v1  ;;  %6032 = vmatprep.mubr.msk.bf16.mxu0 %vm6572_vm0, %v9011_v1 }
 0x283   : > { %v5706_v12 = vpop.f32.mrf.mxu1  ;;  %v5842_v43 = vpop.f32.mrf.mxu0 }
 0x285   : > { %v7549_v35 = vpop.f32.mrf.mxu1  ;;  %v7551_v5 = vpop.f32.mrf.mxu0 }
 0x286   : > { %9064 = vst [vmem:[#allocation50_spill] sm:$0xff] %v7551_v5 }
 0x287   : > { %v5707_v0 = vpop.f32.mrf.mxu1  ;;  %v5843_v28 = vpop.f32.mrf.mxu0 }
 0x288   : > { %v2102_v0 = vld [vmem:[#allocation2 + $0xaf] sm:$0xff] }
 0x289   : > { %v7553_v19 = vpop.f32.mrf.mxu1  ;;  %v7555_v14 = vpop.f32.mrf.mxu0  ;;  %5897 = vmatmul.mubr.msk.bf16.gmra.mxu1 %vm968_vm1, %v2132_v11  ;;  %6033 = vmatmul.mubr.msk.bf16.gmra.mxu0 %vm968_vm1, %v2527_v10  ;;  %v3233_v28 = vld [vmem:[#allocation2 + $0x31] sm:$0xff]  ;;  %v2133_v57 = vpack.c.bf16 %v2102_v0, %v2101_v62  ;;  %v2104_v0 = vld [vmem:[#allocation2 + $0xbf] sm:$0xff] }
 0x28a   : > { %9065 = vst [vmem:[#allocation51_spill] sm:$0xff] %v7555_v14  ;;  %5900 = vmatprep.mubr.msk.bf16.mxu1 %vm6572_vm0, %v9011_v1  ;;  %6128 = vmatprep.mubr.msk.bf16.mxu0 %vm6572_vm0, %v9011_v1  ;;  %v3232_v14 = vld [vmem:[#allocation2 + $0x29] sm:$0xff] }
 0x28b   : > { %v5710_v12 = vpop.f32.mrf.mxu1  ;;  %v5846_v43 = vpop.f32.mrf.mxu0  ;;  %v7567_v10 = vpack.c.bf16 %v3233_v28, %v3232_v14  ;;  %v3235_v28 = vld [vmem:[#allocation2 + $0x41] sm:$0xff] }
 0x28c   : > { %v9068_v43 = vmov 0.0  }
 0x28d   : > { %v7563_v49 = vpop.f32.mrf.mxu1  ;;  %v7565_v18 = vpop.f32.mrf.mxu0 }
 0x28e   : > { %9066 = vst [vmem:[#allocation52_spill] sm:$0xff] %v7565_v18 }
 0x28f   : > { %v5711_v5 = vpop.f32.mrf.mxu1  ;;  %v5847_v11 = vpop.f32.mrf.mxu0 }
 0x291   : > { %v7572_v1 = vpop.f32.mrf.mxu1  ;;  %v7574_v12 = vpop.f32.mrf.mxu0  ;;  %5901 = vmatmul.mubr.msk.bf16.gmra.mxu1 %vm968_vm1, %v2133_v57  ;;  %6129 = vmatmul.mubr.msk.bf16.vlgmr.msra.gmra.mxu0 %vm968_vm1, %v7567_v10  ;;  %v2103_v57 = vld [vmem:[#allocation2 + $0xb7] sm:$0xff] }
 0x292   : > { %9067 = vst [vmem:[#allocation53_spill] sm:$0xff] %v7574_v12  ;;  %5904 = vmatprep.mubr.msk.bf16.mxu1 %vm6572_vm0, %v9068_v43  ;;  %6132 = vmatprep.mubr.msk.bf16.mxu0 %vm6572_vm0, %v9068_v43  ;;  %v3234_v12 = vld [vmem:[#allocation2 + $0x39] sm:$0xff]  ;;  %v2134_v61 = vpack.c.bf16 %v2104_v0, %v2103_v57  ;;  %v3236_v57 = vld [vmem:[#allocation2 + $0x49] sm:$0xff] }
 0x293   : > { %v5714_v14 = vpop.f32.mrf.mxu1  ;;  %v5850_v5 = vpop.f32.mrf.mxu0  ;;  %6301 = vmatpush3.bf16.msra.mxu0 %v6517_v8  ;;  %v7588_v6 = vpack.c.bf16 %v3235_v28, %v3234_v12  ;;  %v3237_v12 = vld [vmem:[#allocation2 + $0x51] sm:$0xff]  ;;  %v2105_v28 = vld [vmem:[#allocation2 + $0xc7] sm:$0xff] }
 0x294   : > { %6302 = vmatprep.subr.bf16.mxu0 %v9068_v43  ;;  %v7605_v37 = vpack.c.bf16 %v3237_v12, %v3236_v57  ;;  %v2107_v57 = vld [vmem:[#allocation2 + $0xd7] sm:$0xff] }
 0x295   : > { %v7584_v62 = vpop.f32.mrf.mxu1  ;;  %v7586_v11 = vpop.f32.mrf.mxu0 }
 0x296   : > { %9069 = vst [vmem:[#allocation54_spill] sm:$0xff] %v7586_v11 }
 0x297   : > { %v5715_v18 = vpop.f32.mrf.mxu1  ;;  %v5851_v38 = vpop.f32.mrf.mxu0 }
 0x298   : > { %v2106_v18 = vld [vmem:[#allocation2 + $0xcf] sm:$0xff] }
 0x299   : > { %v7590_v3 = vpop.f32.mrf.mxu1  ;;  %v7592_v14 = vpop.f32.mrf.mxu0  ;;  %5905 = vmatmul.mubr.msk.bf16.gmra.mxu1 %vm968_vm1, %v2134_v61  ;;  %6133 = vmatmul.mubr.msk.bf16.gmra.mxu0 %vm968_vm1, %v7588_v6  ;;  %v2135_v11 = vpack.c.bf16 %v2106_v18, %v2105_v28  ;;  %v3239_v18 = vld [vmem:[#allocation2 + $0x61] sm:$0xff] }
 0x29a   : > { %9070 = vst [vmem:[#allocation55_spill] sm:$0xff] %v7590_v3  ;;  %9071 = vst [vmem:[#allocation56_spill] sm:$0xff] %v7592_v14  ;;  %5908 = vmatprep.mubr.msk.bf16.mxu1 %vm6572_vm0, %v9068_v43  ;;  %6136 = vmatprep.mubr.msk.bf16.mxu0 %vm6572_vm0, %v9068_v43 }
 0x29b   : > { %v5718_v8 = vpop.f32.mrf.mxu1  ;;  %v5854_v38 = vpop.f32.mrf.mxu0 }
 0x29c   : > { %v2108_v38 = vld [vmem:[#allocation2 + $0xdf] sm:$0xff] }
 0x29d   : > { %v7601_v5 = vpop.f32.mrf.mxu1  ;;  %v7603_v0 = vpop.f32.mrf.mxu0 }
 0x29e   : > { %9072 = vst [vmem:[#allocation57_spill] sm:$0xff] %v7601_v5  ;;  %9073 = vst [vmem:[#allocation58_spill] sm:$0xff] %v7603_v0  ;;  %v2136_v0 = vpack.c.bf16 %v2108_v38, %v2107_v57  ;;  %v3241_v38 = vld [vmem:[#allocation2 + $0x71] sm:$0xff]  ;;  %v3240_v57 = vld [vmem:[#allocation2 + $0x69] sm:$0xff] }
 0x29f   : > { %v5719_v61 = vpop.f32.mrf.mxu1  ;;  %v5855_v14 = vpop.f32.mrf.mxu0 }
 0x2a0   : > { %v3238_v61 = vld [vmem:[#allocation2 + $0x59] sm:$0xff] }
 0x2a1   : > { %v7607_v30 = vpop.f32.mrf.mxu1  ;;  %v7609_v59 = vpop.f32.mrf.mxu0  ;;  %5909 = vmatmul.mubr.msk.bf16.gmra.mxu1 %vm968_vm1, %v2135_v11  ;;  %6137 = vmatmul.mubr.msk.bf16.gmra.mxu0 %vm968_vm1, %v7605_v37 }
 0x2a2   : > { %9074 = vst [vmem:[#allocation59_spill] sm:$0xff] %v7607_v30  ;;  %9075 = vst [vmem:[#allocation60_spill] sm:$0xff] %v7609_v59  ;;  %5912 = vmatprep.mubr.msk.bf16.mxu1 %vm6572_vm0, %v9068_v43  ;;  %6140 = vmatprep.mubr.msk.bf16.mxu0 %vm6572_vm0, %v9068_v43  ;;  %v7620_v30 = vpack.c.bf16 %v3239_v18, %v3238_v61 }
 0x2a3   : > { %v5722_v8 = vpop.f32.mrf.mxu1  ;;  %v5858_v14 = vpop.f32.mrf.mxu0 }
 0x2a4   : > { %v2110_v14 = vld [vmem:[#allocation2 + $0xef] sm:$0xff] }
 0x2a5   : > { %v7618_v12 = vpop.f32.mrf.mxu1  ;;  %v2039_v28 = vpop.f32.mrf.mxu0 }
 0x2a6   : > { %9076 = vst [vmem:[#allocation61_spill] sm:$0xff] %v7618_v12 }
 0x2a7   : > { %v5723_v59 = vpop.f32.mrf.mxu1  ;;  %v5859_v11 = vpop.f32.mrf.mxu0 }
 0x2a9   : > { %v7622_v33 = vpop.f32.mrf.mxu1  ;;  %5913 = vmatmul.mubr.msk.bf16.gmra.mxu1 %vm968_vm1, %v2136_v0  ;;  %v7625_v47 = vpop.f32.mrf.mxu0  ;;  %6141 = vmatmul.mubr.msk.bf16.gmra.mxu0 %vm968_vm1, %v7620_v30  ;;  %v2109_v0 = vld [vmem:[#allocation2 + $0xe7] sm:$0xff] }
 0x2aa   : > { %9077 = vst [vmem:[#allocation62_spill] sm:$0xff] %v7622_v33  ;;  %9078 = vst [vmem:[#allocation63_spill] sm:$0xff] %v7625_v47  ;;  %5916 = vmatprep.mubr.msk.bf16.mxu1 %vm6572_vm0, %v9068_v43  ;;  %6144 = vmatprep.mubr.msk.bf16.mxu0 %vm6572_vm0, %v9068_v43  ;;  %v2137_v47 = vpack.c.bf16 %v2110_v14, %v2109_v0  ;;  %v7637_v33 = vpack.c.bf16 %v3241_v38, %v3240_v57  ;;  %v2112_v14 = vld [vmem:[#allocation2 + $0xff] sm:$0xff] }
 0x2ab   : > { %v5726_v59 = vpop.f32.mrf.mxu1  ;;  %v5954_v8 = vpop.f32.mrf.mxu0  ;;  %v3243_v38 = vld [vmem:[#allocation2 + $0x81] sm:$0xff] }
 0x2ad   : > { %v7633_v18 = vpop.f32.mrf.mxu1  ;;  %v7635_v28 = vpop.f32.mrf.mxu0 }
 0x2ae   : > { %9079 = vst [vmem:[#allocation64_spill] sm:$0xff] %v7633_v18  ;;  %9080 = vst [vmem:[#allocation65_spill] sm:$0xff] %v7635_v28 }
 0x2af   : > { %v5727_v61 = vpop.f32.mrf.mxu1  ;;  %v5955_v11 = vpop.f32.mrf.mxu0 }
 0x2b0   : > { %v3242_v61 = vld [vmem:[#allocation2 + $0x79] sm:$0xff] }
 0x2b1   : > { %v7639_v12 = vpop.f32.mrf.mxu1  ;;  %5917 = vmatmul.mubr.msk.bf16.gmra.mxu1 %vm968_vm1, %v2137_v47  ;;  %v7642_v5 = vpop.f32.mrf.mxu0  ;;  %6145 = vmatmul.mubr.msk.bf16.gmra.mxu0 %vm968_vm1, %v7637_v33  ;;  %v2111_v47 = vld [vmem:[#allocation2 + $0xf7] sm:$0xff]  ;;  %v6518_v11 = vld [vmem:[%s9006_s4 + $0x80] sm:$0xff]   ;;  %v7657_v18 = vpack.c.bf16 %v3243_v38, %v3242_v61 }
 0x2b2   : > { %9081 = vst [vmem:[#allocation66_spill] sm:$0xff] %v7639_v12  ;;  %9082 = vst [vmem:[#allocation67_spill] sm:$0xff] %v7642_v5  ;;  %5920 = vmatprep.mubr.msk.bf16.mxu1 %vm6572_vm0, %v9068_v43  ;;  %6148 = vmatprep.mubr.msk.bf16.mxu0 %vm6572_vm0, %v9068_v43  ;;  %v2138_v12 = vpack.c.bf16 %v2112_v14, %v2111_v47  ;;  %v2114_v14 = vld [vmem:[#allocation2 + $0x10f] sm:$0xff] }
 0x2b3   : > { %v5730_v59 = vpop.f32.mrf.mxu1  ;;  %v5958_v8 = vpop.f32.mrf.mxu0  ;;  %6303 = vmatpush3.bf16.msra.mxu0 %v6518_v11  ;;  %v3245_v38 = vld [vmem:[#allocation2 + $0x91] sm:$0xff]  ;;  %v3244_v11 = vld [vmem:[#allocation2 + $0x89] sm:$0xff] }
 0x2b5   : > { %v7650_v0 = vpop.f32.mrf.mxu1  ;;  %v7652_v57 = vpop.f32.mrf.mxu0 }
 0x2b6   : > { %9083 = vst [vmem:[#allocation68_spill] sm:$0xff] %v7650_v0  ;;  %9084 = vst [vmem:[#allocation69_spill] sm:$0xff] %v7652_v57  ;;  %v7674_v0 = vpack.c.bf16 %v3245_v38, %v3244_v11 }
 0x2b7   : > { %v5731_v5 = vpop.f32.mrf.mxu1  ;;  %v5959_v28 = vpop.f32.mrf.mxu0 }
 0x2b9   : > { %v7659_v59 = vpop.f32.mrf.mxu1  ;;  %5921 = vmatmul.mubr.msk.bf16.gmra.mxu1 %vm968_vm1, %v2138_v12  ;;  %v7662_v8 = vpop.f32.mrf.mxu0  ;;  %6149 = vmatmul.mubr.msk.bf16.gmra.mxu0 %vm968_vm1, %v7657_v18  ;;  %v2113_v12 = vld [vmem:[#allocation2 + $0x107] sm:$0xff] }
 0x2ba   : > { %9085 = vst [vmem:[#allocation70_spill] sm:$0xff] %v7659_v59  ;;  %9086 = vst [vmem:[#allocation71_spill] sm:$0xff] %v7662_v8  ;;  %5924 = vmatprep.mubr.msk.bf16.mxu1 %vm6572_vm0, %v9068_v43  ;;  %6152 = vmatprep.mubr.msk.bf16.mxu0 %vm6572_vm0, %v9068_v43  ;;  %v2139_v59 = vpack.c.bf16 %v2114_v14, %v2113_v12  ;;  %v3246_v12 = vld [vmem:[#allocation2 + $0x99] sm:$0xff] }
 0x2bb   : > { %v5734_v5 = vpop.f32.mrf.mxu1  ;;  %v5962_v28 = vpop.f32.mrf.mxu0 }
 0x2bc   : > { %v2116_v5 = vld [vmem:[#allocation2 + $0x11f] sm:$0xff] }
 0x2bd   : > { %v7670_v47 = vpop.f32.mrf.mxu1  ;;  %v7672_v61 = vpop.f32.mrf.mxu0  ;;  %v3247_v28 = vld [vmem:[#allocation2 + $0xa1] sm:$0xff] }
 0x2be   : > { %9087 = vst [vmem:[#allocation72_spill] sm:$0xff] %v7670_v47  ;;  %9088 = vst [vmem:[#allocation73_spill] sm:$0xff] %v7672_v61 }
 0x2bf   : > { %v5735_v8 = vpop.f32.mrf.mxu1  ;;  %v5963_v57 = vpop.f32.mrf.mxu0 }
 0x2c1   : > { %v7676_v26 = vpop.f32.mrf.mxu1  ;;  %5925 = vmatmul.mubr.msk.bf16.gmra.mxu1 %vm968_vm1, %v2139_v59  ;;  %v7679_v27 = vpop.f32.mrf.mxu0  ;;  %6153 = vmatmul.mubr.msk.bf16.gmra.mxu0 %vm968_vm1, %v7674_v0  ;;  %v2115_v59 = vld [vmem:[#allocation2 + $0x117] sm:$0xff] }
 0x2c2   : > { %9089 = vst [vmem:[#allocation74_spill] sm:$0xff] %v7676_v26  ;;  %9090 = vst [vmem:[#allocation75_spill] sm:$0xff] %v7679_v27  ;;  %5928 = vmatprep.mubr.msk.bf16.mxu1 %vm6572_vm0, %v9068_v43  ;;  %6156 = vmatprep.mubr.msk.bf16.mxu0 %vm6572_vm0, %v9068_v43  ;;  %v2140_v61 = vpack.c.bf16 %v2116_v5, %v2115_v59  ;;  %v7691_v26 = vpack.c.bf16 %v3247_v28, %v3246_v12  ;;  %v3249_v5 = vld [vmem:[#allocation2 + $0xb1] sm:$0xff]  ;;  %v3248_v12 = vld [vmem:[#allocation2 + $0xa9] sm:$0xff] }
 0x2c3   : > { %v5738_v8 = vpop.f32.mrf.mxu1  ;;  %v5966_v57 = vpop.f32.mrf.mxu0 }
 0x2c4   : > { %v2118_v57 = vld [vmem:[#allocation2 + $0x12f] sm:$0xff] }
 0x2c5   : > { %v7687_v14 = vpop.f32.mrf.mxu1  ;;  %v7689_v38 = vpop.f32.mrf.mxu0 }
 0x2c6   : > { %9091 = vst [vmem:[#allocation76_spill] sm:$0xff] %v7687_v14  ;;  %9092 = vst [vmem:[#allocation77_spill] sm:$0xff] %v7689_v38 }
 0x2c7   : > { %v5739_v11 = vpop.f32.mrf.mxu1  ;;  %v5967_v27 = vpop.f32.mrf.mxu0 }
 0x2c9   : > { %v7693_v47 = vpop.f32.mrf.mxu1  ;;  %5929 = vmatmul.mubr.msk.bf16.gmra.mxu1 %vm968_vm1, %v2140_v61  ;;  %v7696_v3 = vpop.f32.mrf.mxu0  ;;  %6157 = vmatmul.mubr.msk.bf16.gmra.mxu0 %vm968_vm1, %v7691_v26  ;;  %v2117_v61 = vld [vmem:[#allocation2 + $0x127] sm:$0xff] }
 0x2ca   : > { %9093 = vst [vmem:[#allocation78_spill] sm:$0xff] %v7693_v47  ;;  %9094 = vst [vmem:[#allocation79_spill] sm:$0xff] %v7696_v3  ;;  %5932 = vmatprep.mubr.msk.bf16.mxu1 %vm6572_vm0, %v9068_v43  ;;  %6160 = vmatprep.mubr.msk.bf16.mxu0 %vm6572_vm0, %v9068_v43  ;;  %v2141_v38 = vpack.c.bf16 %v2118_v57, %v2117_v61  ;;  %v7708_v47 = vpack.c.bf16 %v3249_v5, %v3248_v12  ;;  %v3251_v57 = vld [vmem:[#allocation2 + $0xc1] sm:$0xff]  ;;  %v3250_v12 = vld [vmem:[#allocation2 + $0xb9] sm:$0xff] }
 0x2cb   : > { %v5742_v8 = vpop.f32.mrf.mxu1  ;;  %v5970_v27 = vpop.f32.mrf.mxu0 }
 0x2cc   : > { %9097 = vst [vmem:[#allocation82_spill] sm:$0xff] %v7708_v47  ;;  %v2120_v27 = vld [vmem:[#allocation2 + $0x13f] sm:$0xff] }
 0x2cd   : > { %v7704_v28 = vpop.f32.mrf.mxu1  ;;  %v7706_v59 = vpop.f32.mrf.mxu0 }
 0x2ce   : > { %9095 = vst [vmem:[#allocation80_spill] sm:$0xff] %v7704_v28  ;;  %9096 = vst [vmem:[#allocation81_spill] sm:$0xff] %v7706_v59 }
 0x2cf   : > { %v5743_v11 = vpop.f32.mrf.mxu1  ;;  %v5971_v3 = vpop.f32.mrf.mxu0 }
 0x2d1   : > { %v7710_v14 = vpop.f32.mrf.mxu1  ;;  %5933 = vmatmul.mubr.msk.bf16.gmra.mxu1 %vm968_vm1, %v2141_v38  ;;  %v7713_v20 = vpop.f32.mrf.mxu0  ;;  %6161 = vmatmul.mubr.msk.bf16.gmra.mxu0 %vm968_vm1, %v7708_v47  ;;  %v2119_v38 = vld [vmem:[#allocation2 + $0x137] sm:$0xff] }
 0x2d2   : > { %9098 = vst [vmem:[#allocation83_spill] sm:$0xff] %v7710_v14  ;;  %9099 = vst [vmem:[#allocation84_spill] sm:$0xff] %v7713_v20  ;;  %5936 = vmatprep.mubr.msk.bf16.mxu1 %vm6572_vm0, %v9068_v43  ;;  %6164 = vmatprep.mubr.msk.bf16.mxu0 %vm6572_vm0, %v9068_v43  ;;  %v2142_v59 = vpack.c.bf16 %v2120_v27, %v2119_v38  ;;  %v7725_v14 = vpack.c.bf16 %v3251_v57, %v3250_v12  ;;  %v3253_v27 = vld [vmem:[#allocation2 + $0xd1] sm:$0xff]  ;;  %v3252_v12 = vld [vmem:[#allocation2 + $0xc9] sm:$0xff] }
 0x2d3   : > { %v5746_v8 = vpop.f32.mrf.mxu1  ;;  %v5974_v3 = vpop.f32.mrf.mxu0 }
 0x2d4   : > { %9102 = vst [vmem:[#allocation87_spill] sm:$0xff] %v7725_v14  ;;  %v2122_v3 = vld [vmem:[#allocation2 + $0x14f] sm:$0xff] }
 0x2d5   : > { %v7721_v5 = vpop.f32.mrf.mxu1  ;;  %v7723_v61 = vpop.f32.mrf.mxu0 }
 0x2d6   : > { %9100 = vst [vmem:[#allocation85_spill] sm:$0xff] %v7721_v5  ;;  %9101 = vst [vmem:[#allocation86_spill] sm:$0xff] %v7723_v61 }
 0x2d7   : > { %v5747_v11 = vpop.f32.mrf.mxu1  ;;  %v5975_v20 = vpop.f32.mrf.mxu0 }
 0x2d9   : > { %v7727_v28 = vpop.f32.mrf.mxu1  ;;  %5937 = vmatmul.mubr.msk.bf16.gmra.mxu1 %vm968_vm1, %v2142_v59  ;;  %v7730_v47 = vpop.f32.mrf.mxu0  ;;  %6165 = vmatmul.mubr.msk.bf16.gmra.mxu0 %vm968_vm1, %v7725_v14  ;;  %v2121_v59 = vld [vmem:[#allocation2 + $0x147] sm:$0xff] }
 0x2da   : > { %9103 = vst [vmem:[#allocation88_spill] sm:$0xff] %v7727_v28  ;;  %9104 = vst [vmem:[#allocation89_spill] sm:$0xff] %v7730_v47  ;;  %5940 = vmatprep.mubr.msk.bf16.mxu1 %vm6572_vm0, %v9068_v43  ;;  %6168 = vmatprep.mubr.msk.bf16.mxu0 %vm6572_vm0, %v9068_v43  ;;  %v2143_v61 = vpack.c.bf16 %v2122_v3, %v2121_v59  ;;  %v7742_v28 = vpack.c.bf16 %v3253_v27, %v3252_v12  ;;  %v3255_v3 = vld [vmem:[#allocation2 + $0xe1] sm:$0xff] }
 0x2db   : > { %v5750_v8 = vpop.f32.mrf.mxu1  ;;  %v5978_v20 = vpop.f32.mrf.mxu0 }
 0x2dc   : > { %9107 = vst [vmem:[#allocation92_spill] sm:$0xff] %v7742_v28  ;;  %v2123_v20 = vld [vmem:[#allocation2 + $0x157] sm:$0xf] }
 0x2dd   : > { %v7738_v57 = vpop.f32.mrf.mxu1  ;;  %v7740_v38 = vpop.f32.mrf.mxu0 }
 0x2de   : > { %9105 = vst [vmem:[#allocation90_spill] sm:$0xff] %v7738_v57  ;;  %9106 = vst [vmem:[#allocation91_spill] sm:$0xff] %v7740_v38 }
 0x2df   : > { %v5751_v11 = vpop.f32.mrf.mxu1  ;;  %v5979_v47 = vpop.f32.mrf.mxu0 }
 0x2e1   : > { %v7744_v5 = vpop.f32.mrf.mxu1  ;;  %5941 = vmatmul.mubr.msk.bf16.gmra.mxu1 %vm968_vm1, %v2143_v61  ;;  %v7747_v14 = vpop.f32.mrf.mxu0  ;;  %6169 = vmatmul.mubr.msk.bf16.gmra.mxu0 %vm968_vm1, %v7742_v28  ;;  %v3254_v61 = vld [vmem:[#allocation2 + $0xd9] sm:$0xff] }
 0x2e2   : > { %9108 = vst [vmem:[#allocation93_spill] sm:$0xff] %v7744_v5  ;;  %9109 = vst [vmem:[#allocation94_spill] sm:$0xff] %v7747_v14  ;;  %5944 = vmatprep.mubr.msk.bf16.mxu1 %vm6572_vm0, %v9068_v43  ;;  %6172 = vmatprep.mubr.msk.bf16.mxu0 %vm6572_vm0, %v9068_v43  ;;  %v2144_v14 = vpack.c.bf16 %v2123_v20, %v2123_v20  ;;  %v7759_v38 = vpack.c.bf16 %v3255_v3, %v3254_v61  ;;  %v2850_v20 = vld [vmem:[#allocation2 + $0x21] sm:$0xff]  ;;  %v3257_v3 = vld [vmem:[#allocation2 + $0xf1] sm:$0xff] }
 0x2e3   : > { %v5754_v8 = vpop.f32.mrf.mxu1  ;;  %v5982_v47 = vpop.f32.mrf.mxu0 }
 0x2e4   : > { %9112 = vst [vmem:[#allocation97_spill] sm:$0xff] %v7759_v38 }
 0x2e5   : > { %v7755_v27 = vpop.f32.mrf.mxu1  ;;  %v7757_v59 = vpop.f32.mrf.mxu0 }
 0x2e6   : > { %9110 = vst [vmem:[#allocation95_spill] sm:$0xff] %v7755_v27  ;;  %9111 = vst [vmem:[#allocation96_spill] sm:$0xff] %v7757_v59 }
 0x2e7   : > { %v5755_v12 = vpop.f32.mrf.mxu1  ;;  %v5983_v11 = vpop.f32.mrf.mxu0 }
 0x2e8   : > { %v3256_v11 = vld [vmem:[#allocation2 + $0xe9] sm:$0xff] }
 0x2e9   : > { %v7761_v5 = vpop.f32.mrf.mxu1  ;;  %5945 = vmatmul.mubr.msk.bf16.gmra.mxu1 %vm968_vm1, %v2144_v14  ;;  %v7764_v57 = vpop.f32.mrf.mxu0  ;;  %6173 = vmatmul.mubr.msk.bf16.gmra.mxu0 %vm968_vm1, %v7759_v38  ;;  %v2849_v14 = vld [vmem:[#allocation2 + $0x19] sm:$0xff]  ;;  %v7779_v38 = vpack.c.bf16 %v3257_v3, %v3256_v11 }
 0x2ea   : > { %9113 = vst [vmem:[#allocation98_spill] sm:$0xff] %v7761_v5  ;;  %9114 = vst [vmem:[#allocation99_spill] sm:$0xff] %v7764_v57  ;;  %6040 = vmatprep.mubr.msk.bf16.mxu1 %vm6572_vm0, %v9068_v43  ;;  %6176 = vmatprep.mubr.msk.bf16.mxu0 %vm6572_vm0, %v9068_v43  ;;  %v6516_v57 = vld [vmem:[%s9006_s4 + $0x78] sm:$0xff]   ;;  %v2890_v27 = vpack.c.bf16 %v2850_v20, %v2849_v14  ;;  %v3259_v20 = vld [vmem:[#allocation2 + $0x101] sm:$0xff] }
 0x2eb   : > { %v5758_v8 = vpop.f32.mrf.mxu1  ;;  %v5986_v47 = vpop.f32.mrf.mxu0 }
 0x2ed   : > { %v7772_v61 = vpop.f32.mrf.mxu1  ;;  %v7774_v12 = vpop.f32.mrf.mxu0 }
 0x2ee   : > { %9115 = vst [vmem:[#allocation100_spill] sm:$0xff] %v7772_v61  ;;  %9116 = vst [vmem:[#allocation101_spill] sm:$0xff] %v7774_v12 }
 0x2ef   : > { %v5759_v59 = vpop.f32.mrf.mxu1  ;;  %v5987_v5 = vpop.f32.mrf.mxu0 }
 0x2f0   : > { %v6519_v5 = vld [vmem:[%s9006_s4 + $0x70] sm:$0xff]  }
 0x2f1   : > { %v7781_v28 = vpop.f32.mrf.mxu1  ;;  %v7783_v8 = vpop.f32.mrf.mxu0  ;;  %6041 = vmatmul.mubr.msk.bf16.vlgmr.msra.gmra.mxu1 %vm968_vm1, %v2890_v27  ;;  %6177 = vmatmul.mubr.msk.bf16.gmra.mxu0 %vm968_vm1, %v7779_v38 }
 0x2f2   : > { %9117 = vst [vmem:[#allocation102_spill] sm:$0xff] %v7781_v28  ;;  %9118 = vst [vmem:[#allocation103_spill] sm:$0xff] %v7783_v8  ;;  %6213 = vmatpush3.bf16.msra.mxu1 %v6516_v57  ;;  %6044 = vmatprep.mubr.msk.bf16.mxu1 %vm6572_vm0, %v9068_v43  ;;  %v3258_v57 = vld [vmem:[#allocation2 + $0xf9] sm:$0xff] }
 0x2f3   : > { %v5762_v59 = vpop.f32.mrf.mxu1  ;;  %v5990_v47 = vpop.f32.mrf.mxu0  ;;  %6180 = vmatprep.mubr.msk.bf16.mxu0 %vm6572_vm0, %v9068_v43  ;;  %6214 = vmatprep.subr.bf16.mxu1 %v9068_v43  ;;  %v7800_v8 = vpack.c.bf16 %v3259_v20, %v3258_v57  ;;  %v3261_v57 = vld [vmem:[#allocation2 + $0x111] sm:$0xff] }
 0x2f5   : > { %v7796_v27 = vpop.f32.mrf.mxu1  ;;  %v7798_v3 = vpop.f32.mrf.mxu0 }
 0x2f6   : > { %9119 = vst [vmem:[#allocation104_spill] sm:$0xff] %v7796_v27  ;;  %9120 = vst [vmem:[#allocation105_spill] sm:$0xff] %v7798_v3  ;;  %6215 = vmatpush3.bf16.msra.mxu1 %v6519_v5 }
 0x2f7   : > { %v5763_v14 = vpop.f32.mrf.mxu1  ;;  %v5991_v11 = vpop.f32.mrf.mxu0  ;;  %6388 = vmatprep.subr.bf16.mxu1 %v9068_v43 }
 0x2f9   : > { %v7803_v59 = vpop.f32.mrf.mxu1  ;;  %v7805_v47 = vpop.f32.mrf.mxu0  ;;  %6045 = vmatmul.mubr.msk.bf16.gmra.mxu1 %vm968_vm1, %v7567_v10  ;;  %6181 = vmatmul.mubr.msk.bf16.gmra.mxu0 %vm968_vm1, %v7800_v8 }
 0x2fa   : > { %9121 = vst [vmem:[#allocation106_spill] sm:$0xff] %v7803_v59  ;;  %9122 = vst [vmem:[#allocation107_spill] sm:$0xff] %v7805_v47  ;;  %6048 = vmatprep.mubr.msk.bf16.mxu1 %vm6572_vm0, %v9068_v43  ;;  %6184 = vmatprep.mubr.msk.bf16.mxu0 %vm6572_vm0, %v9068_v43  ;;  %v3260_v47 = vld [vmem:[#allocation2 + $0x109] sm:$0xff] }
 0x2fb   : > { %v5766_v5 = vpop.f32.mrf.mxu1  ;;  %v5994_v20 = vpop.f32.mrf.mxu0  ;;  %v7819_v10 = vpack.c.bf16 %v3261_v57, %v3260_v47  ;;  %v1535_v47 = vadd.f32 %v7483_v25, %v7179_v54 }
 0x2fc   : > { %v3263_v5 = vld [vmem:[#allocation2 + $0x121] sm:$0xff] }
 0x2fd   : > { %v7815_v14 = vpop.f32.mrf.mxu1  ;;  %v7817_v11 = vpop.f32.mrf.mxu0  ;;  %v2042_v28 = vadd.f32 %v7308_v42, %v1535_v47  ;;  %v1543_v42 = vadd.f32 %v7497_v56, %v7221_v22 }
 0x2fe   : > { %9123 = vst [vmem:[#allocation108_spill] sm:$0xff] %v7815_v14  ;;  %9124 = vst [vmem:[#allocation109_spill] sm:$0xff] %v7817_v11  ;;  %v1538_v14 = vadd.f32 %v7493_v52, %v7181_v45 }
 0x2ff   : > { %v5767_v3 = vpop.f32.mrf.mxu1  ;;  %v5995_v12 = vpop.f32.mrf.mxu0 }
 0x300   : > { %v2043_v52 = vadd.f32 %v7317_v50, %v1538_v14  ;;  %v3267_v14 = vld [vmem:[#allocation2 + $0x141] sm:$0xff] }
 0x301   : > { %v7821_v59 = vpop.f32.mrf.mxu1  ;;  %v7823_v27 = vpop.f32.mrf.mxu0  ;;  %6049 = vmatmul.mubr.msk.bf16.gmra.mxu1 %vm968_vm1, %v7588_v6  ;;  %6185 = vmatmul.mubr.msk.bf16.gmra.mxu0 %vm968_vm1, %v7819_v10 }
 0x302   : > { %9125 = vst [vmem:[#allocation110_spill] sm:$0xff] %v7821_v59  ;;  %9126 = vst [vmem:[#allocation111_spill] sm:$0xff] %v7823_v27  ;;  %6052 = vmatprep.mubr.msk.bf16.mxu1 %vm6572_vm0, %v9068_v43  ;;  %6188 = vmatprep.mubr.msk.bf16.mxu0 %vm6572_vm0, %v9068_v43  ;;  %v3262_v27 = vld [vmem:[#allocation2 + $0x119] sm:$0xff] }
 0x303   : > { %v5770_v3 = vpop.f32.mrf.mxu1  ;;  %v5998_v12 = vpop.f32.mrf.mxu0  ;;  %v7837_v59 = vpack.c.bf16 %v3263_v5, %v3262_v27  ;;  %v3265_v27 = vld [vmem:[#allocation2 + $0x131] sm:$0xff] }
 0x305   : > { %v1697_v20 = vpop.f32.mrf.mxu1  ;;  %v7835_v57 = vpop.f32.mrf.mxu0 }
 0x306   : > { %v1546_v20 = vadd.f32 %v7507_v7, %v7229_v4 }
 0x307   : > { %v5771_v6 = vpop.f32.mrf.mxu1  ;;  %v5999_v11 = vpop.f32.mrf.mxu0 }
 0x308   : > { %v2044_v6 = vadd.f32 %v7322_v44, %v1543_v42  ;;  %v1551_v44 = vadd.f32 %v7511_v51, %v7231_v32  ;;  %v2045_v7 = vadd.f32 %v7331_v16, %v1546_v20  ;;  %v3269_v20 = vld [vmem:[#allocation2 + $0x151] sm:$0xff] }
 0x309   : > { %v2259_v61 = vpop.f32.mrf.mxu1  ;;  %v7842_v3 = vpop.f32.mrf.mxu0  ;;  %6053 = vmatmul.mubr.msk.bf16.gmra.mxu1 %vm968_vm1, %v7605_v37  ;;  %6189 = vmatmul.mubr.msk.bf16.gmra.mxu0 %vm968_vm1, %v7837_v59 }
 0x30a   : > { %v7848_v54 = vadd.f32 %v2259_v61, %v2042_v28  ;;  %6056 = vmatprep.mubr.msk.bf16.mxu1 %vm6572_vm0, %v9068_v43  ;;  %6192 = vmatprep.mubr.msk.bf16.mxu0 %vm6572_vm0, %v9068_v43  ;;  %v3264_v28 = vld [vmem:[#allocation2 + $0x129] sm:$0xff] }
 0x30b   : > { %v5866_v45 = vpop.f32.mrf.mxu1  ;;  %v6002_v25 = vpop.f32.mrf.mxu0  ;;  %v7861_v5 = vpack.c.bf16 %v3265_v27, %v3264_v28 }
 0x30d   : > { %v2262_v37 = vpop.f32.mrf.mxu1  ;;  %v7857_v11 = vpop.f32.mrf.mxu0 }
 0x30e   : > { %v7859_v12 = vadd.f32 %v2262_v37, %v2043_v52  ;;  %v3266_v52 = vld [vmem:[#allocation2 + $0x139] sm:$0xff] }
 0x30f   : > { %v5867_v61 = vpop.f32.mrf.mxu1  ;;  %v6003_v47 = vpop.f32.mrf.mxu0  ;;  %v7885_v28 = vpack.c.bf16 %v3267_v14, %v3266_v52 }
 0x310   : > { %v1554_v61 = vadd.f32 %v7521_v13, %v7239_v34  ;;  %v2046_v47 = vadd.f32 %v7339_v48, %v1551_v44  ;;  %v1559_v48 = vadd.f32 %v7525_v29, %v7241_v39 }
 0x311   : > { %v2267_v45 = vpop.f32.mrf.mxu1  ;;  %v7866_v22 = vpop.f32.mrf.mxu0  ;;  %6057 = vmatmul.mubr.msk.bf16.gmra.mxu1 %vm968_vm1, %v7620_v30  ;;  %6193 = vmatmul.mubr.msk.bf16.gmra.mxu0 %vm968_vm1, %v7861_v5 }
 0x312   : > { %v7872_v50 = vadd.f32 %v2267_v45, %v2044_v6  ;;  %6060 = vmatprep.mubr.msk.bf16.mxu1 %vm6572_vm0, %v9068_v43  ;;  %6196 = vmatprep.mubr.msk.bf16.mxu0 %vm6572_vm0, %v9068_v43  ;;  %v2047_v13 = vadd.f32 %v7349_v63, %v1554_v61  ;;  %v2048_v52 = vadd.f32 %v7354_v40, %v1559_v48 }
 0x313   : > { %v5870_v4 = vpop.f32.mrf.mxu1  ;;  %v6006_v56 = vpop.f32.mrf.mxu0  ;;  %v1567_v40 = vadd.f32 %v7539_v24, %v7251_v46  ;;  %v3272_v24 = vld [vmem:[#allocation2 + $0x169] sm:$0xf] }
 0x314   : > { %v3268_v56 = vld [vmem:[#allocation2 + $0x149] sm:$0xff] }
 0x315   : > { %v2270_v30 = vpop.f32.mrf.mxu1  ;;  %v7881_v25 = vpop.f32.mrf.mxu0  ;;  %v7909_v14 = vpack.c.bf16 %v3269_v20, %v3268_v56  ;;  %v2050_v20 = vadd.f32 %v7368_v31, %v1567_v40  ;;  %v1575_v31 = vadd.f32 %v7553_v19, %v7261_v2 }
 0x316   : > { %v7883_v42 = vadd.f32 %v2270_v30, %v2045_v7  ;;  %v1562_v30 = vadd.f32 %v7535_v60, %v7249_v41 }
 0x317   : > { %v5871_v27 = vpop.f32.mrf.mxu1  ;;  %v6007_v37 = vpop.f32.mrf.mxu0 }
 0x318   : > { %v2049_v60 = vadd.f32 %v7363_v23, %v1562_v30  ;;  %v3270_v37 = vld [vmem:[#allocation2 + $0x159] sm:$0xff] }
 0x319   : > { %v2275_v6 = vpop.f32.mrf.mxu1  ;;  %v7890_v32 = vpop.f32.mrf.mxu0  ;;  %6061 = vmatmul.mubr.msk.bf16.gmra.mxu1 %vm968_vm1, %v7637_v33  ;;  %6197 = vmatmul.mubr.msk.bf16.gmra.mxu0 %vm968_vm1, %v7885_v28 }
 0x31a   : > { %v7896_v16 = vadd.f32 %v2275_v6, %v2046_v47  ;;  %6064 = vmatprep.mubr.msk.bf16.mxu1 %vm6572_vm0, %v9068_v43  ;;  %6200 = vmatprep.mubr.msk.bf16.mxu0 %vm6572_vm0, %v9068_v43 }
 0x31b   : > { %v5874_v34 = vpop.f32.mrf.mxu1  ;;  %v6010_v51 = vpop.f32.mrf.mxu0 }
 0x31d   : > { %v2278_v33 = vpop.f32.mrf.mxu1  ;;  %v7905_v45 = vpop.f32.mrf.mxu0 }
 0x31e   : > { %v7907_v4 = vadd.f32 %v2278_v33, %v2047_v13  ;;  %v1570_v13 = vadd.f32 %v7549_v35, %v7259_v53 }
 0x31f   : > { %v5875_v44 = vpop.f32.mrf.mxu1  ;;  %v6011_v7 = vpop.f32.mrf.mxu0 }
 0x320   : > { %v2051_v35 = vadd.f32 %v7377_v21, %v1570_v13  ;;  %v3293_v7 = vpack.c.bf16 %v3272_v24, %v3272_v24  ;;  %v1586_v13 = vadd.f32 %v7584_v62, %v7283_v17  ;;  %v9133_v62 = vld [vmem:[#allocation3_spill] sm:$0xff] }
 0x321   : > { %v2283_v27 = vpop.f32.mrf.mxu1  ;;  %v7914_v39 = vpop.f32.mrf.mxu0  ;;  %6065 = vmatmul.mubr.msk.bf16.gmra.mxu1 %vm968_vm1, %v7657_v18  ;;  %6201 = vmatmul.mubr.msk.bf16.gmra.mxu0 %vm968_vm1, %v7909_v14  ;;  %v3271_v18 = vld [vmem:[#allocation2 + $0x161] sm:$0xff] }
 0x322   : > { %v7920_v29 = vadd.f32 %v2283_v27, %v2048_v52  ;;  %6068 = vmatprep.mubr.msk.bf16.mxu1 %vm6572_vm0, %v9068_v43  ;;  %6204 = vmatprep.mubr.msk.bf16.mxu0 %vm6572_vm0, %v9068_v43  ;;  %v3292_v48 = vpack.c.bf16 %v3271_v18, %v3270_v37 }
 0x323   : > { %v5878_v41 = vpop.f32.mrf.mxu1  ;;  %v6014_v63 = vpop.f32.mrf.mxu0 }
 0x324   : > { %v1578_v41 = vadd.f32 %v7563_v49, %v7269_v9  ;;  %v2052_v63 = vadd.f32 %v7382_v36, %v1575_v31  ;;  %v1583_v36 = vadd.f32 %v7572_v1, %v7274_v15  ;;  %v3999_v49 = vld [vmem:[#allocation2 + $0x33] sm:$0xff] }
 0x325   : > { %v2286_v61 = vpop.f32.mrf.mxu1  ;;  %v7929_v47 = vpop.f32.mrf.mxu0  ;;  %v9132_v1 = vld [vmem:[#allocation82_spill] sm:$0xff] }
 0x326   : > { %v7931_v6 = vadd.f32 %v2286_v61, %v2049_v60  ;;  %v2053_v19 = vadd.f32 %v7391_v55, %v1578_v41  ;;  %v3998_v61 = vld [vmem:[#allocation2 + $0x2b] sm:$0xff] }
 0x327   : > { %v5879_v34 = vpop.f32.mrf.mxu1  ;;  %v6015_v51 = vpop.f32.mrf.mxu0 }
 0x329   : > { %v2291_v33 = vpop.f32.mrf.mxu1  ;;  %v7936_v56 = vpop.f32.mrf.mxu0  ;;  %6069 = vmatmul.mubr.msk.bf16.gmra.mxu1 %vm968_vm1, %v7674_v0  ;;  %6205 = vmatmul.mubr.msk.bf16.gmra.mxu0 %vm968_vm1, %v3292_v48  ;;  %v4039_v48 = vpack.c.bf16 %v3999_v49, %v3998_v61 }
 0x32a   : > { %9127 = vst [vmem:[#allocation112_spill] sm:$0xff] %v7936_v56  ;;  %v7941_v46 = vadd.f32 %v2291_v33, %v2050_v20  ;;  %6072 = vmatprep.mubr.msk.bf16.mxu1 %vm6572_vm0, %v9068_v43  ;;  %6208 = vmatprep.mubr.msk.bf16.mxu0 %vm6572_vm0, %v9068_v43  ;;  %v2054_v20 = vadd.f32 %v7396_v58, %v1583_v36  ;;  %v9134_v58 = vld [vmem:[#allocation55_spill] sm:$0xff] }
 0x32b   : > { %v5882_v53 = vpop.f32.mrf.mxu1  ;;  %v6018_v23 = vpop.f32.mrf.mxu0 }
 0x32c   : > { %v1591_v53 = vadd.f32 %v9134_v58, %v9133_v62  ;;  %v9135_v23 = vld [vmem:[#allocation21_spill] sm:$0xff]  ;;  %v4003_v62 = vld [vmem:[#allocation2 + $0x53] sm:$0xff] }
 0x32d   : > { %v2294_v44 = vpop.f32.mrf.mxu1  ;;  %v7950_v0 = vpop.f32.mrf.mxu0  ;;  %v2055_v31 = vadd.f32 %v9135_v23, %v1586_v13 }
 0x32e   : > { %9128 = vst [vmem:[#allocation113_spill] sm:$0xff] %v7950_v0  ;;  %v7952_v30 = vadd.f32 %v2294_v44, %v2051_v35  ;;  %v4001_v35 = vld [vmem:[#allocation2 + $0x43] sm:$0xff]  ;;  %v9222_v0 = vld [vmem:[#allocation51_spill] sm:$0xff] }
 0x32f   : > { %v5883_v52 = vpop.f32.mrf.mxu1  ;;  %v6019_v27 = vpop.f32.mrf.mxu0 }
 0x330   : > { %v4000_v27 = vld [vmem:[#allocation2 + $0x3b] sm:$0xff] }
 0x331   : > { %v2299_v40 = vpop.f32.mrf.mxu1  ;;  %v7957_v60 = vpop.f32.mrf.mxu0  ;;  %6073 = vmatmul.mubr.msk.bf16.gmra.mxu1 %vm968_vm1, %v7691_v26  ;;  %6209 = vmatmul.mubr.msk.bf16.gmra.mxu0 %vm968_vm1, %v3293_v7 }
 0x332   : > { %9129 = vst [vmem:[#allocation114_spill] sm:$0xff] %v7957_v60  ;;  %v7962_v2 = vadd.f32 %v2299_v40, %v2052_v63  ;;  %6076 = vmatprep.mubr.msk.bf16.mxu1 %vm6572_vm0, %v9068_v43  ;;  %6304 = vmatprep.mubr.msk.bf16.mxu0 %vm6572_vm0, %v9068_v43  ;;  %v4040_v40 = vpack.c.bf16 %v4001_v35, %v4000_v27 }
 0x333   : > { %v5886_v21 = vpop.f32.mrf.mxu1  ;;  %v6022_v9 = vpop.f32.mrf.mxu0 }
 0x334   : > { %v9137_v21 = vld [vmem:[#allocation4_spill] sm:$0xff]  ;;  %v9138_v9 = vld [vmem:[#allocation57_spill] sm:$0xff] }
 0x335   : > { %v2302_v37 = vpop.f32.mrf.mxu1  ;;  %v7971_v26 = vpop.f32.mrf.mxu0  ;;  %v1594_v36 = vadd.f32 %v9138_v9, %v9137_v21  ;;  %v9148_v21 = vld [vmem:[#allocation27_spill] sm:$0xff] }
 0x336   : > { %9130 = vst [vmem:[#allocation115_spill] sm:$0xff] %v7971_v26  ;;  %v7973_v18 = vadd.f32 %v2302_v37, %v2053_v19  ;;  %v9139_v19 = vld [vmem:[#allocation23_spill] sm:$0xff] }
 0x337   : > { %v5887_v34 = vpop.f32.mrf.mxu1  ;;  %v6023_v51 = vpop.f32.mrf.mxu0  ;;  %v2056_v49 = vadd.f32 %v9139_v19, %v1591_v53 }
 0x338   : > { %v9141_v34 = vld [vmem:[#allocation87_spill] sm:$0xff] }
 0x339   : > { %v2307_v33 = vpop.f32.mrf.mxu1  ;;  %v7978_v24 = vpop.f32.mrf.mxu0  ;;  %6077 = vmatmul.mubr.msk.bf16.gmra.mxu1 %vm968_vm1, %v9132_v1  ;;  %6305 = vmatmul.mubr.msk.bf16.vlgmr.msra.gmra.mxu0 %vm968_vm1, %v4039_v48 }
 0x33a   : > { %9131 = vst [vmem:[#allocation116_spill] sm:$0xff] %v7978_v24  ;;  %v7983_v15 = vadd.f32 %v2307_v33, %v2054_v20  ;;  %6080 = vmatprep.mubr.msk.bf16.mxu1 %vm6572_vm0, %v9068_v43  ;;  %6308 = vmatprep.mubr.msk.bf16.mxu0 %vm6572_vm0, %v9068_v43  ;;  %v9142_v20 = vld [vmem:[#allocation5_spill] sm:$0xff]  ;;  %v9143_v33 = vld [vmem:[#allocation59_spill] sm:$0xff] }
 0x33b   : > { %v5890_v55 = vpop.f32.mrf.mxu1  ;;  %v6026_v17 = vpop.f32.mrf.mxu0  ;;  %v1599_v1 = vadd.f32 %v9143_v33, %v9142_v20  ;;  %v9152_v20 = vld [vmem:[#allocation62_spill] sm:$0xff] }
 0x33c   : > { %v9144_v55 = vld [vmem:[#allocation25_spill] sm:$0xff] }
 0x33d   : > { %v2310_v44 = vpop.f32.mrf.mxu1  ;;  %v7992_v7 = vpop.f32.mrf.mxu0  ;;  %v2057_v17 = vadd.f32 %v9144_v55, %v1594_v36  ;;  %v2058_v9 = vadd.f32 %v9148_v21, %v1599_v1  ;;  %v9153_v1 = vld [vmem:[#allocation29_spill] sm:$0xff]  ;;  %v9155_v21 = vld [vmem:[#allocation64_spill] sm:$0xff] }
 0x33e   : > { %9136 = vst [vmem:[#allocation82_spill] sm:$0xff] %v7992_v7  ;;  %v7994_v52 = vadd.f32 %v2310_v44, %v2055_v31  ;;  %v4002_v31 = vld [vmem:[#allocation2 + $0x4b] sm:$0xff] }
 0x33f   : > { %v5891_v41 = vpop.f32.mrf.mxu1  ;;  %v6027_v63 = vpop.f32.mrf.mxu0  ;;  %v4041_v27 = vpack.c.bf16 %v4003_v62, %v4002_v31 }
 0x340   : > { %v9146_v41 = vld [vmem:[#allocation6_spill] sm:$0xff]  ;;  %v9147_v63 = vld [vmem:[#allocation61_spill] sm:$0xff] }
 0x341   : > { %v2315_v37 = vpop.f32.mrf.mxu1  ;;  %v7999_v61 = vpop.f32.mrf.mxu0  ;;  %6081 = vmatmul.mubr.msk.bf16.gmra.mxu1 %vm968_vm1, %v9141_v34  ;;  %6309 = vmatmul.mubr.msk.bf16.gmra.mxu0 %vm968_vm1, %v4040_v40  ;;  %v1602_v40 = vadd.f32 %v9147_v63, %v9146_v41  ;;  %v9154_v63 = vld [vmem:[#allocation8_spill] sm:$0xff] }
 0x342   : > { %9140 = vst [vmem:[#allocation3_spill] sm:$0xff] %v7999_v61  ;;  %v8004_v51 = vadd.f32 %v2315_v37, %v2056_v49  ;;  %6084 = vmatprep.mubr.msk.bf16.mxu1 %vm6572_vm0, %v9068_v43  ;;  %6312 = vmatprep.mubr.msk.bf16.mxu0 %vm6572_vm0, %v9068_v43  ;;  %v9150_v37 = vld [vmem:[#allocation92_spill] sm:$0xff] }
 0x343   : > { %v5894_v48 = vpop.f32.mrf.mxu1  ;;  %v6030_v13 = vpop.f32.mrf.mxu0  ;;  %v2059_v55 = vadd.f32 %v9153_v1, %v1602_v40 }
 0x344   : > { %v9151_v13 = vld [vmem:[#allocation7_spill] sm:$0xff] }
 0x345   : > { %v2318_v58 = vpop.f32.mrf.mxu1  ;;  %v8013_v53 = vpop.f32.mrf.mxu0  ;;  %v1607_v33 = vadd.f32 %v9152_v20, %v9151_v13 }
 0x346   : > { %9145 = vst [vmem:[#allocation55_spill] sm:$0xff] %v8013_v53  ;;  %v8015_v23 = vadd.f32 %v2318_v58, %v2057_v17  ;;  %v4005_v17 = vld [vmem:[#allocation2 + $0x63] sm:$0xff] }
 0x347   : > { %v5895_v35 = vpop.f32.mrf.mxu1  ;;  %v6031_v44 = vpop.f32.mrf.mxu0 }
 0x348   : > { %v4004_v35 = vld [vmem:[#allocation2 + $0x5b] sm:$0xff] }
 0x349   : > { %v2323_v19 = vpop.f32.mrf.mxu1  ;;  %v8020_v49 = vpop.f32.mrf.mxu0  ;;  %6085 = vmatmul.mubr.msk.bf16.gmra.mxu1 %vm968_vm1, %v9150_v37  ;;  %6313 = vmatmul.mubr.msk.bf16.gmra.mxu0 %vm968_vm1, %v4041_v27  ;;  %v4042_v41 = vpack.c.bf16 %v4005_v17, %v4004_v35  ;;  %v4007_v35 = vld [vmem:[#allocation2 + $0x73] sm:$0xff] }
 0x34a   : > { %9149 = vst [vmem:[#allocation21_spill] sm:$0xff] %v8020_v49  ;;  %v8025_v36 = vadd.f32 %v2323_v19, %v2058_v9  ;;  %6088 = vmatprep.mubr.msk.bf16.mxu1 %vm6572_vm0, %v9068_v43  ;;  %6316 = vmatprep.mubr.msk.bf16.mxu0 %vm6572_vm0, %v9068_v43  ;;  %v1610_v9 = vadd.f32 %v9155_v21, %v9154_v63  ;;  %v9156_v19 = vld [vmem:[#allocation31_spill] sm:$0xff]  ;;  %v4006_v63 = vld [vmem:[#allocation2 + $0x6b] sm:$0xff] }
 0x34b   : > { %v5898_v34 = vpop.f32.mrf.mxu1  ;;  %v6034_v48 = vpop.f32.mrf.mxu0  ;;  %v2060_v37 = vadd.f32 %v9156_v19, %v1607_v33  ;;  %v9160_v33 = vld [vmem:[#allocation66_spill] sm:$0xff] }
 0x34c   : > { %v9157_v48 = vld [vmem:[#allocation97_spill] sm:$0xff] }
 0x34d   : > { %v2326_v62 = vpop.f32.mrf.mxu1  ;;  %v2805_v58 = vpop.f32.mrf.mxu0 }
 0x34e   : > { %v8034_v31 = vadd.f32 %v2326_v62, %v2059_v55  ;;  %v9159_v55 = vld [vmem:[#allocation9_spill] sm:$0xff] }
 0x34f   : > { %v5899_v44 = vpop.f32.mrf.mxu1  ;;  %v6035_v27 = vpop.f32.mrf.mxu0  ;;  %v1615_v17 = vadd.f32 %v9160_v33, %v9159_v55  ;;  %v9161_v62 = vld [vmem:[#allocation33_spill] sm:$0xff] }
 0x350   : > { %v2061_v58 = vadd.f32 %v9161_v62, %v1610_v9 }
 0x351   : > { %v2331_v34 = vpop.f32.mrf.mxu1  ;;  %6089 = vmatmul.mubr.msk.bf16.gmra.mxu1 %vm968_vm1, %v9157_v48  ;;  %v8041_v13 = vpop.f32.mrf.mxu0  ;;  %6317 = vmatmul.mubr.msk.bf16.gmra.mxu0 %vm968_vm1, %v4042_v41  ;;  %v9164_v48 = vld [vmem:[#allocation68_spill] sm:$0xff] }
 0x352   : > { %9158 = vst [vmem:[#allocation4_spill] sm:$0xff] %v8041_v13  ;;  %v8044_v40 = vadd.f32 %v2331_v34, %v2060_v37  ;;  %6092 = vmatprep.mubr.msk.bf16.mxu1 %vm6572_vm0, %v9068_v43  ;;  %6320 = vmatprep.mubr.msk.bf16.mxu0 %vm6572_vm0, %v9068_v43  ;;  %v4043_v37 = vpack.c.bf16 %v4007_v35, %v4006_v63  ;;  %v9163_v34 = vld [vmem:[#allocation10_spill] sm:$0xff] }
 0x353   : > { %v5902_v20 = vpop.f32.mrf.mxu1  ;;  %v6130_v1 = vpop.f32.mrf.mxu0  ;;  %v1618_v13 = vadd.f32 %v9164_v48, %v9163_v34 }
 0x354   : > { %v9165_v20 = vld [vmem:[#allocation35_spill] sm:$0xff] }
 0x355   : > { %v2334_v44 = vpop.f32.mrf.mxu1  ;;  %v8053_v27 = vpop.f32.mrf.mxu0  ;;  %v2062_v1 = vadd.f32 %v9165_v20, %v1615_v17  ;;  %v9168_v17 = vld [vmem:[#allocation70_spill] sm:$0xff] }
 0x356   : > { %9162 = vst [vmem:[#allocation57_spill] sm:$0xff] %v8053_v27  ;;  %v8055_v41 = vadd.f32 %v2334_v44, %v2061_v58  ;;  %v9167_v58 = vld [vmem:[#allocation11_spill] sm:$0xff]  ;;  %v9169_v44 = vld [vmem:[#allocation37_spill] sm:$0xff] }
 0x357   : > { %v5903_v21 = vpop.f32.mrf.mxu1  ;;  %v6131_v19 = vpop.f32.mrf.mxu0  ;;  %v1623_v35 = vadd.f32 %v9168_v17, %v9167_v58  ;;  %v2063_v63 = vadd.f32 %v9169_v44, %v1618_v13  ;;  %v9175_v44 = vld [vmem:[#allocation13_spill] sm:$0xff] }
 0x359   : > { %v2339_v49 = vpop.f32.mrf.mxu1  ;;  %6093 = vmatmul.mubr.msk.bf16.gmra.mxu1 %vm968_vm1, %v7779_v38  ;;  %v8062_v9 = vpop.f32.mrf.mxu0  ;;  %6321 = vmatmul.mubr.msk.bf16.gmra.mxu0 %vm968_vm1, %v4043_v37  ;;  %v4009_v38 = vld [vmem:[#allocation2 + $0x83] sm:$0xff] }
 0x35a   : > { %9166 = vst [vmem:[#allocation23_spill] sm:$0xff] %v8062_v9  ;;  %v8065_v55 = vadd.f32 %v2339_v49, %v2062_v1  ;;  %6096 = vmatprep.mubr.msk.bf16.mxu1 %vm6572_vm0, %v9068_v43  ;;  %6324 = vmatprep.mubr.msk.bf16.mxu0 %vm6572_vm0, %v9068_v43  ;;  %v4008_v49 = vld [vmem:[#allocation2 + $0x7b] sm:$0xff] }
 0x35b   : > { %v5906_v33 = vpop.f32.mrf.mxu1  ;;  %v6134_v62 = vpop.f32.mrf.mxu0  ;;  %v4044_v20 = vpack.c.bf16 %v4009_v38, %v4008_v49  ;;  %v9171_v1 = vld [vmem:[#allocation12_spill] sm:$0xff] }
 0x35c   : > { %v9172_v9 = vld [vmem:[#allocation72_spill] sm:$0xff]  ;;  %v9173_v33 = vld [vmem:[#allocation39_spill] sm:$0xff] }
 0x35d   : > { %v2342_v21 = vpop.f32.mrf.mxu1  ;;  %v8074_v19 = vpop.f32.mrf.mxu0  ;;  %v1626_v27 = vadd.f32 %v9172_v9, %v9171_v1  ;;  %v2064_v62 = vadd.f32 %v9173_v33, %v1623_v35  ;;  %v9176_v35 = vld [vmem:[#allocation74_spill] sm:$0xff]  ;;  %v9177_v38 = vld [vmem:[#allocation40_spill] sm:$0xff] }
 0x35e   : > { %9170 = vst [vmem:[#allocation87_spill] sm:$0xff] %v8074_v19  ;;  %v8076_v37 = vadd.f32 %v2342_v21, %v2063_v63  ;;  %v1631_v63 = vadd.f32 %v9176_v35, %v9175_v44 }
 0x35f   : > { %v5907_v34 = vpop.f32.mrf.mxu1  ;;  %v6135_v48 = vpop.f32.mrf.mxu0  ;;  %v2065_v21 = vadd.f32 %v9177_v38, %v1626_v27  ;;  %v9183_v38 = vld [vmem:[#allocation15_spill] sm:$0xff] }
 0x361   : > { %v2347_v53 = vpop.f32.mrf.mxu1  ;;  %6097 = vmatmul.mubr.msk.bf16.gmra.mxu1 %vm968_vm1, %v7800_v8  ;;  %v8083_v13 = vpop.f32.mrf.mxu0  ;;  %6325 = vmatmul.mubr.msk.bf16.gmra.mxu0 %vm968_vm1, %v4044_v20  ;;  %v4011_v8 = vld [vmem:[#allocation2 + $0x93] sm:$0xff] }
 0x362   : > { %9174 = vst [vmem:[#allocation5_spill] sm:$0xff] %v8083_v13  ;;  %v8086_v58 = vadd.f32 %v2347_v53, %v2064_v62  ;;  %6100 = vmatprep.mubr.msk.bf16.mxu1 %vm6572_vm0, %v9068_v43  ;;  %6328 = vmatprep.mubr.msk.bf16.mxu0 %vm6572_vm0, %v9068_v43  ;;  %v4010_v53 = vld [vmem:[#allocation2 + $0x8b] sm:$0xff]  ;;  %v9180_v13 = vld [vmem:[#allocation76_spill] sm:$0xff] }
 0x363   : > { %v5910_v17 = vpop.f32.mrf.mxu1  ;;  %v6138_v9 = vpop.f32.mrf.mxu0  ;;  %v4045_v33 = vpack.c.bf16 %v4011_v8, %v4010_v53  ;;  %v9179_v62 = vld [vmem:[#allocation14_spill] sm:$0xff] }
 0x364   : > { %v1634_v19 = vadd.f32 %v9180_v13, %v9179_v62  ;;  %v9181_v17 = vld [vmem:[#allocation41_spill] sm:$0xff]  ;;  %v9185_v8 = vld [vmem:[#allocation42_spill] sm:$0xff] }
 0x365   : > { %v2350_v49 = vpop.f32.mrf.mxu1  ;;  %v8095_v34 = vpop.f32.mrf.mxu0  ;;  %v2066_v9 = vadd.f32 %v9181_v17, %v1631_v63  ;;  %v9184_v63 = vld [vmem:[#allocation78_spill] sm:$0xff] }
 0x366   : > { %9178 = vst [vmem:[#allocation59_spill] sm:$0xff] %v8095_v34  ;;  %v8097_v48 = vadd.f32 %v2350_v49, %v2065_v21  ;;  %v1639_v21 = vadd.f32 %v9184_v63, %v9183_v38  ;;  %v2067_v49 = vadd.f32 %v9185_v8, %v1634_v19  ;;  %v9191_v8 = vld [vmem:[#allocation17_spill] sm:$0xff] }
 0x367   : > { %v5911_v20 = vpop.f32.mrf.mxu1  ;;  %v6139_v1 = vpop.f32.mrf.mxu0 }
 0x369   : > { %v2355_v61 = vpop.f32.mrf.mxu1  ;;  %6101 = vmatmul.mubr.msk.bf16.gmra.mxu1 %vm968_vm1, %v7819_v10  ;;  %v8104_v27 = vpop.f32.mrf.mxu0  ;;  %6329 = vmatmul.mubr.msk.bf16.gmra.mxu0 %vm968_vm1, %v4045_v33  ;;  %v4013_v10 = vld [vmem:[#allocation2 + $0xa3] sm:$0xff] }
 0x36a   : > { %9182 = vst [vmem:[#allocation25_spill] sm:$0xff] %v8104_v27  ;;  %v8107_v44 = vadd.f32 %v2355_v61, %v2066_v9  ;;  %6104 = vmatprep.mubr.msk.bf16.mxu1 %vm6572_vm0, %v9068_v43  ;;  %6332 = vmatprep.mubr.msk.bf16.mxu0 %vm6572_vm0, %v9068_v43  ;;  %v4012_v61 = vld [vmem:[#allocation2 + $0x9b] sm:$0xff] }
 0x36b   : > { %v5914_v35 = vpop.f32.mrf.mxu1  ;;  %v6142_v13 = vpop.f32.mrf.mxu0  ;;  %v4046_v17 = vpack.c.bf16 %v4013_v10, %v4012_v61  ;;  %v9187_v9 = vld [vmem:[#allocation16_spill] sm:$0xff] }
 0x36c   : > { %v9188_v27 = vld [vmem:[#allocation80_spill] sm:$0xff]  ;;  %v9189_v35 = vld [vmem:[#allocation43_spill] sm:$0xff] }
 0x36d   : > { %v2358_v53 = vpop.f32.mrf.mxu1  ;;  %v8116_v20 = vpop.f32.mrf.mxu0  ;;  %v1642_v34 = vadd.f32 %v9188_v27, %v9187_v9  ;;  %v2068_v13 = vadd.f32 %v9189_v35, %v1639_v21  ;;  %v9192_v21 = vld [vmem:[#allocation83_spill] sm:$0xff]  ;;  %v9193_v10 = vld [vmem:[#allocation44_spill] sm:$0xff] }
 0x36e   : > { %9186 = vst [vmem:[#allocation6_spill] sm:$0xff] %v8116_v20  ;;  %v8118_v1 = vadd.f32 %v2358_v53, %v2067_v49  ;;  %v1647_v49 = vadd.f32 %v9192_v21, %v9191_v8 }
 0x36f   : > { %v5915_v33 = vpop.f32.mrf.mxu1  ;;  %v6143_v62 = vpop.f32.mrf.mxu0  ;;  %v2069_v53 = vadd.f32 %v9193_v10, %v1642_v34  ;;  %v9199_v10 = vld [vmem:[#allocation19_spill] sm:$0xff] }
 0x371   : > { %v2363_v7 = vpop.f32.mrf.mxu1  ;;  %6105 = vmatmul.mubr.msk.bf16.gmra.mxu1 %vm968_vm1, %v7837_v59  ;;  %v8125_v19 = vpop.f32.mrf.mxu0  ;;  %6333 = vmatmul.mubr.msk.bf16.gmra.mxu0 %vm968_vm1, %v4046_v17  ;;  %v4015_v59 = vld [vmem:[#allocation2 + $0xb3] sm:$0xff] }
 0x372   : > { %9190 = vst [vmem:[#allocation61_spill] sm:$0xff] %v8125_v19  ;;  %v8128_v38 = vadd.f32 %v2363_v7, %v2068_v13  ;;  %6108 = vmatprep.mubr.msk.bf16.mxu1 %vm6572_vm0, %v9068_v43  ;;  %6336 = vmatprep.mubr.msk.bf16.mxu0 %vm6572_vm0, %v9068_v43  ;;  %v4014_v7 = vld [vmem:[#allocation2 + $0xab] sm:$0xff] }
 0x373   : > { %v5918_v63 = vpop.f32.mrf.mxu1  ;;  %v6146_v27 = vpop.f32.mrf.mxu0  ;;  %v4047_v35 = vpack.c.bf16 %v4015_v59, %v4014_v7  ;;  %v9195_v13 = vld [vmem:[#allocation18_spill] sm:$0xff]  ;;  %v9196_v19 = vld [vmem:[#allocation85_spill] sm:$0xff] }
 0x374   : > { %v1650_v20 = vadd.f32 %v9196_v19, %v9195_v13  ;;  %v9197_v63 = vld [vmem:[#allocation45_spill] sm:$0xff]  ;;  %v9201_v59 = vld [vmem:[#allocation46_spill] sm:$0xff] }
 0x375   : > { %v2366_v61 = vpop.f32.mrf.mxu1  ;;  %v8137_v33 = vpop.f32.mrf.mxu0  ;;  %v2070_v27 = vadd.f32 %v9197_v63, %v1647_v49  ;;  %v9200_v49 = vld [vmem:[#allocation88_spill] sm:$0xff] }
 0x376   : > { %9194 = vst [vmem:[#allocation27_spill] sm:$0xff] %v8137_v33  ;;  %v8139_v62 = vadd.f32 %v2366_v61, %v2069_v53  ;;  %v1655_v53 = vadd.f32 %v9200_v49, %v9199_v10  ;;  %v2071_v61 = vadd.f32 %v9201_v59, %v1650_v20  ;;  %v9207_v59 = vld [vmem:[#allocation22_spill] sm:$0xff] }
 0x377   : > { %v5919_v17 = vpop.f32.mrf.mxu1  ;;  %v6147_v9 = vpop.f32.mrf.mxu0 }
 0x379   : > { %v2371_v24 = vpop.f32.mrf.mxu1  ;;  %6109 = vmatmul.mubr.msk.bf16.gmra.mxu1 %vm968_vm1, %v7861_v5  ;;  %v8146_v34 = vpop.f32.mrf.mxu0  ;;  %6337 = vmatmul.mubr.msk.bf16.gmra.mxu0 %vm968_vm1, %v4047_v35  ;;  %v4017_v5 = vld [vmem:[#allocation2 + $0xc3] sm:$0xff] }
 0x37a   : > { %9198 = vst [vmem:[#allocation92_spill] sm:$0xff] %v8146_v34  ;;  %v8149_v8 = vadd.f32 %v2371_v24, %v2070_v27  ;;  %6112 = vmatprep.mubr.msk.bf16.mxu1 %vm6572_vm0, %v9068_v43  ;;  %6340 = vmatprep.mubr.msk.bf16.mxu0 %vm6572_vm0, %v9068_v43  ;;  %v4016_v24 = vld [vmem:[#allocation2 + $0xbb] sm:$0xff]  ;;  %v9204_v34 = vld [vmem:[#allocation90_spill] sm:$0xff] }
 0x37b   : > { %v5922_v21 = vpop.f32.mrf.mxu1  ;;  %v6150_v19 = vpop.f32.mrf.mxu0  ;;  %v4048_v63 = vpack.c.bf16 %v4017_v5, %v4016_v24  ;;  %v9203_v27 = vld [vmem:[#allocation20_spill] sm:$0xff] }
 0x37c   : > { %v1658_v33 = vadd.f32 %v9204_v34, %v9203_v27  ;;  %v9205_v21 = vld [vmem:[#allocation47_spill] sm:$0xff]  ;;  %v9209_v5 = vld [vmem:[#allocation48_spill] sm:$0xff] }
 0x37d   : > { %v2374_v7 = vpop.f32.mrf.mxu1  ;;  %v8158_v17 = vpop.f32.mrf.mxu0  ;;  %v2072_v19 = vadd.f32 %v9205_v21, %v1655_v53  ;;  %v9208_v53 = vld [vmem:[#allocation93_spill] sm:$0xff] }
 0x37e   : > { %9202 = vst [vmem:[#allocation7_spill] sm:$0xff] %v8158_v17  ;;  %v8160_v9 = vadd.f32 %v2374_v7, %v2071_v61  ;;  %v1663_v61 = vadd.f32 %v9208_v53, %v9207_v59  ;;  %v2073_v7 = vadd.f32 %v9209_v5, %v1658_v33  ;;  %v9215_v5 = vld [vmem:[#allocation26_spill] sm:$0xff] }
 0x37f   : > { %v5923_v35 = vpop.f32.mrf.mxu1  ;;  %v6151_v13 = vpop.f32.mrf.mxu0 }
 0x381   : > { %v2379_v26 = vpop.f32.mrf.mxu1  ;;  %6113 = vmatmul.mubr.msk.bf16.gmra.mxu1 %vm968_vm1, %v7885_v28  ;;  %v8167_v20 = vpop.f32.mrf.mxu0  ;;  %6341 = vmatmul.mubr.msk.bf16.gmra.mxu0 %vm968_vm1, %v4048_v63  ;;  %v4019_v28 = vld [vmem:[#allocation2 + $0xd3] sm:$0xff] }
 0x382   : > { %9206 = vst [vmem:[#allocation62_spill] sm:$0xff] %v8167_v20  ;;  %v8170_v10 = vadd.f32 %v2379_v26, %v2072_v19  ;;  %6116 = vmatprep.mubr.msk.bf16.mxu1 %vm6572_vm0, %v9068_v43  ;;  %6344 = vmatprep.mubr.msk.bf16.mxu0 %vm6572_vm0, %v9068_v43  ;;  %v4018_v26 = vld [vmem:[#allocation2 + $0xcb] sm:$0xff]  ;;  %v9211_v19 = vld [vmem:[#allocation24_spill] sm:$0xff]  ;;  %v9212_v20 = vld [vmem:[#allocation95_spill] sm:$0xff] }
 0x383   : > { %v5926_v49 = vpop.f32.mrf.mxu1  ;;  %v6154_v34 = vpop.f32.mrf.mxu0  ;;  %v4049_v21 = vpack.c.bf16 %v4019_v28, %v4018_v26  ;;  %v1666_v17 = vadd.f32 %v9212_v20, %v9211_v19  ;;  %v9217_v28 = vld [vmem:[#allocation50_spill] sm:$0xff]  ;;  %v4021_v26 = vld [vmem:[#allocation2 + $0xe3] sm:$0xff] }
 0x384   : > { %v9213_v49 = vld [vmem:[#allocation49_spill] sm:$0xff] }
 0x385   : > { %v2382_v24 = vpop.f32.mrf.mxu1  ;;  %v8179_v35 = vpop.f32.mrf.mxu0  ;;  %v2074_v34 = vadd.f32 %v9213_v49, %v1663_v61  ;;  %v9216_v61 = vld [vmem:[#allocation98_spill] sm:$0xff] }
 0x386   : > { %9210 = vst [vmem:[#allocation29_spill] sm:$0xff] %v8179_v35  ;;  %v8181_v13 = vadd.f32 %v2382_v24, %v2073_v7  ;;  %v1671_v7 = vadd.f32 %v9216_v61, %v9215_v5  ;;  %v2075_v24 = vadd.f32 %v9217_v28, %v1666_v17  ;;  %v9220_v35 = vld [vmem:[#allocation28_spill] sm:$0xff] }
 0x387   : > { %v5927_v63 = vpop.f32.mrf.mxu1  ;;  %v6155_v27 = vpop.f32.mrf.mxu0 }
 0x388   : > { %v2076_v56 = vadd.f32 %v9222_v0, %v1671_v7  ;;  %v9227_v7 = vld [vmem:[#allocation52_spill] sm:$0xff] }
 0x389   : > { %v2387_v60 = vpop.f32.mrf.mxu1  ;;  %6117 = vmatmul.mubr.msk.bf16.gmra.mxu1 %vm968_vm1, %v7909_v14  ;;  %v8188_v33 = vpop.f32.mrf.mxu0  ;;  %6345 = vmatmul.mubr.msk.bf16.gmra.mxu0 %vm968_vm1, %v4049_v21  ;;  %v2889_v14 = vld [vmem:[#allocation2 + $0x159] sm:$0xf] }
 0x38a   : > { %9214 = vst [vmem:[#allocation8_spill] sm:$0xff] %v8188_v33  ;;  %v8191_v59 = vadd.f32 %v2387_v60, %v2074_v34  ;;  %6120 = vmatprep.mubr.msk.bf16.mxu1 %vm6572_vm0, %v9068_v43  ;;  %6348 = vmatprep.mubr.msk.bf16.mxu0 %vm6572_vm0, %v9068_v43  ;;  %v4020_v21 = vld [vmem:[#allocation2 + $0xdb] sm:$0xff]  ;;  %v2910_v34 = vpack.c.bf16 %v2889_v14, %v2889_v14  ;;  %v9226_v14 = vld [vmem:[#allocation102_spill] sm:$0xff] }
 0x38b   : > { %v5930_v53 = vpop.f32.mrf.mxu1  ;;  %v6158_v20 = vpop.f32.mrf.mxu0  ;;  %v4050_v33 = vpack.c.bf16 %v4021_v26, %v4020_v21  ;;  %v4023_v21 = vld [vmem:[#allocation2 + $0xf3] sm:$0xff] }
 0x38c   : > { %v9221_v53 = vld [vmem:[#allocation100_spill] sm:$0xff] }
 0x38d   : > { %v2390_v63 = vpop.f32.mrf.mxu1  ;;  %v8200_v27 = vpop.f32.mrf.mxu0  ;;  %v1674_v20 = vadd.f32 %v9221_v53, %v9220_v35  ;;  %v9225_v35 = vld [vmem:[#allocation30_spill] sm:$0xff] }
 0x38e   : > { %9218 = vst [vmem:[#allocation64_spill] sm:$0xff] %v8200_v27  ;;  %v8202_v60 = vadd.f32 %v2390_v63, %v2075_v24  ;;  %v1679_v0 = vadd.f32 %v9226_v14, %v9225_v35  ;;  %v3616_v63 = vld [vmem:[#allocation2 + $0x32] sm:$0xff]  ;;  %v9231_v35 = vld [vmem:[#allocation104_spill] sm:$0xff]  ;;  %v9232_v14 = vld [vmem:[#allocation53_spill] sm:$0xff] }
 0x38f   : > { %v5931_v19 = vpop.f32.mrf.mxu1  ;;  %v6159_v49 = vpop.f32.mrf.mxu0  ;;  %v2077_v26 = vadd.f32 %v9227_v7, %v1674_v20 }
 0x390   : > { %9219 = vst [vmem:[#allocation31_spill] sm:$0xff] %v8202_v60  ;;  %v2078_v7 = vadd.f32 %v9232_v14, %v1679_v0  ;;  %v6521_v0 = vld [vmem:[%s9008_s6] sm:$0xff]  }
 0x391   : > { %v2395_v5 = vpop.f32.mrf.mxu1  ;;  %6121 = vmatmul.mubr.msk.bf16.gmra.mxu1 %vm968_vm1, %v2910_v34  ;;  %v8208_v17 = vpop.f32.mrf.mxu0  ;;  %6349 = vmatmul.mubr.msk.bf16.gmra.mxu0 %vm968_vm1, %v4050_v33  ;;  %v3615_v33 = vld [vmem:[#allocation2 + $0x2a] sm:$0xff]  ;;  %v3617_v14 = vld [vmem:[#allocation2 + $0x3a] sm:$0xff] }
 0x392   : > { %9223 = vst [vmem:[#allocation97_spill] sm:$0xff] %v8208_v17  ;;  %v8211_v61 = vadd.f32 %v2395_v5, %v2076_v56  ;;  %6216 = vmatprep.mubr.msk.bf16.mxu1 %vm6572_vm0, %v9068_v43  ;;  %6352 = vmatprep.mubr.msk.bf16.mxu0 %vm6572_vm0, %v9068_v43  ;;  %v4022_v34 = vld [vmem:[#allocation2 + $0xeb] sm:$0xff]  ;;  %v3656_v17 = vpack.c.bf16 %v3616_v63, %v3615_v33 }
 0x393   : > { %v5934_v28 = vpop.f32.mrf.mxu1  ;;  %v6162_v24 = vpop.f32.mrf.mxu0  ;;  %v4051_v27 = vpack.c.bf16 %v4023_v21, %v4022_v34  ;;  %v9236_v33 = vld [vmem:[#allocation106_spill] sm:$0xff] }
 0x394   : > { %9224 = vst [vmem:[#allocation9_spill] sm:$0xff] %v8211_v61  ;;  %v6520_v28 = vld [vmem:[%s9008_s6 + $0x8] sm:$0xff]   ;;  %v9230_v24 = vld [vmem:[#allocation32_spill] sm:$0xff]  ;;  %v9237_v34 = vld [vmem:[#allocation54_spill] sm:$0xff] }
 0x395   : > { %v2398_v19 = vpop.f32.mrf.mxu1  ;;  %v8220_v49 = vpop.f32.mrf.mxu0  ;;  %v1682_v20 = vadd.f32 %v9231_v35, %v9230_v24 }
 0x396   : > { %9228 = vst [vmem:[#allocation66_spill] sm:$0xff] %v8220_v49  ;;  %v8222_v56 = vadd.f32 %v2398_v19, %v2077_v26  ;;  %v9235_v19 = vld [vmem:[#allocation34_spill] sm:$0xff]  ;;  %v9240_v49 = vld [vmem:[#allocation36_spill] sm:$0xff] }
 0x397   : > { %v5935_v53 = vpop.f32.mrf.mxu1  ;;  %v6163_v5 = vpop.f32.mrf.mxu0 }
 0x398   : > { %9229 = vst [vmem:[#allocation33_spill] sm:$0xff] %v8222_v56  ;;  %v4025_v53 = vld [vmem:[#allocation2 + $0x103] sm:$0xff] }
 0x399   : > { %v2403_v61 = vpop.f32.mrf.mxu1  ;;  %v8230_v60 = vpop.f32.mrf.mxu0  ;;  %6217 = vmatmul.mubr.msk.bf16.vlgmr.msra.gmra.mxu1 %vm968_vm1, %v3656_v17  ;;  %6353 = vmatmul.mubr.msk.bf16.gmra.mxu0 %vm968_vm1, %v4051_v27  ;;  %v1687_v17 = vadd.f32 %v9236_v33, %v9235_v19  ;;  %v2079_v27 = vadd.f32 %v9237_v34, %v1682_v20  ;;  %v9241_v19 = vld [vmem:[#allocation108_spill] sm:$0xff] }
 0x39a   : > { %9233 = vst [vmem:[#allocation10_spill] sm:$0xff] %v8230_v60  ;;  %v8234_v26 = vadd.f32 %v2403_v61, %v2078_v7  ;;  %6220 = vmatprep.mubr.msk.bf16.mxu1 %vm6572_vm0, %v9068_v43  ;;  %6356 = vmatprep.mubr.msk.bf16.mxu0 %vm6572_vm0, %v9068_v43  ;;  %v3618_v61 = vld [vmem:[#allocation2 + $0x42] sm:$0xff]  ;;  %v1690_v33 = vadd.f32 %v9241_v19, %v9240_v49  ;;  %v9245_v49 = vld [vmem:[#allocation38_spill] sm:$0xff] }
 0x39b   : > { %v5938_v63 = vpop.f32.mrf.mxu1  ;;  %v6166_v21 = vpop.f32.mrf.mxu0  ;;  %6389 = vmatpush3.bf16.msra.mxu1 %v6520_v28  ;;  %v4024_v28 = vld [vmem:[#allocation2 + $0xfb] sm:$0xff]  ;;  %v4026_v19 = vld [vmem:[#allocation2 + $0x10b] sm:$0xff] }
 0x39c   : > { %9234 = vst [vmem:[#allocation68_spill] sm:$0xff] %v8234_v26  ;;  %6390 = vmatprep.subr.bf16.mxu1 %v9068_v43  ;;  %v3657_v21 = vpack.c.bf16 %v3618_v61, %v3617_v14  ;;  %v4052_v60 = vpack.c.bf16 %v4025_v53, %v4024_v28  ;;  %v9242_v20 = vld [vmem:[#allocation56_spill] sm:$0xff]  ;;  %v9246_v53 = vld [vmem:[#allocation110_spill] sm:$0xff] }
 0x39d   : > { %v2406_v5 = vpop.f32.mrf.mxu1  ;;  %v8247_v24 = vpop.f32.mrf.mxu0  ;;  %v2080_v34 = vadd.f32 %v9242_v20, %v1687_v17  ;;  %v1695_v17 = vadd.f32 %v9246_v53, %v9245_v49  ;;  %v3620_v28 = vld [vmem:[#allocation2 + $0x52] sm:$0xff] }
 0x39e   : > { %9238 = vst [vmem:[#allocation35_spill] sm:$0xff] %v8247_v24  ;;  %v8249_v35 = vadd.f32 %v2406_v5, %v2079_v27  ;;  %v9247_v5 = vld [vmem:[#allocation58_spill] sm:$0xff] }
 0x39f   : > { %v5939_v7 = vpop.f32.mrf.mxu1  ;;  %v6167_v63 = vpop.f32.mrf.mxu0  ;;  %6391 = vmatpush3.bf16.msra.mxu1 %v6521_v0  ;;  %v2081_v14 = vadd.f32 %v9247_v5, %v1690_v33  ;;  %v3622_v5 = vld [vmem:[#allocation2 + $0x62] sm:$0xff] }
 0x3a0   : > { %9239 = vst [vmem:[#allocation11_spill] sm:$0xff] %v8249_v35  ;;  %v4027_v7 = vld [vmem:[#allocation2 + $0x113] sm:$0xff] }
 0x3a1   : > { %v2411_v26 = vpop.f32.mrf.mxu1  ;;  %v8254_v56 = vpop.f32.mrf.mxu0  ;;  %6221 = vmatmul.mubr.msk.bf16.gmra.mxu1 %vm968_vm1, %v3657_v21  ;;  %6357 = vmatmul.mubr.msk.bf16.gmra.mxu0 %vm968_vm1, %v4052_v60  ;;  %v4053_v24 = vpack.c.bf16 %v4027_v7, %v4026_v19  ;;  %v3621_v7 = vld [vmem:[#allocation2 + $0x5a] sm:$0xff] }
 0x3a2   : > { %9243 = vst [vmem:[#allocation70_spill] sm:$0xff] %v8254_v56  ;;  %v8258_v27 = vadd.f32 %v2411_v26, %v2080_v34  ;;  %6224 = vmatprep.mubr.msk.bf16.mxu1 %vm6572_vm0, %v9068_v43  ;;  %6360 = vmatprep.mubr.msk.bf16.mxu0 %vm6572_vm0, %v9068_v43  ;;  %v3619_v26 = vld [vmem:[#allocation2 + $0x4a] sm:$0xff]  ;;  %v9251_v19 = vld [vmem:[#allocation63_spill] sm:$0xff] }
 0x3a3   : > { %v5942_v0 = vpop.f32.mrf.mxu1  ;;  %v6170_v61 = vpop.f32.mrf.mxu0  ;;  %v3658_v56 = vpack.c.bf16 %v3620_v28, %v3619_v26 }
 0x3a4   : > { %9244 = vst [vmem:[#allocation37_spill] sm:$0xff] %v8258_v27  ;;  %v9248_v0 = vld [vmem:[#allocation60_spill] sm:$0xff] }
 0x3a5   : > { %v2414_v63 = vpop.f32.mrf.mxu1  ;;  %v8267_v21 = vpop.f32.mrf.mxu0  ;;  %v2082_v61 = vadd.f32 %v9248_v0, %v1695_v17 }
 0x3a6   : > { %v8269_v60 = vadd.f32 %v2414_v63, %v2081_v14  ;;  %v4029_v14 = vld [vmem:[#allocation2 + $0x123] sm:$0xff]  ;;  %v4028_v63 = vld [vmem:[#allocation2 + $0x11b] sm:$0xff] }
 0x3a7   : > { %v5943_v20 = vpop.f32.mrf.mxu1  ;;  %v6171_v34 = vpop.f32.mrf.mxu0 }
 0x3a8   : > { %v2808_v20 = vadd.f32 %v9251_v19, %v7848_v54 }
 0x3a9   : > { %v2419_v27 = vpop.f32.mrf.mxu1  ;;  %v8272_v35 = vpop.f32.mrf.mxu0  ;;  %6225 = vmatmul.mubr.msk.bf16.gmra.mxu1 %vm968_vm1, %v3658_v56  ;;  %6361 = vmatmul.mubr.msk.bf16.gmra.mxu0 %vm968_vm1, %v4053_v24  ;;  %v3659_v24 = vpack.c.bf16 %v3622_v5, %v3621_v7  ;;  %v9253_v5 = vld [vmem:[#allocation65_spill] sm:$0xff] }
 0x3aa   : > { %9249 = vst [vmem:[#allocation12_spill] sm:$0xff] %v8272_v35  ;;  %v8276_v33 = vadd.f32 %v2419_v27, %v2082_v61  ;;  %6228 = vmatprep.mubr.msk.bf16.mxu1 %vm6572_vm0, %v9068_v43  ;;  %6364 = vmatprep.mubr.msk.bf16.mxu0 %vm6572_vm0, %v9068_v43  ;;  %v4054_v27 = vpack.c.bf16 %v4029_v14, %v4028_v63  ;;  %v3624_v14 = vld [vmem:[#allocation2 + $0x72] sm:$0xff] }
 0x3ab   : > { %v5946_v49 = vpop.f32.mrf.mxu1  ;;  %v6174_v53 = vpop.f32.mrf.mxu0  ;;  %v2809_v54 = vadd.f32 %v9253_v5, %v7859_v12 }
 0x3ad   : > { %v2422_v17 = vpop.f32.mrf.mxu1  ;;  %v8282_v28 = vpop.f32.mrf.mxu0 }
 0x3ae   : > { %9250 = vst [vmem:[#allocation72_spill] sm:$0xff] %v8282_v28  ;;  %v4031_v17 = vld [vmem:[#allocation2 + $0x133] sm:$0xff] }
 0x3af   : > { %v5947_v56 = vpop.f32.mrf.mxu1  ;;  %v6175_v26 = vpop.f32.mrf.mxu0 }
 0x3b0   : > { %v3623_v26 = vld [vmem:[#allocation2 + $0x6a] sm:$0xff] }
 0x3b1   : > { %v3025_v34 = vpop.f32.mrf.mxu1  ;;  %v8286_v0 = vpop.f32.mrf.mxu0  ;;  %6229 = vmatmul.mubr.msk.bf16.gmra.mxu1 %vm968_vm1, %v3659_v24  ;;  %6365 = vmatmul.mubr.msk.bf16.gmra.mxu0 %vm968_vm1, %v4054_v27  ;;  %v4030_v24 = vld [vmem:[#allocation2 + $0x12b] sm:$0xff] }
 0x3b2   : > { %9252 = vst [vmem:[#allocation39_spill] sm:$0xff] %v8286_v0  ;;  %v8290_v61 = vadd.f32 %v3025_v34, %v2808_v20  ;;  %6232 = vmatprep.mubr.msk.bf16.mxu1 %vm6572_vm0, %v9068_v43  ;;  %6368 = vmatprep.mubr.msk.bf16.mxu0 %vm6572_vm0, %v9068_v43  ;;  %v3660_v20 = vpack.c.bf16 %v3624_v14, %v3623_v26  ;;  %v9255_v0 = vld [vmem:[#allocation67_spill] sm:$0xff]  ;;  %v9257_v14 = vld [vmem:[#allocation69_spill] sm:$0xff] }
 0x3b3   : > { %v6042_v49 = vpop.f32.mrf.mxu1  ;;  %v6178_v53 = vpop.f32.mrf.mxu0  ;;  %v4055_v34 = vpack.c.bf16 %v4031_v17, %v4030_v24  ;;  %v4033_v17 = vld [vmem:[#allocation2 + $0x143] sm:$0xff] }
 0x3b4   : > { %v2810_v49 = vadd.f32 %v9255_v0, %v7872_v50  ;;  %v2811_v50 = vadd.f32 %v9257_v14, %v7883_v42  ;;  %v3626_v0 = vld [vmem:[#allocation2 + $0x82] sm:$0xff] }
 0x3b5   : > { %v3028_v7 = vpop.f32.mrf.mxu1  ;;  %v8298_v63 = vpop.f32.mrf.mxu0 }
 0x3b6   : > { %9254 = vst [vmem:[#allocation13_spill] sm:$0xff] %v8298_v63  ;;  %v8300_v56 = vadd.f32 %v3028_v7, %v2809_v54 }
 0x3b7   : > { %v6043_v27 = vpop.f32.mrf.mxu1  ;;  %v6179_v19 = vpop.f32.mrf.mxu0 }
 0x3b8   : > { %v3625_v27 = vld [vmem:[#allocation2 + $0x7a] sm:$0xff] }
 0x3b9   : > { %v3033_v53 = vpop.f32.mrf.mxu1  ;;  %v8304_v28 = vpop.f32.mrf.mxu0  ;;  %6233 = vmatmul.mubr.msk.bf16.gmra.mxu1 %vm968_vm1, %v3660_v20  ;;  %6369 = vmatmul.mubr.msk.bf16.gmra.mxu0 %vm968_vm1, %v4055_v34  ;;  %v4032_v19 = vld [vmem:[#allocation2 + $0x13b] sm:$0xff] }
 0x3ba   : > { %9256 = vst [vmem:[#allocation74_spill] sm:$0xff] %v8304_v28  ;;  %v8308_v12 = vadd.f32 %v3033_v53, %v2810_v49  ;;  %6236 = vmatprep.mubr.msk.bf16.mxu1 %vm6572_vm0, %v9068_v43  ;;  %6372 = vmatprep.mubr.msk.bf16.mxu0 %vm6572_vm0, %v9068_v43  ;;  %v3661_v49 = vpack.c.bf16 %v3626_v0, %v3625_v27  ;;  %v9259_v28 = vld [vmem:[#allocation71_spill] sm:$0xff]  ;;  %v9261_v0 = vld [vmem:[#allocation73_spill] sm:$0xff] }
 0x3bb   : > { %v6046_v5 = vpop.f32.mrf.mxu1  ;;  %v6182_v54 = vpop.f32.mrf.mxu0  ;;  %v4056_v53 = vpack.c.bf16 %v4033_v17, %v4032_v19  ;;  %v4035_v17 = vld [vmem:[#allocation2 + $0x153] sm:$0xff] }
 0x3bc   : > { %v2812_v5 = vadd.f32 %v9259_v28, %v7896_v16  ;;  %v2813_v16 = vadd.f32 %v9261_v0, %v7907_v4  ;;  %v3628_v28 = vld [vmem:[#allocation2 + $0x92] sm:$0xff] }
 0x3bd   : > { %v3036_v7 = vpop.f32.mrf.mxu1  ;;  %v8316_v26 = vpop.f32.mrf.mxu0 }
 0x3be   : > { %9258 = vst [vmem:[#allocation40_spill] sm:$0xff] %v8316_v26  ;;  %v8318_v24 = vadd.f32 %v3036_v7, %v2811_v50 }
 0x3bf   : > { %v6047_v20 = vpop.f32.mrf.mxu1  ;;  %v6183_v34 = vpop.f32.mrf.mxu0 }
 0x3c0   : > { %v3627_v20 = vld [vmem:[#allocation2 + $0x8a] sm:$0xff] }
 0x3c1   : > { %v3041_v54 = vpop.f32.mrf.mxu1  ;;  %v8322_v63 = vpop.f32.mrf.mxu0  ;;  %6237 = vmatmul.mubr.msk.bf16.gmra.mxu1 %vm968_vm1, %v3661_v49  ;;  %6373 = vmatmul.mubr.msk.bf16.gmra.mxu0 %vm968_vm1, %v4056_v53  ;;  %v4034_v34 = vld [vmem:[#allocation2 + $0x14b] sm:$0xff] }
 0x3c2   : > { %9260 = vst [vmem:[#allocation14_spill] sm:$0xff] %v8322_v63  ;;  %v8326_v42 = vadd.f32 %v3041_v54, %v2812_v5  ;;  %6240 = vmatprep.mubr.msk.bf16.mxu1 %vm6572_vm0, %v9068_v43  ;;  %6376 = vmatprep.mubr.msk.bf16.mxu0 %vm6572_vm0, %v9068_v43  ;;  %v3662_v5 = vpack.c.bf16 %v3628_v28, %v3627_v20  ;;  %v9263_v63 = vld [vmem:[#allocation75_spill] sm:$0xff]  ;;  %v9265_v28 = vld [vmem:[#allocation77_spill] sm:$0xff] }
 0x3c3   : > { %v6050_v14 = vpop.f32.mrf.mxu1  ;;  %v6186_v50 = vpop.f32.mrf.mxu0  ;;  %v4057_v54 = vpack.c.bf16 %v4035_v17, %v4034_v34  ;;  %v4036_v17 = vld [vmem:[#allocation2 + $0x15b] sm:$0xff] }
 0x3c4   : > { %v2814_v14 = vadd.f32 %v9263_v63, %v7920_v29  ;;  %v2815_v29 = vadd.f32 %v9265_v28, %v7931_v6  ;;  %v3630_v63 = vld [vmem:[#allocation2 + $0xa2] sm:$0xff]  ;;  %v4038_v28 = vld [vmem:[#allocation2 + $0x16b] sm:$0xf] }
 0x3c5   : > { %v3044_v7 = vpop.f32.mrf.mxu1  ;;  %v8334_v27 = vpop.f32.mrf.mxu0 }
 0x3c6   : > { %9262 = vst [vmem:[#allocation76_spill] sm:$0xff] %v8334_v27  ;;  %v8336_v19 = vadd.f32 %v3044_v7, %v2813_v16  ;;  %v4037_v7 = vld [vmem:[#allocation2 + $0x163] sm:$0xff] }
 0x3c7   : > { %v6051_v49 = vpop.f32.mrf.mxu1  ;;  %v6187_v53 = vpop.f32.mrf.mxu0 }
 0x3c8   : > { %v3629_v53 = vld [vmem:[#allocation2 + $0x9a] sm:$0xff] }
 0x3c9   : > { %v3049_v50 = vpop.f32.mrf.mxu1  ;;  %v8340_v26 = vpop.f32.mrf.mxu0  ;;  %6241 = vmatmul.mubr.msk.bf16.gmra.mxu1 %vm968_vm1, %v3662_v5  ;;  %6377 = vmatmul.mubr.msk.bf16.gmra.mxu0 %vm968_vm1, %v4057_v54 }
 0x3ca   : > { %9264 = vst [vmem:[#allocation41_spill] sm:$0xff] %v8340_v26  ;;  %v8344_v4 = vadd.f32 %v3049_v50, %v2814_v14  ;;  %6244 = vmatprep.mubr.msk.bf16.mxu1 %vm6572_vm0, %v9068_v43  ;;  %6380 = vmatprep.mubr.msk.bf16.mxu0 %vm6572_vm0, %v9068_v43  ;;  %v3663_v14 = vpack.c.bf16 %v3630_v63, %v3629_v53  ;;  %v9267_v26 = vld [vmem:[#allocation79_spill] sm:$0xff] }
 0x3cb   : > { %v6054_v0 = vpop.f32.mrf.mxu1  ;;  %v6190_v16 = vpop.f32.mrf.mxu0  ;;  %v4058_v50 = vpack.c.bf16 %v4037_v7, %v4036_v17  ;;  %v3632_v17 = vld [vmem:[#allocation2 + $0xb2] sm:$0xff]  ;;  %v4059_v53 = vpack.c.bf16 %v4038_v28, %v4038_v28 }
 0x3cc   : > { %v2816_v0 = vadd.f32 %v9267_v26, %v7941_v46  ;;  %v9269_v46 = vld [vmem:[#allocation81_spill] sm:$0xff] }
 0x3cd   : > { %v3052_v20 = vpop.f32.mrf.mxu1  ;;  %v8352_v34 = vpop.f32.mrf.mxu0  ;;  %v2817_v26 = vadd.f32 %v9269_v46, %v7952_v30  ;;  %v9273_v46 = vld [vmem:[#allocation86_spill] sm:$0xff] }
 0x3ce   : > { %9266 = vst [vmem:[#allocation15_spill] sm:$0xff] %v8352_v34  ;;  %v8354_v49 = vadd.f32 %v3052_v20, %v2815_v29 }
 0x3cf   : > { %v6055_v5 = vpop.f32.mrf.mxu1  ;;  %v6191_v54 = vpop.f32.mrf.mxu0 }
 0x3d0   : > { %v3631_v54 = vld [vmem:[#allocation2 + $0xaa] sm:$0xff] }
 0x3d1   : > { %v3057_v16 = vpop.f32.mrf.mxu1  ;;  %v8358_v27 = vpop.f32.mrf.mxu0  ;;  %6245 = vmatmul.mubr.msk.bf16.gmra.mxu1 %vm968_vm1, %v3663_v14  ;;  %6381 = vmatmul.mubr.msk.bf16.gmra.mxu0 %vm968_vm1, %v4058_v50 }
 0x3d2   : > { %9268 = vst [vmem:[#allocation78_spill] sm:$0xff] %v8358_v27  ;;  %v8362_v6 = vadd.f32 %v3057_v16, %v2816_v0  ;;  %6248 = vmatprep.mubr.msk.bf16.mxu1 %vm6572_vm0, %v9068_v43  ;;  %6384 = vmatprep.mubr.msk.bf16.mxu0 %vm6572_vm0, %v9068_v43  ;;  %v3664_v0 = vpack.c.bf16 %v3632_v17, %v3631_v54  ;;  %v9271_v16 = vld [vmem:[#allocation84_spill] sm:$0xff] }
 0x3d3   : > { %v6058_v29 = vpop.f32.mrf.mxu1  ;;  %v6194_v63 = vpop.f32.mrf.mxu0  ;;  %v2818_v27 = vadd.f32 %v9271_v16, %v7962_v2  ;;  %v3634_v17 = vld [vmem:[#allocation2 + $0xc2] sm:$0xff] }
 0x3d5   : > { %v3060_v7 = vpop.f32.mrf.mxu1  ;;  %v8370_v20 = vpop.f32.mrf.mxu0 }
 0x3d6   : > { %9270 = vst [vmem:[#allocation42_spill] sm:$0xff] %v8370_v20  ;;  %v8372_v5 = vadd.f32 %v3060_v7, %v2817_v26  ;;  %v2819_v26 = vadd.f32 %v9273_v46, %v7973_v18  ;;  %v9277_v46 = vld [vmem:[#allocation91_spill] sm:$0xff] }
 0x3d7   : > { %v6059_v14 = vpop.f32.mrf.mxu1  ;;  %v6195_v50 = vpop.f32.mrf.mxu0 }
 0x3d8   : > { %v3633_v14 = vld [vmem:[#allocation2 + $0xba] sm:$0xff] }
 0x3d9   : > { %v3065_v34 = vpop.f32.mrf.mxu1  ;;  %v8376_v29 = vpop.f32.mrf.mxu0  ;;  %6249 = vmatmul.mubr.msk.bf16.gmra.mxu1 %vm968_vm1, %v3664_v0  ;;  %6385 = vmatmul.mubr.msk.bf16.gmra.mxu0 %vm968_vm1, %v4059_v53  ;;  %v3665_v53 = vpack.c.bf16 %v3634_v17, %v3633_v14 }
 0x3da   : > { %9272 = vst [vmem:[#allocation16_spill] sm:$0xff] %v8376_v29  ;;  %v8380_v30 = vadd.f32 %v3065_v34, %v2818_v27  ;;  %6252 = vmatprep.mubr.msk.bf16.mxu1 %vm6572_vm0, %v9068_v43  ;;  %v9275_v27 = vld [vmem:[#allocation89_spill] sm:$0xff] }
 0x3db   : > { %v6062_v28 = vpop.f32.mrf.mxu1  ;;  %v6198_v63 = vpop.f32.mrf.mxu0  ;;  %v2820_v34 = vadd.f32 %v9275_v27, %v7983_v15 }
 0x3dd   : > { %v3068_v7 = vpop.f32.mrf.mxu1  ;;  %v8386_v2 = vpop.f32.mrf.mxu0 }
 0x3de   : > { %9274 = vst [vmem:[#allocation80_spill] sm:$0xff] %v8386_v2  ;;  %v8388_v54 = vadd.f32 %v3068_v7, %v2819_v26  ;;  %v2821_v26 = vadd.f32 %v9277_v46, %v7994_v52  ;;  %v3636_v7 = vld [vmem:[#allocation2 + $0xd2] sm:$0xff]  ;;  %v9281_v46 = vld [vmem:[#allocation96_spill] sm:$0xff] }
 0x3df   : > { %v6063_v50 = vpop.f32.mrf.mxu1  ;;  %v6199_v0 = vpop.f32.mrf.mxu0 }
 0x3e0   : > { %v3635_v50 = vld [vmem:[#allocation2 + $0xca] sm:$0xff] }
 0x3e1   : > { %v3073_v16 = vpop.f32.mrf.mxu1  ;;  %v8392_v29 = vpop.f32.mrf.mxu0  ;;  %6253 = vmatmul.mubr.msk.bf16.gmra.mxu1 %vm968_vm1, %v3665_v53  ;;  %v3666_v53 = vpack.c.bf16 %v3636_v7, %v3635_v50 }
 0x3e2   : > { %9276 = vst [vmem:[#allocation43_spill] sm:$0xff] %v8392_v29  ;;  %v8395_v28 = vadd.f32 %v3073_v16, %v2820_v34  ;;  %6256 = vmatprep.mubr.msk.bf16.mxu1 %vm6572_vm0, %v9068_v43  ;;  %v9279_v34 = vld [vmem:[#allocation94_spill] sm:$0xff] }
 0x3e3   : > { %v6066_v18 = vpop.f32.mrf.mxu1  ;;  %v6202_v63 = vpop.f32.mrf.mxu0  ;;  %v2822_v16 = vadd.f32 %v9279_v34, %v8004_v51 }
 0x3e5   : > { %v3076_v17 = vpop.f32.mrf.mxu1  ;;  %v8401_v14 = vpop.f32.mrf.mxu0 }
 0x3e6   : > { %9278 = vst [vmem:[#allocation17_spill] sm:$0xff] %v8401_v14  ;;  %v8403_v15 = vadd.f32 %v3076_v17, %v2821_v26  ;;  %v2823_v26 = vadd.f32 %v9281_v46, %v8015_v23  ;;  %v3638_v17 = vld [vmem:[#allocation2 + $0xe2] sm:$0xff] }
 0x3e7   : > { %v6067_v0 = vpop.f32.mrf.mxu1  ;;  %v6203_v27 = vpop.f32.mrf.mxu0  ;;  %v9285_v46 = vld [vmem:[#allocation101_spill] sm:$0xff] }
 0x3e8   : > { %v3637_v0 = vld [vmem:[#allocation2 + $0xda] sm:$0xff] }
 0x3e9   : > { %v3081_v29 = vpop.f32.mrf.mxu1  ;;  %v8407_v2 = vpop.f32.mrf.mxu0  ;;  %6257 = vmatmul.mubr.msk.bf16.gmra.mxu1 %vm968_vm1, %v3666_v53  ;;  %v3667_v53 = vpack.c.bf16 %v3638_v17, %v3637_v0 }
 0x3ea   : > { %9280 = vst [vmem:[#allocation83_spill] sm:$0xff] %v8407_v2  ;;  %v8410_v18 = vadd.f32 %v3081_v29, %v2822_v16  ;;  %6260 = vmatprep.mubr.msk.bf16.mxu1 %vm6572_vm0, %v9068_v43  ;;  %v9283_v29 = vld [vmem:[#allocation99_spill] sm:$0xff] }
 0x3eb   : > { %v6070_v52 = vpop.f32.mrf.mxu1  ;;  %v6206_v63 = vpop.f32.mrf.mxu0  ;;  %v2824_v16 = vadd.f32 %v9283_v29, %v8025_v36  ;;  %v3639_v36 = vld [vmem:[#allocation2 + $0xea] sm:$0xff] }
 0x3ed   : > { %v3084_v7 = vpop.f32.mrf.mxu1  ;;  %v8416_v50 = vpop.f32.mrf.mxu0 }
 0x3ee   : > { %9282 = vst [vmem:[#allocation44_spill] sm:$0xff] %v8416_v50  ;;  %v8418_v51 = vadd.f32 %v3084_v7, %v2823_v26  ;;  %v2825_v26 = vadd.f32 %v9285_v46, %v8034_v31  ;;  %v3640_v7 = vld [vmem:[#allocation2 + $0xf2] sm:$0xff] }
 0x3ef   : > { %v6071_v27 = vpop.f32.mrf.mxu1  ;;  %v6207_v34 = vpop.f32.mrf.mxu0 }
 0x3f1   : > { %v3089_v2 = vpop.f32.mrf.mxu1  ;;  %v8422_v14 = vpop.f32.mrf.mxu0  ;;  %6261 = vmatmul.mubr.msk.bf16.gmra.mxu1 %vm968_vm1, %v3667_v53 }
 0x3f2   : > { %9284 = vst [vmem:[#allocation18_spill] sm:$0xff] %v8422_v14  ;;  %v8425_v52 = vadd.f32 %v3089_v2, %v2824_v16  ;;  %6264 = vmatprep.mubr.msk.bf16.mxu1 %vm6572_vm0, %v9068_v43  ;;  %v3668_v14 = vpack.c.bf16 %v3640_v7, %v3639_v36  ;;  %v9286_v2 = vld [vmem:[#allocation103_spill] sm:$0xff] }
 0x3f3   : > { %v6074_v23 = vpop.f32.mrf.mxu1  ;;  %v6210_v63 = vpop.f32.mrf.mxu0  ;;  %v2826_v53 = vadd.f32 %v9286_v2, %v8044_v40 }
 0x3f5   : > { %v3092_v17 = vpop.f32.mrf.mxu1  ;;  %v3571_v0 = vpop.f32.mrf.mxu0 }
 0x3f6   : > { %v8431_v27 = vadd.f32 %v3092_v17, %v2825_v26  ;;  %v9287_v26 = vld [vmem:[#allocation105_spill] sm:$0xff] }
 0x3f7   : > { %v6075_v34 = vpop.f32.mrf.mxu1  ;;  %v6211_v29 = vpop.f32.mrf.mxu0  ;;  %v2827_v17 = vadd.f32 %v9287_v26, %v8055_v41  ;;  %v3642_v0 = vld [vmem:[#allocation2 + $0x102] sm:$0xff] }
 0x3f8   : > { %v3641_v34 = vld [vmem:[#allocation2 + $0xfa] sm:$0xff] }
 0x3f9   : > { %v3097_v16 = vpop.f32.mrf.mxu1  ;;  %6265 = vmatmul.mubr.msk.bf16.gmra.mxu1 %vm968_vm1, %v3668_v14  ;;  %v8436_v23 = vpop.f32.mrf.mxu0  ;;  %v3669_v2 = vpack.c.bf16 %v3642_v0, %v3641_v34 }
 0x3fa   : > { %v8438_v63 = vadd.f32 %v3097_v16, %v2826_v53  ;;  %6268 = vmatprep.mubr.msk.bf16.mxu1 %vm6572_vm0, %v9068_v43  ;;  %v9288_v53 = vld [vmem:[#allocation107_spill] sm:$0xff] }
 0x3fb   : > { %v6078_v31 = vpop.f32.mrf.mxu1  ;;  %v6306_v46 = vpop.f32.mrf.mxu0  ;;  %v2828_v16 = vadd.f32 %v9288_v53, %v8065_v55 }
 0x3fd   : > { %v3100_v7 = vpop.f32.mrf.mxu1  ;;  %v8444_v36 = vpop.f32.mrf.mxu0 }
 0x3fe   : > { %v8446_v40 = vadd.f32 %v3100_v7, %v2827_v17  ;;  %v9289_v17 = vld [vmem:[#allocation109_spill] sm:$0xff] }
 0x3ff   : > { %v6079_v14 = vpop.f32.mrf.mxu1  ;;  %v6307_v29 = vpop.f32.mrf.mxu0  ;;  %v2829_v7 = vadd.f32 %v9289_v17, %v8076_v37 }
 0x400   : > { %v3644_v14 = vld [vmem:[#allocation2 + $0x112] sm:$0xff]  ;;  %v3643_v29 = vld [vmem:[#allocation2 + $0x10a] sm:$0xff] }
 0x401   : > { %v3105_v50 = vpop.f32.mrf.mxu1  ;;  %6269 = vmatmul.mubr.msk.bf16.gmra.mxu1 %vm968_vm1, %v3669_v2  ;;  %v8451_v31 = vpop.f32.mrf.mxu0  ;;  %v3670_v20 = vpack.c.bf16 %v3644_v14, %v3643_v29 }
 0x402   : > { %v8453_v46 = vadd.f32 %v3105_v50, %v2828_v16  ;;  %6272 = vmatprep.mubr.msk.bf16.mxu1 %vm6572_vm0, %v9068_v43  ;;  %v9290_v50 = vld [vmem:[#allocation111_spill] sm:$0xff] }
 0x403   : > { %v6082_v41 = vpop.f32.mrf.mxu1  ;;  %v6310_v26 = vpop.f32.mrf.mxu0  ;;  %v2830_v16 = vadd.f32 %v9290_v50, %v8086_v58 }
 0x405   : > { %v3108_v0 = vpop.f32.mrf.mxu1  ;;  %v8459_v34 = vpop.f32.mrf.mxu0 }
 0x406   : > { %v8461_v55 = vadd.f32 %v3108_v0, %v2829_v7  ;;  %v2831_v7 = vadd.f32 %v7835_v57, %v8097_v48  ;;  %v3646_v0 = vld [vmem:[#allocation2 + $0x122] sm:$0xff] }
 0x407   : > { %v6083_v2 = vpop.f32.mrf.mxu1  ;;  %v6311_v53 = vpop.f32.mrf.mxu0 }
 0x408   : > { %v3645_v2 = vld [vmem:[#allocation2 + $0x11a] sm:$0xff] }
 0x409   : > { %v3113_v35 = vpop.f32.mrf.mxu1  ;;  %6273 = vmatmul.mubr.msk.bf16.gmra.mxu1 %vm968_vm1, %v3670_v20  ;;  %v8466_v41 = vpop.f32.mrf.mxu0  ;;  %v3671_v50 = vpack.c.bf16 %v3646_v0, %v3645_v2 }
 0x40a   : > { %v8468_v26 = vadd.f32 %v3113_v35, %v2830_v16  ;;  %6276 = vmatprep.mubr.msk.bf16.mxu1 %vm6572_vm0, %v9068_v43  ;;  %v2832_v35 = vadd.f32 %v7842_v3, %v8107_v44  ;;  %v3647_v44 = vld [vmem:[#allocation2 + $0x12a] sm:$0xff] }
 0x40b   : > { %v6086_v37 = vpop.f32.mrf.mxu1  ;;  %v6314_v17 = vpop.f32.mrf.mxu0 }
 0x40d   : > { %v3116_v14 = vpop.f32.mrf.mxu1  ;;  %v8474_v29 = vpop.f32.mrf.mxu0 }
 0x40e   : > { %v8476_v58 = vadd.f32 %v3116_v14, %v2831_v7  ;;  %v2833_v7 = vadd.f32 %v7857_v11, %v8118_v1  ;;  %v3648_v14 = vld [vmem:[#allocation2 + $0x132] sm:$0xff] }
 0x40f   : > { %v6087_v20 = vpop.f32.mrf.mxu1  ;;  %v6315_v53 = vpop.f32.mrf.mxu0 }
 0x410   : > { %9291 = vst [vmem:[#allocation85_spill] sm:$0xff] %v8476_v58 }
 0x411   : > { %v3121_v16 = vpop.f32.mrf.mxu1  ;;  %6277 = vmatmul.mubr.msk.bf16.gmra.mxu1 %vm968_vm1, %v3671_v50  ;;  %v8481_v37 = vpop.f32.mrf.mxu0  ;;  %v3672_v50 = vpack.c.bf16 %v3648_v14, %v3647_v44 }
 0x412   : > { %v8483_v17 = vadd.f32 %v3121_v16, %v2832_v35  ;;  %6280 = vmatprep.mubr.msk.bf16.mxu1 %vm6572_vm0, %v9068_v43  ;;  %v2834_v35 = vadd.f32 %v7866_v22, %v8128_v38  ;;  %v3649_v38 = vld [vmem:[#allocation2 + $0x13a] sm:$0xff] }
 0x413   : > { %v6090_v57 = vpop.f32.mrf.mxu1  ;;  %v6318_v48 = vpop.f32.mrf.mxu0 }
 0x414   : > { %9292 = vst [vmem:[#allocation45_spill] sm:$0xff] %v8483_v17 }
 0x415   : > { %v3124_v0 = vpop.f32.mrf.mxu1  ;;  %v8489_v2 = vpop.f32.mrf.mxu0 }
 0x416   : > { %v8491_v3 = vadd.f32 %v3124_v0, %v2833_v7  ;;  %v2835_v7 = vadd.f32 %v7881_v25, %v8139_v62  ;;  %v3650_v0 = vld [vmem:[#allocation2 + $0x142] sm:$0xff] }
 0x417   : > { %v6091_v20 = vpop.f32.mrf.mxu1  ;;  %v6319_v53 = vpop.f32.mrf.mxu0 }
 0x418   : > { %9293 = vst [vmem:[#allocation19_spill] sm:$0xff] %v8491_v3  ;;  %v9315_v3 = vld [vmem:[#allocation82_spill] sm:$0xff] }
 0x419   : > { %v3129_v16 = vpop.f32.mrf.mxu1  ;;  %6281 = vmatmul.mubr.msk.bf16.gmra.mxu1 %vm968_vm1, %v3672_v50  ;;  %v8496_v57 = vpop.f32.mrf.mxu0  ;;  %v3673_v50 = vpack.c.bf16 %v3650_v0, %v3649_v38 }
 0x41a   : > { %v8498_v48 = vadd.f32 %v3129_v16, %v2834_v35  ;;  %6284 = vmatprep.mubr.msk.bf16.mxu1 %vm6572_vm0, %v9068_v43  ;;  %v2836_v35 = vadd.f32 %v7890_v32, %v8149_v8  ;;  %v3651_v8 = vld [vmem:[#allocation2 + $0x14a] sm:$0xff] }
 0x41b   : > { %v6094_v11 = vpop.f32.mrf.mxu1  ;;  %v6322_v1 = vpop.f32.mrf.mxu0 }
 0x41c   : > { %9294 = vst [vmem:[#allocation88_spill] sm:$0xff] %v8498_v48  ;;  %v9314_v48 = vld [vmem:[#allocation11_spill] sm:$0xff] }
 0x41d   : > { %v3132_v14 = vpop.f32.mrf.mxu1  ;;  %v8504_v44 = vpop.f32.mrf.mxu0 }
 0x41e   : > { %v8506_v22 = vadd.f32 %v3132_v14, %v2835_v7  ;;  %v2837_v7 = vadd.f32 %v7905_v45, %v8160_v9  ;;  %v3652_v14 = vld [vmem:[#allocation2 + $0x152] sm:$0xff] }
 0x41f   : > { %v6095_v20 = vpop.f32.mrf.mxu1  ;;  %v6323_v53 = vpop.f32.mrf.mxu0 }
 0x420   : > { %9295 = vst [vmem:[#allocation46_spill] sm:$0xff] %v8506_v22 }
 0x421   : > { %v3137_v16 = vpop.f32.mrf.mxu1  ;;  %6285 = vmatmul.mubr.msk.bf16.gmra.mxu1 %vm968_vm1, %v3673_v50  ;;  %v8511_v11 = vpop.f32.mrf.mxu0  ;;  %v3674_v50 = vpack.c.bf16 %v3652_v14, %v3651_v8  ;;  %v3654_v14 = vld [vmem:[#allocation2 + $0x162] sm:$0xff] }
 0x422   : > { %v8513_v1 = vadd.f32 %v3137_v16, %v2836_v35  ;;  %6288 = vmatprep.mubr.msk.bf16.mxu1 %vm6572_vm0, %v9068_v43  ;;  %v2838_v35 = vadd.f32 %v7914_v39, %v8170_v10 }
 0x423   : > { %v6098_v25 = vpop.f32.mrf.mxu1  ;;  %v6326_v62 = vpop.f32.mrf.mxu0 }
 0x424   : > { %9296 = vst [vmem:[#allocation20_spill] sm:$0xff] %v8513_v1 }
 0x425   : > { %v3140_v0 = vpop.f32.mrf.mxu1  ;;  %v8519_v38 = vpop.f32.mrf.mxu0 }
 0x426   : > { %v8521_v32 = vadd.f32 %v3140_v0, %v2837_v7  ;;  %v2839_v7 = vadd.f32 %v7929_v47, %v8181_v13  ;;  %v3653_v0 = vld [vmem:[#allocation2 + $0x15a] sm:$0xff]  ;;  %v3655_v47 = vld [vmem:[#allocation2 + $0x16a] sm:$0xf] }
 0x427   : > { %v6099_v20 = vpop.f32.mrf.mxu1  ;;  %v6327_v53 = vpop.f32.mrf.mxu0 }
 0x428   : > { %9297 = vst [vmem:[#allocation90_spill] sm:$0xff] %v8521_v32  ;;  %v9305_v32 = vld [vmem:[#allocation9_spill] sm:$0xff] }
 0x429   : > { %v3145_v16 = vpop.f32.mrf.mxu1  ;;  %6289 = vmatmul.mubr.msk.bf16.gmra.mxu1 %vm968_vm1, %v3674_v50  ;;  %v8526_v25 = vpop.f32.mrf.mxu0  ;;  %v3675_v50 = vpack.c.bf16 %v3654_v14, %v3653_v0 }
 0x42a   : > { %v8528_v62 = vadd.f32 %v3145_v16, %v2838_v35  ;;  %6292 = vmatprep.mubr.msk.bf16.mxu1 %vm6572_vm0, %v9068_v43  ;;  %v9300_v35 = vld [vmem:[#allocation112_spill] sm:$0xff] }
 0x42b   : > { %v6102_v45 = vpop.f32.mrf.mxu1  ;;  %v6330_v9 = vpop.f32.mrf.mxu0  ;;  %v2840_v16 = vadd.f32 %v9300_v35, %v8191_v59  ;;  %v3676_v59 = vpack.c.bf16 %v3655_v47, %v3655_v47  ;;  %v9308_v47 = vld [vmem:[#allocation33_spill] sm:$0xff] }
 0x42c   : > { %9298 = vst [vmem:[#allocation47_spill] sm:$0xff] %v8528_v62 }
 0x42d   : > { %v3148_v8 = vpop.f32.mrf.mxu1  ;;  %v8534_v20 = vpop.f32.mrf.mxu0 }
 0x42e   : > { %v8536_v39 = vadd.f32 %v3148_v8, %v2839_v7  ;;  %v9302_v8 = vld [vmem:[#allocation31_spill] sm:$0xff] }
 0x42f   : > { %v6103_v10 = vpop.f32.mrf.mxu1  ;;  %v6331_v53 = vpop.f32.mrf.mxu0 }
 0x430   : > { %9299 = vst [vmem:[#allocation22_spill] sm:$0xff] %v8536_v39  ;;  %v9303_v10 = vld [vmem:[#allocation113_spill] sm:$0xff] }
 0x431   : > { %v3153_v62 = vpop.f32.mrf.mxu1  ;;  %6293 = vmatmul.mubr.msk.bf16.gmra.mxu1 %vm968_vm1, %v3675_v50  ;;  %v8541_v45 = vpop.f32.mrf.mxu0  ;;  %v2841_v53 = vadd.f32 %v9303_v10, %v9302_v8  ;;  %v9309_v10 = vld [vmem:[#allocation115_spill] sm:$0xff] }
 0x432   : > { %v8543_v9 = vadd.f32 %v3153_v62, %v2840_v16  ;;  %6296 = vmatprep.mubr.msk.bf16.mxu1 %vm6572_vm0, %v9068_v43  ;;  %v9306_v62 = vld [vmem:[#allocation114_spill] sm:$0xff] }
 0x433   : > { %v6106_v13 = vpop.f32.mrf.mxu1  ;;  %v6334_v7 = vpop.f32.mrf.mxu0  ;;  %v2842_v16 = vadd.f32 %v9306_v62, %v9305_v32 }
 0x434   : > { %9301 = vst [vmem:[#allocation93_spill] sm:$0xff] %v8543_v9 }
 0x435   : > { %v3156_v0 = vpop.f32.mrf.mxu1  ;;  %v8549_v14 = vpop.f32.mrf.mxu0 }
 0x436   : > { %v8551_v35 = vadd.f32 %v3156_v0, %v2841_v53  ;;  %v2843_v53 = vadd.f32 %v9309_v10, %v9308_v47  ;;  %v2845_v47 = vadd.f32 %v9315_v3, %v9314_v48 }
 0x437   : > { %v6107_v50 = vpop.f32.mrf.mxu1  ;;  %v6335_v39 = vpop.f32.mrf.mxu0 }
 0x438   : > { %9304 = vst [vmem:[#allocation48_spill] sm:$0xff] %v8551_v35  ;;  %v9312_v35 = vld [vmem:[#allocation116_spill] sm:$0xff] }
 0x439   : > { %v3161_v9 = vpop.f32.mrf.mxu1  ;;  %6297 = vmatmul.mubr.msk.bf16.gmra.mxu1 %vm968_vm1, %v3676_v59  ;;  %v8556_v1 = vpop.f32.mrf.mxu0  ;;  %v9311_v59 = vld [vmem:[#allocation68_spill] sm:$0xff] }
 0x43a   : > { %v8558_v13 = vadd.f32 %v3161_v9, %v2842_v16  ;;  %6392 = vmatprep.mubr.msk.bf16.mxu1 %vm6572_vm0, %v9068_v43  ;;  %v2844_v22 = vadd.f32 %v9312_v35, %v9311_v59 }
 0x43b   : > { %v6110_v7 = vpop.f32.mrf.mxu1  ;;  %v6338_v8 = vpop.f32.mrf.mxu0 }
 0x43c   : > { %9307 = vst [vmem:[#allocation24_spill] sm:$0xff] %v8558_v13 }
 0x43d   : > { %v3164_v0 = vpop.f32.mrf.mxu1  ;;  %v8564_v39 = vpop.f32.mrf.mxu0 }
 0x43e   : > { %v8566_v50 = vadd.f32 %v3164_v0, %v2843_v53 }
 0x43f   : > { %v6111_v32 = vpop.f32.mrf.mxu1  ;;  %v6339_v62 = vpop.f32.mrf.mxu0 }
 0x440   : > { %9310 = vst [vmem:[#allocation95_spill] sm:$0xff] %v8566_v50  ;;  %v9317_v62 = vld [vmem:[#allocation37_spill] sm:$0xff]  ;;  %v9318_v50 = vld [vmem:[#allocation3_spill] sm:$0xff] }
 0x441   : > { %v3169_v9 = vpop.f32.mrf.mxu1  ;;  %v8570_v16 = vpop.f32.mrf.mxu0  ;;  %v2846_v35 = vadd.f32 %v9318_v50, %v9317_v62 }
 0x442   : > { %v8572_v13 = vadd.f32 %v3169_v9, %v2844_v22 }
 0x443   : > { %v6114_v7 = vpop.f32.mrf.mxu1  ;;  %v6342_v8 = vpop.f32.mrf.mxu0 }
 0x444   : > { %9313 = vst [vmem:[#allocation49_spill] sm:$0xff] %v8572_v13  ;;  %v9320_v8 = vld [vmem:[#allocation55_spill] sm:$0xff] }
 0x445   : > { %v3172_v10 = vpop.f32.mrf.mxu1  ;;  %v8576_v17 = vpop.f32.mrf.mxu0  ;;  %v2847_v3 = vadd.f32 %v9320_v8, %v8269_v60 }
 0x446   : > { %v8578_v53 = vadd.f32 %v3172_v10, %v2845_v47 }
 0x447   : > { %v6115_v0 = vpop.f32.mrf.mxu1  ;;  %v6343_v32 = vpop.f32.mrf.mxu0 }
 0x448   : > { %9316 = vst [vmem:[#allocation26_spill] sm:$0xff] %v8578_v53  ;;  %v9322_v32 = vld [vmem:[#allocation21_spill] sm:$0xff] }
 0x449   : > { %v3177_v59 = vpop.f32.mrf.mxu1  ;;  %v8582_v58 = vpop.f32.mrf.mxu0  ;;  %v2848_v50 = vadd.f32 %v9322_v32, %v8276_v33 }
 0x44a   : > { %v8584_v22 = vadd.f32 %v3177_v59, %v2846_v35 }
 0x44b   : > { %v6118_v9 = vpop.f32.mrf.mxu1  ;;  %v6346_v7 = vpop.f32.mrf.mxu0 }
 0x44c   : > { %9319 = vst [vmem:[#allocation98_spill] sm:$0xff] %v8584_v22 }
 0x44d   : > { %v3180_v48 = vpop.f32.mrf.mxu1  ;;  %v8588_v13 = vpop.f32.mrf.mxu0 }
 0x44e   : > { %v8590_v47 = vadd.f32 %v3180_v48, %v2847_v3  ;;  %v9325_v3 = vld [vmem:[#allocation4_spill] sm:$0xff] }
 0x44f   : > { %v6119_v10 = vpop.f32.mrf.mxu1  ;;  %v6347_v0 = vpop.f32.mrf.mxu0  ;;  %v3574_v48 = vadd.f32 %v9325_v3, %v8290_v61 }
 0x450   : > { %9321 = vst [vmem:[#allocation50_spill] sm:$0xff] %v8590_v47 }
 0x451   : > { %v3185_v62 = vpop.f32.mrf.mxu1  ;;  %v8594_v53 = vpop.f32.mrf.mxu0 }
 0x452   : > { %9323 = vst [vmem:[#allocation28_spill] sm:$0xff] %v8594_v53  ;;  %v8596_v35 = vadd.f32 %v3185_v62, %v2848_v50  ;;  %v9327_v50 = vld [vmem:[#allocation57_spill] sm:$0xff] }
 0x453   : > { %v6122_v59 = vpop.f32.mrf.mxu1  ;;  %v6350_v9 = vpop.f32.mrf.mxu0  ;;  %v3575_v62 = vadd.f32 %v9327_v50, %v8300_v56 }
 0x454   : > { %9324 = vst [vmem:[#allocation100_spill] sm:$0xff] %v8596_v35  ;;  %v8610_v59 = vld [vmem:[%s9007_s5] ss:$0 sm:$0xff] }
 0x455   : > { %v3188_v7 = vpop.f32.mrf.mxu1  ;;  %v8598_v22 = vpop.f32.mrf.mxu0 }
 0x457   : > { %v6123_v60 = vpop.f32.mrf.mxu1  ;;  %v6351_v8 = vpop.f32.mrf.mxu0 }
 0x459   : > { %v3791_v10 = vpop.f32.mrf.mxu1  ;;  %v8602_v0 = vpop.f32.mrf.mxu0 }
 0x45a   : > { %9326 = vst [vmem:[#allocation51_spill] sm:$0xff] %v8602_v0  ;;  %v3957_v47 = vadd.f32 %v3791_v10, %v3574_v48 }
 0x45b   : > { %v6218_v33 = vpop.f32.mrf.mxu1  ;;  %v6354_v32 = vpop.f32.mrf.mxu0 }
 0x45c   : > { %v4340_v53 = vadd.f32 %v8436_v23, %v3957_v47  ;;  %v9329_v23 = vld [vmem:[#allocation23_spill] sm:$0xff] }
 0x45d   : > { %v3794_v9 = vpop.f32.mrf.mxu1  ;;  %v8612_v7 = vpop.f32.mrf.mxu0  ;;  %v3576_v47 = vadd.f32 %v9329_v23, %v8308_v12 }
 0x45e   : > { %9328 = vst [vmem:[#allocation30_spill] sm:$0xff] %v8612_v7  ;;  %v3958_v61 = vadd.f32 %v3794_v9, %v3575_v62  ;;  %v4388_v3 = vadd.f32 %v8610_v59, %v4340_v53  ;;  %v9331_v9 = vld [vmem:[#allocation87_spill] sm:$0xff] }
 0x45f   : > { %v6219_v60 = vpop.f32.mrf.mxu1  ;;  %v6355_v8 = vpop.f32.mrf.mxu0  ;;  %v3577_v53 = vadd.f32 %v9331_v9, %v8318_v24 }
 0x460   : > { %v4341_v48 = vadd.f32 %v8444_v36, %v3958_v61  ;;  %v4429_v0 = vmax.f32 %v4388_v3, 0.0 }
 0x461   : > { %v3799_v10 = vpop.f32.mrf.mxu1  ;;  %v8618_v56 = vpop.f32.mrf.mxu0 }
 0x462   : > { %9330 = vst [vmem:[#allocation102_spill] sm:$0xff] %v8618_v56  ;;  %v4389_v33 = vadd.f32 %v8610_v59, %v4341_v48  ;;  %v3959_v32 = vadd.f32 %v3799_v10, %v3576_v47 }
 0x463   : > { %v6222_v50 = vpop.f32.mrf.mxu1  ;;  %v6358_v35 = vpop.f32.mrf.mxu0 }
 0x464   : > { %v4430_v7 = vmax.f32 %v4389_v33, 0.0  ;;  %v4342_v62 = vadd.f32 %v8451_v31, %v3959_v32  ;;  %v9332_v35 = vld [vmem:[#allocation5_spill] sm:$0xff]  ;;  %v9333_v50 = vld [vmem:[#allocation59_spill] sm:$0xff] }
 0x465   : > { %v3802_v60 = vpop.f32.mrf.mxu1  ;;  %v8624_v36 = vpop.f32.mrf.mxu0  ;;  %v3578_v3 = vadd.f32 %v9332_v35, %v8326_v42 }
 0x466   : > { %v4470_v61 = vpack.c.bf16 %v4430_v7, %v4429_v0  ;;  %v3960_v12 = vadd.f32 %v3802_v60, %v3577_v53  ;;  %v4390_v56 = vadd.f32 %v8610_v59, %v4342_v62  ;;  %v3579_v62 = vadd.f32 %v9333_v50, %v8336_v19 }
 0x467   : > { %v6223_v8 = vpop.f32.mrf.mxu1  ;;  %v6359_v23 = vpop.f32.mrf.mxu0 }
 0x468   : > { %v4343_v48 = vadd.f32 %v8459_v34, %v3960_v12  ;;  %6393 = vmatmul.mubr.msk.bf16.vlgmr.msra.gmra.mxu1 %vm968_vm1, %v4470_v61  ;;  %v4431_v33 = vmax.f32 %v4390_v56, 0.0  ;;  %v9334_v56 = vld [vmem:[#allocation25_spill] sm:$0xff] }
 0x469   : > { %v3807_v31 = vpop.f32.mrf.mxu1  ;;  %v8631_v47 = vpop.f32.mrf.mxu0  ;;  %6396 = vmatprep.mubr.msk.bf16.mxu1 %vm6572_vm0, %v9068_v43 }
 0x46a   : > { %v4391_v24 = vadd.f32 %v8610_v59, %v4343_v48  ;;  %v3961_v0 = vadd.f32 %v3807_v31, %v3578_v3  ;;  %v3580_v48 = vadd.f32 %v9334_v56, %v8344_v4 }
 0x46b   : > { %v6226_v7 = vpop.f32.mrf.mxu1  ;;  %v6362_v10 = vpop.f32.mrf.mxu0 }
 0x46c   : > { %v4432_v32 = vmax.f32 %v4391_v24, 0.0  ;;  %v4344_v34 = vadd.f32 %v8466_v41, %v3961_v0  ;;  %v9335_v10 = vld [vmem:[#allocation6_spill] sm:$0xff] }
 0x46d   : > { %v3810_v9 = vpop.f32.mrf.mxu1  ;;  %v8639_v42 = vpop.f32.mrf.mxu0 }
 0x46e   : > { %v4471_v53 = vpack.c.bf16 %v4432_v32, %v4431_v33  ;;  %v3962_v60 = vadd.f32 %v3810_v9, %v3579_v62  ;;  %v4392_v8 = vadd.f32 %v8610_v59, %v4344_v34  ;;  %v3581_v33 = vadd.f32 %v9335_v10, %v8354_v49 }
 0x46f   : > { %v6227_v61 = vpop.f32.mrf.mxu1  ;;  %v6363_v12 = vpop.f32.mrf.mxu0 }
 0x470   : > { %v4345_v23 = vadd.f32 %v8474_v29, %v3962_v60  ;;  %6397 = vmatmul.mubr.msk.bf16.gmra.mxu1 %vm968_vm1, %v4471_v53  ;;  %v4433_v0 = vmax.f32 %v4392_v8, 0.0  ;;  %v9336_v61 = vld [vmem:[#allocation61_spill] sm:$0xff] }
 0x471   : > { %v3815_v41 = vpop.f32.mrf.mxu1  ;;  %v8646_v35 = vpop.f32.mrf.mxu0  ;;  %6400 = vmatprep.mubr.msk.bf16.mxu1 %vm6572_vm0, %v9068_v43  ;;  %v3582_v12 = vadd.f32 %v9336_v61, %v8362_v6 }
 0x472   : > { %v4393_v19 = vadd.f32 %v8610_v59, %v4345_v23  ;;  %v3963_v3 = vadd.f32 %v3815_v41, %v3580_v48 }
 0x473   : > { %v6230_v31 = vpop.f32.mrf.mxu1  ;;  %v6366_v24 = vpop.f32.mrf.mxu0 }
 0x474   : > { %v4434_v7 = vmax.f32 %v4393_v19, 0.0  ;;  %v4346_v29 = vadd.f32 %v8481_v37, %v3963_v3  ;;  %v9337_v3 = vld [vmem:[#allocation27_spill] sm:$0xff] }
 0x475   : > { %v3818_v32 = vpop.f32.mrf.mxu1  ;;  %v8654_v4 = vpop.f32.mrf.mxu0  ;;  %v3583_v31 = vadd.f32 %v9337_v3, %v8372_v5 }
 0x476   : > { %v4472_v34 = vpack.c.bf16 %v4434_v7, %v4433_v0  ;;  %v3964_v50 = vadd.f32 %v3818_v32, %v3581_v33  ;;  %v4394_v53 = vadd.f32 %v8610_v59, %v4346_v29 }
 0x477   : > { %v6231_v62 = vpop.f32.mrf.mxu1  ;;  %v6367_v9 = vpop.f32.mrf.mxu0 }
 0x478   : > { %v4347_v60 = vadd.f32 %v8489_v2, %v3964_v50  ;;  %6401 = vmatmul.mubr.msk.bf16.gmra.mxu1 %vm968_vm1, %v4472_v34  ;;  %v4435_v41 = vmax.f32 %v4394_v53, 0.0  ;;  %v9338_v34 = vld [vmem:[#allocation92_spill] sm:$0xff] }
 0x479   : > { %v3823_v37 = vpop.f32.mrf.mxu1  ;;  %v8661_v8 = vpop.f32.mrf.mxu0  ;;  %6404 = vmatprep.mubr.msk.bf16.mxu1 %vm6572_vm0, %v9068_v43  ;;  %v3584_v50 = vadd.f32 %v9338_v34, %v8380_v30  ;;  %v9341_v34 = vld [vmem:[#allocation29_spill] sm:$0xff] }
 0x47a   : > { %v4395_v49 = vadd.f32 %v8610_v59, %v4347_v60  ;;  %v3965_v23 = vadd.f32 %v3823_v37, %v3582_v12  ;;  %v9339_v37 = vld [vmem:[#allocation7_spill] sm:$0xff] }
 0x47b   : > { %v6234_v56 = vpop.f32.mrf.mxu1  ;;  %v6370_v48 = vpop.f32.mrf.mxu0 }
 0x47c   : > { %v4436_v19 = vmax.f32 %v4395_v49, 0.0  ;;  %v4348_v2 = vadd.f32 %v8496_v57, %v3965_v23  ;;  %v3585_v49 = vadd.f32 %v9339_v37, %v8388_v54 }
 0x47d   : > { %v3826_v24 = vpop.f32.mrf.mxu1  ;;  %v8669_v6 = vpop.f32.mrf.mxu0 }
 0x47e   : > { %v4473_v0 = vpack.c.bf16 %v4436_v19, %v4435_v41  ;;  %v3966_v7 = vadd.f32 %v3826_v24, %v3583_v31  ;;  %v4396_v33 = vadd.f32 %v8610_v59, %v4348_v2  ;;  %v9340_v31 = vld [vmem:[#allocation62_spill] sm:$0xff] }
 0x47f   : > { %v6235_v29 = vpop.f32.mrf.mxu1  ;;  %v6371_v10 = vpop.f32.mrf.mxu0  ;;  %v3586_v24 = vadd.f32 %v9340_v31, %v8395_v28 }
 0x480   : > { %v4349_v32 = vadd.f32 %v8504_v44, %v3966_v7  ;;  %6405 = vmatmul.mubr.msk.bf16.gmra.mxu1 %vm968_vm1, %v4473_v0  ;;  %v4437_v61 = vmax.f32 %v4396_v33, 0.0 }
 0x481   : > { %v3831_v57 = vpop.f32.mrf.mxu1  ;;  %v8676_v62 = vpop.f32.mrf.mxu0  ;;  %6408 = vmatprep.mubr.msk.bf16.mxu1 %vm6572_vm0, %v9068_v43 }
 0x482   : > { %v4397_v5 = vadd.f32 %v8610_v59, %v4349_v32  ;;  %v3967_v9 = vadd.f32 %v3831_v57, %v3584_v50  ;;  %v3587_v50 = vadd.f32 %v9341_v34, %v8403_v15 }
 0x483   : > { %v6238_v53 = vpop.f32.mrf.mxu1  ;;  %v6374_v60 = vpop.f32.mrf.mxu0 }
 0x484   : > { %v4438_v12 = vmax.f32 %v4397_v5, 0.0  ;;  %v4350_v44 = vadd.f32 %v8511_v11, %v3967_v9 }
 0x485   : > { %v3834_v23 = vpop.f32.mrf.mxu1  ;;  %v8684_v30 = vpop.f32.mrf.mxu0 }
 0x486   : > { %v4474_v56 = vpack.c.bf16 %v4438_v12, %v4437_v61  ;;  %v3968_v48 = vadd.f32 %v3834_v23, %v3585_v49  ;;  %v4398_v2 = vadd.f32 %v8610_v59, %v4350_v44  ;;  %v9342_v44 = vld [vmem:[#allocation8_spill] sm:$0xff] }
 0x487   : > { %v6239_v41 = vpop.f32.mrf.mxu1  ;;  %v6375_v19 = vpop.f32.mrf.mxu0  ;;  %v3588_v37 = vadd.f32 %v9342_v44, %v8410_v18 }
 0x488   : > { %v4351_v3 = vadd.f32 %v8519_v38, %v3968_v48  ;;  %6409 = vmatmul.mubr.msk.bf16.gmra.mxu1 %vm968_vm1, %v4474_v56  ;;  %v4439_v33 = vmax.f32 %v4398_v2, 0.0  ;;  %v9343_v2 = vld [vmem:[#allocation64_spill] sm:$0xff] }
 0x489   : > { %v3839_v11 = vpop.f32.mrf.mxu1  ;;  %v8691_v0 = vpop.f32.mrf.mxu0  ;;  %6412 = vmatprep.mubr.msk.bf16.mxu1 %vm6572_vm0, %v9068_v43 }
 0x48a   : > { %v4399_v54 = vadd.f32 %v8610_v59, %v4351_v3  ;;  %v3969_v7 = vadd.f32 %v3839_v11, %v3586_v24  ;;  %v3589_v3 = vadd.f32 %v9343_v2, %v8418_v51 }
 0x48b   : > { %v6242_v29 = vpop.f32.mrf.mxu1  ;;  %v6378_v10 = vpop.f32.mrf.mxu0 }
 0x48c   : > { %v4440_v32 = vmax.f32 %v4399_v54, 0.0  ;;  %v4352_v38 = vadd.f32 %v8526_v25, %v3969_v7 }
 0x48d   : > { %v3842_v57 = vpop.f32.mrf.mxu1  ;;  %v8699_v28 = vpop.f32.mrf.mxu0 }
 0x48e   : > { %v4475_v5 = vpack.c.bf16 %v4440_v32, %v4439_v33  ;;  %v3970_v9 = vadd.f32 %v3842_v57, %v3587_v50  ;;  %v4400_v61 = vadd.f32 %v8610_v59, %v4352_v38  ;;  %v9344_v33 = vld [vmem:[#allocation97_spill] sm:$0xff] }
 0x48f   : > { %v6243_v53 = vpop.f32.mrf.mxu1  ;;  %v6379_v60 = vpop.f32.mrf.mxu0  ;;  %v3590_v32 = vadd.f32 %v9344_v33, %v8425_v52 }
 0x490   : > { %v4353_v12 = vadd.f32 %v8534_v20, %v3970_v9  ;;  %6413 = vmatmul.mubr.msk.bf16.gmra.mxu1 %vm968_vm1, %v4475_v5  ;;  %v4441_v41 = vmax.f32 %v4400_v61, 0.0  ;;  %v9345_v53 = vld [vmem:[#allocation66_spill] sm:$0xff] }
 0x491   : > { %v3847_v25 = vpop.f32.mrf.mxu1  ;;  %v8706_v49 = vpop.f32.mrf.mxu0  ;;  %6416 = vmatprep.mubr.msk.bf16.mxu1 %vm6572_vm0, %v9068_v43  ;;  %v3591_v60 = vadd.f32 %v9345_v53, %v8431_v27 }
 0x492   : > { %v4401_v15 = vadd.f32 %v8610_v59, %v4353_v12  ;;  %v3971_v23 = vadd.f32 %v3847_v25, %v3588_v37 }
 0x493   : > { %v6246_v56 = vpop.f32.mrf.mxu1  ;;  %v6382_v48 = vpop.f32.mrf.mxu0 }
 0x494   : > { %v4442_v19 = vmax.f32 %v4401_v15, 0.0  ;;  %v4354_v20 = vadd.f32 %v8541_v45, %v3971_v23  ;;  %v9346_v56 = vld [vmem:[#allocation10_spill] sm:$0xff] }
 0x495   : > { %v3850_v31 = vpop.f32.mrf.mxu1  ;;  %v8714_v18 = vpop.f32.mrf.mxu0  ;;  %v3592_v48 = vadd.f32 %v9346_v56, %v8438_v63 }
 0x496   : > { %v4476_v24 = vpack.c.bf16 %v4442_v19, %v4441_v41  ;;  %v3972_v11 = vadd.f32 %v3850_v31, %v3589_v3  ;;  %v4402_v29 = vadd.f32 %v8610_v59, %v4354_v20  ;;  %v9347_v31 = vld [vmem:[#allocation35_spill] sm:$0xff] }
 0x497   : > { %v6247_v54 = vpop.f32.mrf.mxu1  ;;  %v6383_v7 = vpop.f32.mrf.mxu0 }
 0x498   : > { %v4355_v10 = vadd.f32 %v8549_v14, %v3972_v11  ;;  %6417 = vmatmul.mubr.msk.bf16.gmra.mxu1 %vm968_vm1, %v4476_v24  ;;  %v4443_v5 = vmax.f32 %v4402_v29, 0.0 }
 0x499   : > { %v3855_v45 = vpop.f32.mrf.mxu1  ;;  %6420 = vmatprep.mubr.msk.bf16.mxu1 %vm6572_vm0, %v9068_v43  ;;  %v8723_v51 = vpop.f32.mrf.mxu0 }
 0x49a   : > { %v4403_v38 = vadd.f32 %v8610_v59, %v4355_v10  ;;  %v3973_v34 = vadd.f32 %v3855_v45, %v3590_v32  ;;  %v9348_v10 = vld [vmem:[#allocation70_spill] sm:$0xff] }
 0x49b   : > { %v6250_v50 = vpop.f32.mrf.mxu1  ;;  %v6386_v57 = vpop.f32.mrf.mxu0  ;;  %v3594_v33 = vadd.f32 %v9348_v10, %v8453_v46  ;;  %v9357_v10 = vld [vmem:[#allocation13_spill] sm:$0xff] }
 0x49c   : > { %v4444_v9 = vmax.f32 %v4403_v38, 0.0  ;;  %v4356_v14 = vadd.f32 %v8556_v1, %v3973_v34 }
 0x49d   : > { %v3858_v61 = vpop.f32.mrf.mxu1  ;;  %v4337_v52 = vpop.f32.mrf.mxu0 }
 0x49e   : > { %v4477_v12 = vpack.c.bf16 %v4444_v9, %v4443_v5  ;;  %v3974_v44 = vadd.f32 %v3858_v61, %v3591_v60  ;;  %v4404_v15 = vadd.f32 %v8610_v59, %v4356_v14  ;;  %v9349_v60 = vld [vmem:[#allocation12_spill] sm:$0xff] }
 0x49f   : > { %v6251_v37 = vpop.f32.mrf.mxu1  ;;  %v6387_v25 = vpop.f32.mrf.mxu0  ;;  %v3596_v61 = vadd.f32 %v9349_v60, %v8468_v26 }
 0x4a0   : > { %v4357_v23 = vadd.f32 %v8564_v39, %v3974_v44  ;;  %6421 = vmatmul.mubr.msk.bf16.gmra.mxu1 %vm968_vm1, %v4477_v12  ;;  %v4445_v20 = vmax.f32 %v4404_v15, 0.0  ;;  %v3593_v39 = vadd.f32 %v9347_v31, %v8446_v40  ;;  %v9350_v37 = vld [vmem:[#allocation28_spill] sm:$0xff]  ;;  %v9351_v15 = vld [vmem:[#allocation85_spill] sm:$0xff] }
 0x4a1   : > { %v3863_v41 = vpop.f32.mrf.mxu1  ;;  %6424 = vmatprep.mubr.msk.bf16.mxu1 %vm6572_vm0, %v9068_v43 }
 0x4a2   : > { %v4405_v27 = vadd.f32 %v8610_v59, %v4357_v23  ;;  %v3975_v1 = vadd.f32 %v3863_v41, %v3592_v48  ;;  %v9352_v23 = vld [vmem:[#allocation72_spill] sm:$0xff] }
 0x4a3   : > { %v6254_v19 = vpop.f32.mrf.mxu1 }
 0x4a4   : > { %v4446_v2 = vmax.f32 %v4405_v27, 0.0  ;;  %v4358_v3 = vadd.f32 %v8570_v16, %v3975_v1  ;;  %v9353_v19 = vld [vmem:[#allocation45_spill] sm:$0xff] }
 0x4a5   : > { %v3866_v24 = vpop.f32.mrf.mxu1 }
 0x4a6   : > { %v4478_v11 = vpack.c.bf16 %v4446_v2, %v4445_v20  ;;  %v3976_v54 = vadd.f32 %v3866_v24, %v3593_v39  ;;  %v4406_v63 = vadd.f32 %v8610_v59, %v4358_v3  ;;  %v9354_v20 = vld [vmem:[#allocation39_spill] sm:$0xff] }
 0x4a7   : > { %v6255_v7 = vpop.f32.mrf.mxu1  ;;  %v3598_v2 = vadd.f32 %v9354_v20, %v9353_v19 }
 0x4a8   : > { %v4359_v29 = vadd.f32 %v8576_v17, %v3976_v54  ;;  %6425 = vmatmul.mubr.msk.bf16.gmra.mxu1 %vm968_vm1, %v4478_v11  ;;  %v4447_v38 = vmax.f32 %v4406_v63, 0.0  ;;  %v3595_v17 = vadd.f32 %v8267_v21, %v8461_v55  ;;  %v9355_v7 = vld [vmem:[#allocation51_spill] sm:$0xff] }
 0x4a9   : > { %v3871_v32 = vpop.f32.mrf.mxu1  ;;  %6428 = vmatprep.mubr.msk.bf16.mxu1 %vm6572_vm0, %v9068_v43 }
 0x4aa   : > { %v4407_v16 = vadd.f32 %v8610_v59, %v4359_v29  ;;  %v3977_v40 = vadd.f32 %v3871_v32, %v3594_v33  ;;  %v9356_v29 = vld [vmem:[#allocation19_spill] sm:$0xff] }
 0x4ab   : > { %v6258_v45 = vpop.f32.mrf.mxu1 }
 0x4ac   : > { %v4448_v34 = vmax.f32 %v4407_v16, 0.0  ;;  %v4360_v50 = vadd.f32 %v8582_v58, %v3977_v40 }
 0x4ad   : > { %v3874_v57 = vpop.f32.mrf.mxu1 }
 0x4ae   : > { %v4479_v5 = vpack.c.bf16 %v4448_v34, %v4447_v38  ;;  %v3978_v9 = vadd.f32 %v3874_v57, %v3595_v17  ;;  %v4408_v46 = vadd.f32 %v8610_v59, %v4360_v50  ;;  %v9358_v38 = vld [vmem:[#allocation30_spill] sm:$0xff]  ;;  %v9359_v50 = vld [vmem:[#allocation88_spill] sm:$0xff] }
 0x4af   : > { %v6259_v14 = vpop.f32.mrf.mxu1  ;;  %v9360_v17 = vld [vmem:[#allocation74_spill] sm:$0xff] }
 0x4b0   : > { %v4361_v53 = vadd.f32 %v8588_v13, %v3978_v9  ;;  %6429 = vmatmul.mubr.msk.bf16.gmra.mxu1 %vm968_vm1, %v4479_v5  ;;  %v4449_v12 = vmax.f32 %v4408_v46, 0.0  ;;  %v3597_v13 = vadd.f32 %v9352_v23, %v9351_v15  ;;  %v3600_v57 = vadd.f32 %v9360_v17, %v9359_v50  ;;  %v9371_v50 = vld [vmem:[#allocation15_spill] sm:$0xff] }
 0x4b1   : > { %v3879_v52 = vpop.f32.mrf.mxu1  ;;  %6432 = vmatprep.mubr.msk.bf16.mxu1 %vm6572_vm0, %v9068_v43 }
 0x4b2   : > { %v4409_v58 = vadd.f32 %v8610_v59, %v4361_v53  ;;  %v3979_v21 = vadd.f32 %v3879_v52, %v3596_v61  ;;  %v9361_v61 = vld [vmem:[#allocation102_spill] sm:$0xff] }
 0x4b3   : > { %v6262_v55 = vpop.f32.mrf.mxu1 }
 0x4b4   : > { %v4450_v44 = vmax.f32 %v4409_v58, 0.0  ;;  %v4362_v25 = vadd.f32 %v9350_v37, %v3979_v21  ;;  %v9362_v58 = vld [vmem:[#allocation46_spill] sm:$0xff]  ;;  %v9363_v21 = vld [vmem:[#allocation40_spill] sm:$0xff] }
 0x4b5   : > { %v3882_v56 = vpop.f32.mrf.mxu1  ;;  %v3601_v55 = vadd.f32 %v9363_v21, %v9362_v58 }
 0x4b6   : > { %v4480_v48 = vpack.c.bf16 %v4450_v44, %v4449_v12  ;;  %v3980_v41 = vadd.f32 %v3882_v56, %v3597_v13  ;;  %v4410_v26 = vadd.f32 %v8610_v59, %v4362_v25  ;;  %v9364_v13 = vld [vmem:[#allocation20_spill] sm:$0xff]  ;;  %v9365_v56 = vld [vmem:[#allocation14_spill] sm:$0xff] }
 0x4b7   : > { %v6263_v27 = vpop.f32.mrf.mxu1 }
 0x4b8   : > { %v4363_v1 = vadd.f32 %v8598_v22, %v3980_v41  ;;  %6433 = vmatmul.mubr.msk.bf16.gmra.mxu1 %vm968_vm1, %v4480_v48  ;;  %v4451_v11 = vmax.f32 %v4410_v26, 0.0  ;;  %v3599_v22 = vadd.f32 %v9357_v10, %v9356_v29  ;;  %v3602_v48 = vadd.f32 %v9365_v56, %v9364_v13  ;;  %v9368_v29 = vld [vmem:[#allocation47_spill] sm:$0xff]  ;;  %v9369_v10 = vld [vmem:[#allocation41_spill] sm:$0xff] }
 0x4b9   : > { %v3887_v3 = vpop.f32.mrf.mxu1  ;;  %6436 = vmatprep.mubr.msk.bf16.mxu1 %vm6572_vm0, %v9068_v43 }
 0x4ba   : > { %v4411_v31 = vadd.f32 %v8610_v59, %v4363_v1  ;;  %v3981_v39 = vadd.f32 %v3887_v3, %v3598_v2  ;;  %v9366_v3 = vld [vmem:[#allocation90_spill] sm:$0xff] }
 0x4bb   : > { %v6266_v24 = vpop.f32.mrf.mxu1 }
 0x4bc   : > { %v4452_v54 = vmax.f32 %v4411_v31, 0.0  ;;  %v4364_v63 = vadd.f32 %v9355_v7, %v3981_v39  ;;  %v9367_v31 = vld [vmem:[#allocation76_spill] sm:$0xff] }
 0x4bd   : > { %v3890_v33 = vpop.f32.mrf.mxu1 }
 0x4be   : > { %v4481_v32 = vpack.c.bf16 %v4452_v54, %v4451_v11  ;;  %v3982_v16 = vadd.f32 %v3890_v33, %v3599_v22  ;;  %v4412_v45 = vadd.f32 %v8610_v59, %v4364_v63  ;;  %v3604_v22 = vadd.f32 %v9369_v10, %v9368_v29 }
 0x4bf   : > { %v6267_v40 = vpop.f32.mrf.mxu1 }
 0x4c0   : > { %v4365_v34 = vadd.f32 %v9358_v38, %v3982_v16  ;;  %6437 = vmatmul.mubr.msk.bf16.gmra.mxu1 %vm968_vm1, %v4481_v32  ;;  %v4453_v53 = vmax.f32 %v4412_v45, 0.0 }
 0x4c1   : > { %v3895_v5 = vpop.f32.mrf.mxu1  ;;  %6440 = vmatprep.mubr.msk.bf16.mxu1 %vm6572_vm0, %v9068_v43 }
 0x4c2   : > { %v4413_v9 = vadd.f32 %v8610_v59, %v4365_v34  ;;  %v3983_v14 = vadd.f32 %v3895_v5, %v3600_v57  ;;  %v9370_v34 = vld [vmem:[#allocation22_spill] sm:$0xff] }
 0x4c3   : > { %v6270_v46 = vpop.f32.mrf.mxu1 }
 0x4c4   : > { %v4454_v60 = vmax.f32 %v4413_v9, 0.0  ;;  %v4366_v52 = vadd.f32 %v9361_v61, %v3983_v14 }
 0x4c5   : > { %v3898_v12 = vpop.f32.mrf.mxu1 }
 0x4c6   : > { %v4482_v44 = vpack.c.bf16 %v4454_v60, %v4453_v53  ;;  %v3984_v37 = vadd.f32 %v3898_v12, %v3601_v55  ;;  %v4414_v15 = vadd.f32 %v8610_v59, %v4366_v52  ;;  %v9372_v53 = vld [vmem:[#allocation93_spill] sm:$0xff]  ;;  %v9373_v60 = vld [vmem:[#allocation78_spill] sm:$0xff] }
 0x4c7   : > { %v6271_v25 = vpop.f32.mrf.mxu1  ;;  %v3606_v61 = vadd.f32 %v9373_v60, %v9372_v53  ;;  %v9384_v53 = vld [vmem:[#allocation98_spill] sm:$0xff]  ;;  %v9385_v60 = vld [vmem:[#allocation83_spill] sm:$0xff] }
 0x4c8   : > { %v4367_v23 = vadd.f32 %v8624_v36, %v3984_v37  ;;  %6441 = vmatmul.mubr.msk.bf16.gmra.mxu1 %vm968_vm1, %v4482_v44  ;;  %v4455_v19 = vmax.f32 %v4414_v15, 0.0  ;;  %v3603_v36 = vadd.f32 %v9367_v31, %v9366_v3  ;;  %v9374_v37 = vld [vmem:[#allocation48_spill] sm:$0xff]  ;;  %v9375_v25 = vld [vmem:[#allocation42_spill] sm:$0xff] }
 0x4c9   : > { %v3903_v41 = vpop.f32.mrf.mxu1  ;;  %6444 = vmatprep.mubr.msk.bf16.mxu1 %vm6572_vm0, %v9068_v43 }
 0x4ca   : > { %v4415_v27 = vadd.f32 %v8610_v59, %v4367_v23  ;;  %v3985_v26 = vadd.f32 %v3903_v41, %v3602_v48 }
 0x4cb   : > { %v6274_v1 = vpop.f32.mrf.mxu1 }
 0x4cc   : > { %v4456_v20 = vmax.f32 %v4415_v27, 0.0  ;;  %v4368_v2 = vadd.f32 %v8631_v47, %v3985_v26  ;;  %v9376_v27 = vld [vmem:[#allocation24_spill] sm:$0xff] }
 0x4cd   : > { %v3906_v39 = vpop.f32.mrf.mxu1  ;;  %v9377_v26 = vld [vmem:[#allocation16_spill] sm:$0xff] }
 0x4ce   : > { %v4483_v24 = vpack.c.bf16 %v4456_v20, %v4455_v19  ;;  %v3986_v11 = vadd.f32 %v3906_v39, %v3603_v36  ;;  %v4416_v7 = vadd.f32 %v8610_v59, %v4368_v2  ;;  %v3608_v1 = vadd.f32 %v9377_v26, %v9376_v27  ;;  %v9378_v39 = vld [vmem:[#allocation95_spill] sm:$0xff] }
 0x4cf   : > { %v6275_v54 = vpop.f32.mrf.mxu1 }
 0x4d0   : > { %v4369_v63 = vadd.f32 %v8639_v42, %v3986_v11  ;;  %6445 = vmatmul.mubr.msk.bf16.gmra.mxu1 %vm968_vm1, %v4483_v24  ;;  %v4457_v40 = vmax.f32 %v4416_v7, 0.0  ;;  %v3605_v42 = vadd.f32 %v9371_v50, %v9370_v34  ;;  %v9379_v24 = vld [vmem:[#allocation80_spill] sm:$0xff]  ;;  %v9382_v50 = vld [vmem:[#allocation26_spill] sm:$0xff] }
 0x4d1   : > { %v3911_v33 = vpop.f32.mrf.mxu1  ;;  %6448 = vmatprep.mubr.msk.bf16.mxu1 %vm6572_vm0, %v9068_v43 }
 0x4d2   : > { %v4417_v47 = vadd.f32 %v8610_v59, %v4369_v63  ;;  %v3987_v32 = vadd.f32 %v3911_v33, %v3604_v22  ;;  %v9380_v22 = vld [vmem:[#allocation49_spill] sm:$0xff]  ;;  %v9381_v33 = vld [vmem:[#allocation43_spill] sm:$0xff] }
 0x4d3   : > { %v6278_v16 = vpop.f32.mrf.mxu1 }
 0x4d4   : > { %v4458_v45 = vmax.f32 %v4417_v47, 0.0  ;;  %v4370_v38 = vadd.f32 %v8646_v35, %v3987_v32  ;;  %v3610_v47 = vadd.f32 %v9381_v33, %v9380_v22  ;;  %v6523_v22 = vld [vmem:[%s6699_s22 + $0x8] sm:$0xff] }
 0x4d5   : > { %v3914_v17 = vpop.f32.mrf.mxu1 }
 0x4d6   : > { %v4484_v57 = vpack.c.bf16 %v4458_v45, %v4457_v40  ;;  %v3988_v5 = vadd.f32 %v3914_v17, %v3605_v42  ;;  %v4418_v14 = vadd.f32 %v8610_v59, %v4370_v38  ;;  %v9383_v42 = vld [vmem:[#allocation17_spill] sm:$0xff] }
 0x4d7   : > { %v6279_v9 = vpop.f32.mrf.mxu1 }
 0x4d8   : > { %v4371_v46 = vadd.f32 %v8654_v4, %v3988_v5  ;;  %6449 = vmatmul.mubr.msk.bf16.gmra.mxu1 %vm968_vm1, %v4484_v57  ;;  %v4459_v55 = vmax.f32 %v4418_v14, 0.0  ;;  %v3607_v4 = vadd.f32 %v9375_v25, %v9374_v37  ;;  %v9387_v37 = vld [vmem:[#allocation44_spill] sm:$0xff] }
 0x4d9   : > { %v3919_v52 = vpop.f32.mrf.mxu1  ;;  %6452 = vmatprep.mubr.msk.bf16.mxu1 %vm6572_vm0, %v9068_v43 }
 0x4da   : > { %v4419_v35 = vadd.f32 %v8610_v59, %v4371_v46  ;;  %v3989_v58 = vadd.f32 %v3919_v52, %v3606_v61  ;;  %v3612_v61 = vadd.f32 %v9385_v60, %v9384_v53 }
 0x4db   : > { %v6282_v21 = vpop.f32.mrf.mxu1 }
 0x4dc   : > { %v4460_v12 = vmax.f32 %v4419_v35, 0.0  ;;  %v4372_v44 = vadd.f32 %v8661_v8, %v3989_v58 }
 0x4dd   : > { %v3922_v15 = vpop.f32.mrf.mxu1 }
 0x4de   : > { %v4485_v23 = vpack.c.bf16 %v4460_v12, %v4459_v55  ;;  %v3990_v13 = vadd.f32 %v3922_v15, %v3607_v4  ;;  %v4420_v48 = vadd.f32 %v8610_v59, %v4372_v44  ;;  %v9386_v44 = vld [vmem:[#allocation50_spill] sm:$0xff] }
 0x4df   : > { %v6283_v56 = vpop.f32.mrf.mxu1 }
 0x4e0   : > { %v4373_v41 = vadd.f32 %v8669_v6, %v3990_v13  ;;  %6453 = vmatmul.mubr.msk.bf16.gmra.mxu1 %vm968_vm1, %v4485_v23  ;;  %v4461_v3 = vmax.f32 %v4420_v48, 0.0  ;;  %v3609_v6 = vadd.f32 %v9379_v24, %v9378_v39  ;;  %v9388_v48 = vld [vmem:[#allocation100_spill] sm:$0xff] }
 0x4e1   : > { %v3927_v19 = vpop.f32.mrf.mxu1  ;;  %6456 = vmatprep.mubr.msk.bf16.mxu1 %vm6572_vm0, %v9068_v43 }
 0x4e2   : > { %v4421_v8 = vadd.f32 %v8610_v59, %v4373_v41  ;;  %v3991_v20 = vadd.f32 %v3927_v19, %v3608_v1  ;;  %v9389_v41 = vld [vmem:[#allocation18_spill] sm:$0xff] }
 0x4e3   : > { %v6286_v2 = vpop.f32.mrf.mxu1  ;;  %v3614_v27 = vadd.f32 %v9389_v41, %v9388_v48 }
 0x4e4   : > { %v4462_v31 = vmax.f32 %v4421_v8, 0.0  ;;  %v4374_v36 = vadd.f32 %v8676_v62, %v3991_v20 }
 0x4e5   : > { %v3930_v11 = vpop.f32.mrf.mxu1 }
 0x4e6   : > { %v4486_v54 = vpack.c.bf16 %v4462_v31, %v4461_v3  ;;  %v3992_v7 = vadd.f32 %v3930_v11, %v3609_v6  ;;  %v4422_v29 = vadd.f32 %v8610_v59, %v4374_v36 }
 0x4e7   : > { %v6287_v63 = vpop.f32.mrf.mxu1 }
 0x4e8   : > { %v4375_v10 = vadd.f32 %v8684_v30, %v3992_v7  ;;  %6457 = vmatmul.mubr.msk.bf16.gmra.mxu1 %vm968_vm1, %v4486_v54  ;;  %v4463_v45 = vmax.f32 %v4422_v29, 0.0  ;;  %v3611_v30 = vadd.f32 %v9383_v42, %v9382_v50  ;;  %v6522_v54 = vld [vmem:[%s6699_s22] sm:$0xff] }
 0x4e9   : > { %v3935_v32 = vpop.f32.mrf.mxu1  ;;  %6460 = vmatprep.mubr.msk.bf16.mxu1 %vm6572_vm0, %v9068_v43 }
 0x4ea   : > { %v4423_v62 = vadd.f32 %v8610_v59, %v4375_v10  ;;  %v3993_v16 = vadd.f32 %v3935_v32, %v3610_v47 }
 0x4eb   : > { %v6290_v40 = vpop.f32.mrf.mxu1 }
 0x4ec   : > { %v4464_v38 = vmax.f32 %v4423_v62, 0.0  ;;  %v4376_v34 = vadd.f32 %v8691_v0, %v3993_v16  ;;  %v6524_v40 = vld [vmem:[%s6699_s22 + $0x10] sm:$0xff] }
 0x4ed   : > { %v3938_v17 = vpop.f32.mrf.mxu1 }
 0x4ee   : > { %v4487_v57 = vpack.c.bf16 %v4464_v38, %v4463_v45  ;;  %v3994_v5 = vadd.f32 %v3938_v17, %v3611_v30  ;;  %v4424_v14 = vadd.f32 %v8610_v59, %v4376_v34  ;;  %v6525_v30 = vld [vmem:[%s6699_s22 + $0x18] sm:$0xff] }
 0x4ef   : > { %v6291_v9 = vpop.f32.mrf.mxu1 }
 0x4f0   : > { %v4377_v46 = vadd.f32 %v8699_v28, %v3994_v5  ;;  %6461 = vmatmul.mubr.msk.bf16.gmra.mxu1 %vm968_vm1, %v4487_v57  ;;  %v4465_v21 = vmax.f32 %v4424_v14, 0.0  ;;  %v3613_v28 = vadd.f32 %v9387_v37, %v9386_v44  ;;  %v6528_v37 = vld [vmem:[%s6699_s22 + $0x30] sm:$0xff] }
 0x4f1   : > { %v3943_v52 = vpop.f32.mrf.mxu1  ;;  %6464 = vmatprep.mubr.msk.bf16.mxu1 %vm6572_vm0, %v9068_v43 }
 0x4f2   : > { %v4425_v0 = vadd.f32 %v8610_v59, %v4377_v46  ;;  %v3995_v35 = vadd.f32 %v3943_v52, %v3612_v61  ;;  %v6526_v46 = vld [vmem:[%s6699_s22 + $0x20] sm:$0xff] }
 0x4f3   : > { %v6294_v58 = vpop.f32.mrf.mxu1 }
 0x4f4   : > { %v4466_v55 = vmax.f32 %v4425_v0, 0.0  ;;  %v4378_v12 = vadd.f32 %v8706_v49, %v3995_v35  ;;  %v6527_v35 = vld [vmem:[%s6699_s22 + $0x28] sm:$0xff] }
 0x4f5   : > { %v3946_v25 = vpop.f32.mrf.mxu1 }
 0x4f6   : > { %v4488_v4 = vpack.c.bf16 %v4466_v55, %v4465_v21  ;;  %v3996_v15 = vadd.f32 %v3946_v25, %v3613_v28  ;;  %v4426_v13 = vadd.f32 %v8610_v59, %v4378_v12 }
 0x4f7   : > { %v6295_v23 = vpop.f32.mrf.mxu1 }
 0x4f8   : > { %v4379_v56 = vadd.f32 %v8714_v18, %v3996_v15  ;;  %6465 = vmatmul.mubr.msk.bf16.gmra.mxu1 %vm968_vm1, %v4488_v4  ;;  %v4467_v8 = vmax.f32 %v4426_v13, 0.0  ;;  %v6529_v13 = vld [vmem:[%s6699_s22 + $0x38] sm:$0xff] }
 0x4f9   : > { %v3951_v26 = vpop.f32.mrf.mxu1  ;;  %6468 = vmatprep.mubr.msk.bf16.mxu1 %vm6572_vm0, %v9068_v43 }
 0x4fa   : > { %v4427_v49 = vadd.f32 %v8610_v59, %v4379_v56  ;;  %v3997_v1 = vadd.f32 %v3951_v26, %v3614_v27 }
 0x4fb   : > { %v6298_v19 = vpop.f32.mrf.mxu1 }
 0x4fc   : > { %v4468_v20 = vmax.f32 %v4427_v49, 0.0  ;;  %v4380_v2 = vadd.f32 %v8723_v51, %v3997_v1  ;;  %v8867_v51 = vld [vmem:[%s9009_s7] ss:$0 sm:$0xff] }
 0x4fd   : > { %v3954_v18 = vpop.f32.mrf.mxu1  ;;  %v6530_v49 = vld [vmem:[%s6699_s22 + $0x40] sm:$0xff] }
 0x4fe   : > { %v4489_v3 = vpack.c.bf16 %v4468_v20, %v4467_v8  ;;  %v4428_v31 = vadd.f32 %v8610_v59, %v4380_v2  ;;  %v6531_v18 = vld [vmem:[%s6699_s22 + $0x48] sm:$0xff] }
 0x4ff   : > { %v6299_v36 = vpop.f32.mrf.mxu1 }
 0x500   : > { %6469 = vmatmul.mubr.msk.bf16.gmra.mxu1 %vm968_vm1, %v4489_v3  ;;  %v4469_v39 = vmax.f32 %v4428_v31, 0.0 }
 0x501   : > { %6472 = vmatprep.mubr.msk.bf16.mxu1 %vm6572_vm0, %v9068_v43 }
 0x502   : > { %v4490_v24 = vpack.c.bf16 %v4469_v39, %v4469_v39 }
 0x508   : > { %6473 = vmatmul.mubr.msk.bf16.gmra.mxu1 %vm968_vm1, %v4490_v24 }
 0x528   : > { %v4611_v6 = vpop.f32.mrf.mxu1 }
 0x529   : > { %v4612_v11 = vadd.f32 %v8867_v51, %v4611_v6  ;;  %v6532_v6 = vld [vmem:[%s6699_s22 + $0x50] sm:$0xff] }
 0x52a   : > { %v6394_v59 = vpop.f32.mrf.mxu1 }
 0x52b   : > { %v4777_v7 = vadd.f32 %v6522_v54, %v4612_v11 }
 0x52c   : > { %v4614_v43 = vpop.f32.mrf.mxu1 }
 0x52d   : > { %v4818_v63 = vmax.f32 %v4777_v7, 0.0  ;;  %v4615_v29 = vadd.f32 %v8867_v51, %v4614_v43 }
 0x52e   : > { %v6395_v10 = vpop.f32.mrf.mxu1 }
 0x52f   : > { %4859 = vst [vmem:[%s8876_s9] sm:$0xff] %v4818_v63  ;;  %v4778_v33 = vadd.f32 %v6523_v22, %v4615_v29  ;;  %v6533_v63 = vld [vmem:[%s6699_s22 + $0x58] sm:$0xff] }
 0x530   : > { %v4619_v47 = vpop.f32.mrf.mxu1 }
 0x531   : > { %v4819_v32 = vmax.f32 %v4778_v33, 0.0  ;;  %v4620_v62 = vadd.f32 %v8867_v51, %v4619_v47 }
 0x532   : > { %v6398_v16 = vpop.f32.mrf.mxu1 }
 0x533   : > { %4860 = vst [vmem:[%s8876_s9 + $0x8] sm:$0xff] %v4819_v32  ;;  %v4779_v45 = vadd.f32 %v6524_v40, %v4620_v62  ;;  %v6534_v32 = vld [vmem:[%s6699_s22 + $0x60] sm:$0xff] }
 0x534   : > { %v4622_v38 = vpop.f32.mrf.mxu1 }
 0x535   : > { %v4820_v34 = vmax.f32 %v4779_v45, 0.0  ;;  %v4623_v50 = vadd.f32 %v8867_v51, %v4622_v38 }
 0x536   : > { %v6399_v42 = vpop.f32.mrf.mxu1 }
 0x537   : > { %4861 = vst [vmem:[%s8876_s9 + $0x10] sm:$0xff] %v4820_v34  ;;  %v4780_v17 = vadd.f32 %v6525_v30, %v4623_v50  ;;  %v6535_v34 = vld [vmem:[%s6699_s22 + $0x68] sm:$0xff] }
 0x538   : > { %v4627_v57 = vpop.f32.mrf.mxu1 }
 0x539   : > { %v4821_v5 = vmax.f32 %v4780_v17, 0.0  ;;  %v4628_v9 = vadd.f32 %v8867_v51, %v4627_v57 }
 0x53a   : > { %v6402_v14 = vpop.f32.mrf.mxu1 }
 0x53b   : > { %4862 = vst [vmem:[%s8876_s9 + $0x18] sm:$0xff] %v4821_v5  ;;  %v4781_v53 = vadd.f32 %v6526_v46, %v4628_v9  ;;  %v6536_v5 = vld [vmem:[%s6699_s22 + $0x70] sm:$0xff] }
 0x53c   : > { %v4630_v60 = vpop.f32.mrf.mxu1 }
 0x53d   : > { %v4822_v61 = vmax.f32 %v4781_v53, 0.0  ;;  %v4631_v52 = vadd.f32 %v8867_v51, %v4630_v60 }
 0x53e   : > { %v6403_v0 = vpop.f32.mrf.mxu1 }
 0x53f   : > { %4863 = vst [vmem:[%s8876_s9 + $0x20] sm:$0xff] %v4822_v61  ;;  %v4782_v58 = vadd.f32 %v6527_v35, %v4631_v52  ;;  %v6537_v61 = vld [vmem:[%s6699_s22 + $0x78] sm:$0xff] }
 0x540   : > { %v4635_v21 = vpop.f32.mrf.mxu1 }
 0x541   : > { %v4823_v55 = vmax.f32 %v4782_v58, 0.0  ;;  %v4636_v12 = vadd.f32 %v8867_v51, %v4635_v21 }
 0x542   : > { %v6406_v44 = vpop.f32.mrf.mxu1 }
 0x543   : > { %4864 = vst [vmem:[%s8876_s9 + $0x28] sm:$0xff] %v4823_v55  ;;  %v4783_v28 = vadd.f32 %v6528_v37, %v4636_v12  ;;  %v6538_v55 = vld [vmem:[%s6699_s22 + $0x80] sm:$0xff] }
 0x544   : > { %v4638_v25 = vpop.f32.mrf.mxu1 }
 0x545   : > { %v4824_v4 = vmax.f32 %v4783_v28, 0.0  ;;  %v4639_v15 = vadd.f32 %v8867_v51, %v4638_v25 }
 0x546   : > { %v6407_v23 = vpop.f32.mrf.mxu1 }
 0x547   : > { %4865 = vst [vmem:[%s8876_s9 + $0x30] sm:$0xff] %v4824_v4  ;;  %v4784_v56 = vadd.f32 %v6529_v13, %v4639_v15  ;;  %v6539_v4 = vld [vmem:[%s6699_s22 + $0x88] sm:$0xff] }
 0x548   : > { %v4643_v48 = vpop.f32.mrf.mxu1 }
 0x549   : > { %v4825_v41 = vmax.f32 %v4784_v56, 0.0  ;;  %v4644_v27 = vadd.f32 %v8867_v51, %v4643_v48 }
 0x54a   : > { %v6410_v26 = vpop.f32.mrf.mxu1 }
 0x54b   : > { %4866 = vst [vmem:[%s8876_s9 + $0x38] sm:$0xff] %v4825_v41  ;;  %v4785_v1 = vadd.f32 %v6530_v49, %v4644_v27  ;;  %v6540_v41 = vld [vmem:[%s6699_s22 + $0x90] sm:$0xff] }
 0x54c   : > { %v4646_v19 = vpop.f32.mrf.mxu1 }
 0x54d   : > { %v4826_v8 = vmax.f32 %v4785_v1, 0.0  ;;  %v4647_v20 = vadd.f32 %v8867_v51, %v4646_v19 }
 0x54e   : > { %v6411_v2 = vpop.f32.mrf.mxu1 }
 0x54f   : > { %4867 = vst [vmem:[%s8876_s9 + $0x40] sm:$0xff] %v4826_v8  ;;  %v4786_v3 = vadd.f32 %v6531_v18, %v4647_v20  ;;  %v6541_v8 = vld [vmem:[%s6699_s22 + $0x98] sm:$0xff] }
 0x550   : > { %v4651_v31 = vpop.f32.mrf.mxu1 }
 0x551   : > { %v4827_v36 = vmax.f32 %v4786_v3, 0.0  ;;  %v4652_v39 = vadd.f32 %v8867_v51, %v4651_v31 }
 0x552   : > { %v6414_v24 = vpop.f32.mrf.mxu1 }
 0x553   : > { %4868 = vst [vmem:[%s8876_s9 + $0x48] sm:$0xff] %v4827_v36  ;;  %v4787_v11 = vadd.f32 %v6532_v6, %v4652_v39  ;;  %v6542_v36 = vld [vmem:[%s6699_s22 + $0xa0] sm:$0xff] }
 0x554   : > { %v4654_v59 = vpop.f32.mrf.mxu1 }
 0x555   : > { %v4828_v54 = vmax.f32 %v4787_v11, 0.0  ;;  %v4655_v7 = vadd.f32 %v8867_v51, %v4654_v59 }
 0x556   : > { %v6415_v43 = vpop.f32.mrf.mxu1 }
 0x557   : > { %4869 = vst [vmem:[%s8876_s9 + $0x50] sm:$0xff] %v4828_v54  ;;  %v4788_v29 = vadd.f32 %v6533_v63, %v4655_v7  ;;  %v6543_v54 = vld [vmem:[%s6699_s22 + $0xa8] sm:$0xff] }
 0x558   : > { %v4659_v10 = vpop.f32.mrf.mxu1 }
 0x559   : > { %v4829_v22 = vmax.f32 %v4788_v29, 0.0  ;;  %v4660_v33 = vadd.f32 %v8867_v51, %v4659_v10 }
 0x55a   : > { %v6418_v47 = vpop.f32.mrf.mxu1 }
 0x55b   : > { %4870 = vst [vmem:[%s8876_s9 + $0x58] sm:$0xff] %v4829_v22  ;;  %v4789_v62 = vadd.f32 %v6534_v32, %v4660_v33  ;;  %v6544_v22 = vld [vmem:[%s6699_s22 + $0xb0] sm:$0xff] }
 0x55c   : > { %v4662_v16 = vpop.f32.mrf.mxu1 }
 0x55d   : > { %v4830_v40 = vmax.f32 %v4789_v62, 0.0  ;;  %v4663_v45 = vadd.f32 %v8867_v51, %v4662_v16 }
 0x55e   : > { %v6419_v38 = vpop.f32.mrf.mxu1 }
 0x55f   : > { %4871 = vst [vmem:[%s8876_s9 + $0x60] sm:$0xff] %v4830_v40  ;;  %v4790_v50 = vadd.f32 %v6535_v34, %v4663_v45  ;;  %v6545_v40 = vld [vmem:[%s6699_s22 + $0xb8] sm:$0xff] }
 0x560   : > { %v4667_v42 = vpop.f32.mrf.mxu1 }
 0x561   : > { %v4831_v30 = vmax.f32 %v4790_v50, 0.0  ;;  %v4668_v17 = vadd.f32 %v8867_v51, %v4667_v42 }
 0x562   : > { %v6422_v57 = vpop.f32.mrf.mxu1 }
 0x563   : > { %4872 = vst [vmem:[%s8876_s9 + $0x68] sm:$0xff] %v4831_v30  ;;  %v4791_v9 = vadd.f32 %v6536_v5, %v4668_v17  ;;  %v6546_v30 = vld [vmem:[%s6699_s22 + $0xc0] sm:$0xff] }
 0x564   : > { %v4670_v14 = vpop.f32.mrf.mxu1 }
 0x565   : > { %v4832_v46 = vmax.f32 %v4791_v9, 0.0  ;;  %v4671_v53 = vadd.f32 %v8867_v51, %v4670_v14 }
 0x566   : > { %v6423_v60 = vpop.f32.mrf.mxu1 }
 0x567   : > { %4873 = vst [vmem:[%s8876_s9 + $0x70] sm:$0xff] %v4832_v46  ;;  %v4792_v52 = vadd.f32 %v6537_v61, %v4671_v53  ;;  %v6547_v46 = vld [vmem:[%s6699_s22 + $0xc8] sm:$0xff] }
 0x568   : > { %v4675_v0 = vpop.f32.mrf.mxu1 }
 0x569   : > { %v4833_v35 = vmax.f32 %v4792_v52, 0.0  ;;  %v4676_v58 = vadd.f32 %v8867_v51, %v4675_v0 }
 0x56a   : > { %v6426_v21 = vpop.f32.mrf.mxu1 }
 0x56b   : > { %4874 = vst [vmem:[%s8876_s9 + $0x78] sm:$0xff] %v4833_v35  ;;  %v4793_v12 = vadd.f32 %v6538_v55, %v4676_v58  ;;  %v6548_v35 = vld [vmem:[%s6699_s22 + $0xd0] sm:$0xff] }
 0x56c   : > { %v4678_v44 = vpop.f32.mrf.mxu1 }
 0x56d   : > { %v4834_v37 = vmax.f32 %v4793_v12, 0.0  ;;  %v4679_v28 = vadd.f32 %v8867_v51, %v4678_v44 }
 0x56e   : > { %v6427_v25 = vpop.f32.mrf.mxu1 }
 0x56f   : > { %4875 = vst [vmem:[%s8876_s9 + $0x80] sm:$0xff] %v4834_v37  ;;  %v4794_v15 = vadd.f32 %v6539_v4, %v4679_v28  ;;  %v6549_v37 = vld [vmem:[%s6699_s22 + $0xd8] sm:$0xff] }
 0x570   : > { %v4683_v23 = vpop.f32.mrf.mxu1 }
 0x571   : > { %v4835_v13 = vmax.f32 %v4794_v15, 0.0  ;;  %v4684_v56 = vadd.f32 %v8867_v51, %v4683_v23 }
 0x572   : > { %v6430_v48 = vpop.f32.mrf.mxu1 }
 0x573   : > { %4876 = vst [vmem:[%s8876_s9 + $0x88] sm:$0xff] %v4835_v13  ;;  %v4795_v27 = vadd.f32 %v6540_v41, %v4684_v56  ;;  %v6550_v13 = vld [vmem:[%s6699_s22 + $0xe0] sm:$0xff] }
 0x574   : > { %v4686_v26 = vpop.f32.mrf.mxu1 }
 0x575   : > { %v4836_v49 = vmax.f32 %v4795_v27, 0.0  ;;  %v4687_v1 = vadd.f32 %v8867_v51, %v4686_v26 }
 0x576   : > { %v6431_v19 = vpop.f32.mrf.mxu1 }
 0x577   : > { %4877 = vst [vmem:[%s8876_s9 + $0x90] sm:$0xff] %v4836_v49  ;;  %v4796_v20 = vadd.f32 %v6541_v8, %v4687_v1  ;;  %v6551_v49 = vld [vmem:[%s6699_s22 + $0xe8] sm:$0xff] }
 0x578   : > { %v4691_v2 = vpop.f32.mrf.mxu1 }
 0x579   : > { %v4837_v18 = vmax.f32 %v4796_v20, 0.0  ;;  %v4692_v3 = vadd.f32 %v8867_v51, %v4691_v2 }
 0x57a   : > { %v6434_v31 = vpop.f32.mrf.mxu1 }
 0x57b   : > { %4878 = vst [vmem:[%s8876_s9 + $0x98] sm:$0xff] %v4837_v18  ;;  %v4797_v39 = vadd.f32 %v6542_v36, %v4692_v3  ;;  %v6552_v18 = vld [vmem:[%s6699_s22 + $0xf0] sm:$0xff] }
 0x57c   : > { %v4694_v24 = vpop.f32.mrf.mxu1 }
 0x57d   : > { %v4838_v6 = vmax.f32 %v4797_v39, 0.0  ;;  %v4695_v11 = vadd.f32 %v8867_v51, %v4694_v24 }
 0x57e   : > { %v6435_v59 = vpop.f32.mrf.mxu1 }
 0x57f   : > { %4879 = vst [vmem:[%s8876_s9 + $0xa0] sm:$0xff] %v4838_v6  ;;  %v4798_v7 = vadd.f32 %v6543_v54, %v4695_v11  ;;  %v6553_v6 = vld [vmem:[%s6699_s22 + $0xf8] sm:$0xff] }
 0x580   : > { %v4699_v43 = vpop.f32.mrf.mxu1 }
 0x581   : > { %v4839_v63 = vmax.f32 %v4798_v7, 0.0  ;;  %v4700_v29 = vadd.f32 %v8867_v51, %v4699_v43 }
 0x582   : > { %v6438_v10 = vpop.f32.mrf.mxu1 }
 0x583   : > { %4880 = vst [vmem:[%s8876_s9 + $0xa8] sm:$0xff] %v4839_v63  ;;  %v4799_v33 = vadd.f32 %v6544_v22, %v4700_v29  ;;  %v6554_v63 = vld [vmem:[%s6699_s22 + $0x100] sm:$0xff] }
 0x584   : > { %v4702_v47 = vpop.f32.mrf.mxu1 }
 0x585   : > { %v4840_v32 = vmax.f32 %v4799_v33, 0.0  ;;  %v4703_v62 = vadd.f32 %v8867_v51, %v4702_v47 }
 0x586   : > { %v6439_v16 = vpop.f32.mrf.mxu1 }
 0x587   : > { %4881 = vst [vmem:[%s8876_s9 + $0xb0] sm:$0xff] %v4840_v32  ;;  %v4800_v45 = vadd.f32 %v6545_v40, %v4703_v62  ;;  %v6555_v32 = vld [vmem:[%s6699_s22 + $0x108] sm:$0xff] }
 0x588   : > { %v4707_v38 = vpop.f32.mrf.mxu1 }
 0x589   : > { %v4841_v34 = vmax.f32 %v4800_v45, 0.0  ;;  %v4708_v50 = vadd.f32 %v8867_v51, %v4707_v38 }
 0x58a   : > { %v6442_v42 = vpop.f32.mrf.mxu1 }
 0x58b   : > { %4882 = vst [vmem:[%s8876_s9 + $0xb8] sm:$0xff] %v4841_v34  ;;  %v4801_v17 = vadd.f32 %v6546_v30, %v4708_v50  ;;  %v6556_v34 = vld [vmem:[%s6699_s22 + $0x110] sm:$0xff] }
 0x58c   : > { %v4710_v57 = vpop.f32.mrf.mxu1 }
 0x58d   : > { %v4842_v5 = vmax.f32 %v4801_v17, 0.0  ;;  %v4711_v9 = vadd.f32 %v8867_v51, %v4710_v57 }
 0x58e   : > { %v6443_v14 = vpop.f32.mrf.mxu1 }
 0x58f   : > { %4883 = vst [vmem:[%s8876_s9 + $0xc0] sm:$0xff] %v4842_v5  ;;  %v4802_v53 = vadd.f32 %v6547_v46, %v4711_v9  ;;  %v6557_v5 = vld [vmem:[%s6699_s22 + $0x118] sm:$0xff] }
 0x590   : > { %v4715_v60 = vpop.f32.mrf.mxu1 }
 0x591   : > { %v4843_v61 = vmax.f32 %v4802_v53, 0.0  ;;  %v4716_v52 = vadd.f32 %v8867_v51, %v4715_v60 }
 0x592   : > { %v6446_v0 = vpop.f32.mrf.mxu1 }
 0x593   : > { %4884 = vst [vmem:[%s8876_s9 + $0xc8] sm:$0xff] %v4843_v61  ;;  %v4803_v58 = vadd.f32 %v6548_v35, %v4716_v52  ;;  %v6558_v61 = vld [vmem:[%s6699_s22 + $0x120] sm:$0xff] }
 0x594   : > { %v4718_v21 = vpop.f32.mrf.mxu1 }
 0x595   : > { %v4844_v55 = vmax.f32 %v4803_v58, 0.0  ;;  %v4719_v12 = vadd.f32 %v8867_v51, %v4718_v21 }
 0x596   : > { %v6447_v44 = vpop.f32.mrf.mxu1 }
 0x597   : > { %4885 = vst [vmem:[%s8876_s9 + $0xd0] sm:$0xff] %v4844_v55  ;;  %v4804_v28 = vadd.f32 %v6549_v37, %v4719_v12  ;;  %v6559_v55 = vld [vmem:[%s6699_s22 + $0x128] sm:$0xff] }
 0x598   : > { %v4723_v25 = vpop.f32.mrf.mxu1 }
 0x599   : > { %v4845_v4 = vmax.f32 %v4804_v28, 0.0  ;;  %v4724_v15 = vadd.f32 %v8867_v51, %v4723_v25 }
 0x59a   : > { %v6450_v23 = vpop.f32.mrf.mxu1 }
 0x59b   : > { %4886 = vst [vmem:[%s8876_s9 + $0xd8] sm:$0xff] %v4845_v4  ;;  %v4805_v56 = vadd.f32 %v6550_v13, %v4724_v15  ;;  %v6560_v4 = vld [vmem:[%s6699_s22 + $0x130] sm:$0xff] }
 0x59c   : > { %v4726_v48 = vpop.f32.mrf.mxu1 }
 0x59d   : > { %v4846_v41 = vmax.f32 %v4805_v56, 0.0  ;;  %v4727_v27 = vadd.f32 %v8867_v51, %v4726_v48 }
 0x59e   : > { %v6451_v26 = vpop.f32.mrf.mxu1 }
 0x59f   : > { %4887 = vst [vmem:[%s8876_s9 + $0xe0] sm:$0xff] %v4846_v41  ;;  %v4806_v1 = vadd.f32 %v6551_v49, %v4727_v27  ;;  %v6561_v41 = vld [vmem:[%s6699_s22 + $0x138] sm:$0xff] }
 0x5a0   : > { %v4731_v19 = vpop.f32.mrf.mxu1 }
 0x5a1   : > { %v4847_v8 = vmax.f32 %v4806_v1, 0.0  ;;  %v4732_v20 = vadd.f32 %v8867_v51, %v4731_v19 }
 0x5a2   : > { %v6454_v2 = vpop.f32.mrf.mxu1 }
 0x5a3   : > { %4888 = vst [vmem:[%s8876_s9 + $0xe8] sm:$0xff] %v4847_v8  ;;  %v4807_v3 = vadd.f32 %v6552_v18, %v4732_v20  ;;  %v6562_v8 = vld [vmem:[%s6699_s22 + $0x140] sm:$0xf] }
 0x5a4   : > { %v4734_v31 = vpop.f32.mrf.mxu1 }
 0x5a5   : > { %v4848_v36 = vmax.f32 %v4807_v3, 0.0  ;;  %v4735_v39 = vadd.f32 %v8867_v51, %v4734_v31 }
 0x5a6   : > { %v6455_v24 = vpop.f32.mrf.mxu1 }
 0x5a7   : > { %4889 = vst [vmem:[%s8876_s9 + $0xf0] sm:$0xff] %v4848_v36  ;;  %v4808_v11 = vadd.f32 %v6553_v6, %v4735_v39 }
 0x5a8   : > { %v4739_v59 = vpop.f32.mrf.mxu1 }
 0x5a9   : > { %v4849_v54 = vmax.f32 %v4808_v11, 0.0  ;;  %v4740_v7 = vadd.f32 %v8867_v51, %v4739_v59 }
 0x5aa   : > { %v6458_v43 = vpop.f32.mrf.mxu1 }
 0x5ab   : > { %4890 = vst [vmem:[%s8876_s9 + $0xf8] sm:$0xff] %v4849_v54  ;;  %v4809_v29 = vadd.f32 %v6554_v63, %v4740_v7 }
 0x5ac   : > { %v4742_v10 = vpop.f32.mrf.mxu1 }
 0x5ad   : > { %v4850_v22 = vmax.f32 %v4809_v29, 0.0  ;;  %v4743_v33 = vadd.f32 %v8867_v51, %v4742_v10 }
 0x5ae   : > { %v6459_v47 = vpop.f32.mrf.mxu1 }
 0x5af   : > { %4891 = vst [vmem:[%s8876_s9 + $0x100] sm:$0xff] %v4850_v22  ;;  %v4810_v62 = vadd.f32 %v6555_v32, %v4743_v33 }
 0x5b0   : > { %v4747_v16 = vpop.f32.mrf.mxu1 }
 0x5b1   : > { %v4851_v40 = vmax.f32 %v4810_v62, 0.0  ;;  %v4748_v45 = vadd.f32 %v8867_v51, %v4747_v16 }
 0x5b2   : > { %v6462_v38 = vpop.f32.mrf.mxu1 }
 0x5b3   : > { %4892 = vst [vmem:[%s8876_s9 + $0x108] sm:$0xff] %v4851_v40  ;;  %v4811_v50 = vadd.f32 %v6556_v34, %v4748_v45 }
 0x5b4   : > { %v4750_v42 = vpop.f32.mrf.mxu1 }
 0x5b5   : > { %v4852_v30 = vmax.f32 %v4811_v50, 0.0  ;;  %v4751_v17 = vadd.f32 %v8867_v51, %v4750_v42 }
 0x5b6   : > { %v6463_v57 = vpop.f32.mrf.mxu1 }
 0x5b7   : > { %4893 = vst [vmem:[%s8876_s9 + $0x110] sm:$0xff] %v4852_v30  ;;  %v4812_v9 = vadd.f32 %v6557_v5, %v4751_v17 }
 0x5b8   : > { %v4755_v14 = vpop.f32.mrf.mxu1 }
 0x5b9   : > { %v4853_v46 = vmax.f32 %v4812_v9, 0.0  ;;  %v4756_v53 = vadd.f32 %v8867_v51, %v4755_v14 }
 0x5ba   : > { %v6466_v60 = vpop.f32.mrf.mxu1 }
 0x5bb   : > { %4894 = vst [vmem:[%s8876_s9 + $0x118] sm:$0xff] %v4853_v46  ;;  %v4813_v52 = vadd.f32 %v6558_v61, %v4756_v53 }
 0x5bc   : > { %v4758_v0 = vpop.f32.mrf.mxu1 }
 0x5bd   : > { %v4854_v35 = vmax.f32 %v4813_v52, 0.0  ;;  %v4759_v58 = vadd.f32 %v8867_v51, %v4758_v0 }
 0x5be   : > { %v6467_v21 = vpop.f32.mrf.mxu1 }
 0x5bf   : > { %4895 = vst [vmem:[%s8876_s9 + $0x120] sm:$0xff] %v4854_v35  ;;  %v4814_v12 = vadd.f32 %v6559_v55, %v4759_v58 }
 0x5c0   : > { %v4763_v44 = vpop.f32.mrf.mxu1 }
 0x5c1   : > { %v4855_v37 = vmax.f32 %v4814_v12, 0.0  ;;  %v4764_v28 = vadd.f32 %v8867_v51, %v4763_v44 }
 0x5c2   : > { %v6470_v25 = vpop.f32.mrf.mxu1 }
 0x5c3   : > { %4896 = vst [vmem:[%s8876_s9 + $0x128] sm:$0xff] %v4855_v37  ;;  %v4815_v15 = vadd.f32 %v6560_v4, %v4764_v28 }
 0x5c4   : > { %v4766_v23 = vpop.f32.mrf.mxu1 }
 0x5c5   : > { %v4856_v13 = vmax.f32 %v4815_v15, 0.0  ;;  %v4767_v56 = vadd.f32 %v8867_v51, %v4766_v23 }
 0x5c6   : > { %v6471_v48 = vpop.f32.mrf.mxu1 }
 0x5c7   : > { %4897 = vst [vmem:[%s8876_s9 + $0x130] sm:$0xff] %v4856_v13  ;;  %v4816_v27 = vadd.f32 %v6561_v41, %v4767_v56 }
 0x5c8   : > { %v4771_v26 = vpop.f32.mrf.mxu1 }
 0x5c9   : > { %v4857_v49 = vmax.f32 %v4816_v27, 0.0  ;;  %v4772_v1 = vadd.f32 %v8867_v51, %v4771_v26 }
 0x5ca   : > { %v6474_v19 = vpop.f32.mrf.mxu1 }
 0x5cb   : > { %4898 = vst [vmem:[%s8876_s9 + $0x138] sm:$0xff] %v4857_v49  ;;  %v4817_v20 = vadd.f32 %v6562_v8, %v4772_v1 }
 0x5cc   : > { %v4774_v2 = vpop.f32.mrf.mxu1 }
 0x5cd   : > { %v4858_v18 = vmax.f32 %v4817_v20, 0.0 }
 0x5ce   : > { %v6475_v3 = vpop.f32.mrf.mxu1 }
 0x5cf   : > { %4899 = vst [vmem:[%s8876_s9 + $0x140] sm:$0xf] %v4858_v18 }
 0x5d0 PF: > { %s18_s27 = sadd.s32 1, %s6569_s27  }
 0x5d1   : > { %p15_p4 = scmp.ge.s32.totalorder %s18_s27, 4  }
 0x5d3   :  { %17 = sbr.rel (!%p15_p4) target bundleno = 1 (0x1), region = 90 }

</bundles_post_ra>
